<compile_context>
chip_gen: v5e
topology: v5e:2x2
jax: 0.10.0
libtpu: 0.0.40
codegen_flags: <defaults>
</compile_context>

<pallas_src>
import jax
import jax.numpy as jnp
from jax.experimental import pallas as pl
from jax.experimental.pallas import tpu as pltpu

HIDDEN = 32        # nn.LSTM hidden_size (small stand-in for 128)
NUM_LAYERS = 2
INPUT_SIZE = 64    # stand-in for the TF-IDF feature dim (5000)
BATCH = 2
SEQ = 8

# PyTorch LSTM packs gate rows as (i, f, g, o).  We repack columns once at
# init as (i, f, o, g) x (fwd, bwd) so the kernel only needs one contiguous
# sigmoid over [i|f|o] and one contiguous tanh over [g].
_GATE_SRC = (0, 1, 3, 2)


# ---------------------------------------------------------------------------
# Fused kernel
# ---------------------------------------------------------------------------
def make_fused_kernel(T: int, B: int, H: int):
    """Fused 2-layer bidirectional LSTM + Linear(2H->1) + sigmoid."""

    def bidir_layer(x_flat_bf16, wf_ref, wb_ref, whh_ref, bias_ref):
        """One bidirectional LSTM layer over the whole sequence.

        x_flat_bf16: (T*B, Din) time-major rows (row t*B+b == x[b, t, :]).
        wf/wb:  (Din, 8H) bf16 input weights; each direction's gate columns
                sit in their final packed slots (other direction zero-padded),
                so no per-step lane interleaving is needed.
        whh:    (2H, 8H) bf16 block-diagonal recurrent weights.
        bias:   (1, 8H) f32 combined b_ih + b_hh for both directions.
        Returns per-step lists (fwd_h, bwd_h) of (B, H); bwd_h[s] is the
        backward hidden for time position T-1-s.
        """
        # Hoisted input projection for both directions; bias added once here.
        gxf = jnp.dot(x_flat_bf16, wf_ref[...],
                      preferred_element_type=jnp.float32) + bias_ref[...]
        gxb = jnp.dot(x_flat_bf16, wb_ref[...],
                      preferred_element_type=jnp.float32)
        whh = whh_ref[...]

        h = jnp.zeros((B, 2 * H), jnp.float32)   # [h_fwd | h_bwd]
        c = jnp.zeros((B, 2 * H), jnp.float32)   # [c_fwd | c_bwd]
        fwd_h, bwd_h = [], []
        for s in range(T):   # fully unrolled: T is a compile-time constant
            rec = jnp.dot(h.astype(jnp.bfloat16), whh,
                          preferred_element_type=jnp.float32)
            gates = (gxf[s * B:(s + 1) * B, :]                # fwd uses x[s]
                     + gxb[(T - 1 - s) * B:(T - s) * B, :]    # bwd uses x[T-1-s]
                     + rec)                                   # (B, 8H)
            sig = jax.nn.sigmoid(gates[:, 0:6 * H])   # [i | f | o], one EUP pass
            g = jnp.tanh(gates[:, 6 * H:8 * H])       # [g],        one EUP pass
            i = sig[:, 0:2 * H]
            f = sig[:, 2 * H:4 * H]
            o = sig[:, 4 * H:6 * H]
            c = f * c + i * g
            h = o * jnp.tanh(c)
            fwd_h.append(h[:, 0:H])        # fwd hidden for time s
            bwd_h.append(h[:, H:2 * H])    # bwd hidden for time T-1-s
        return fwd_h, bwd_h

    def kernel(x_ref,
               w1f_ref, w1b_ref, whh1_ref, bias1_ref,
               w2f_ref, w2b_ref, whh2_ref, bias2_ref,
               wfc_ref, bfc_ref, out_ref):
        # ---- layer 0 ------------------------------------------------------
        fwd1, bwd1 = bidir_layer(x_ref[...], w1f_ref, w1b_ref, whh1_ref,
                                 bias1_ref)
        # Layer-0 output sequence, time-major flat (T*B, 2H); stays in VMEM.
        l1 = jnp.concatenate(
            [jnp.concatenate([fwd1[t], bwd1[T - 1 - t]], axis=-1)
             for t in range(T)], axis=0).astype(jnp.bfloat16)
        # ---- layer 1 ------------------------------------------------------
        fwd2, bwd2 = bidir_layer(l1, w2f_ref, w2b_ref, whh2_ref, bias2_ref)
        # out[:, -1, :] of a batch_first bidirectional LSTM:
        # [fwd h at t=T-1 | bwd h at t=T-1] (bwd pass' first step).
        last = jnp.concatenate([fwd2[T - 1], bwd2[0]], axis=-1)   # (B, 2H)
        # ---- dropout(eval) + Linear(2H -> 1) + sigmoid ----------------------
        # TODO(synk): nn.Dropout(0.5) is identity at inference; training-mode
        # dropout masking is not implemented.
        # N=1 Linear done as a VPU multiply + lane reduction (no MXU/extra launch).
        y = jnp.sum(last * wfc_ref[...], axis=-1, keepdims=True) + bfc_ref[...]
        out_ref[...] = jax.nn.sigmoid(y)

    return kernel


# ---------------------------------------------------------------------------
# One-time weight packing (done at init, NOT per forward pass)
# ---------------------------------------------------------------------------
def _pack_bidir_layer(w_ih_f, w_hh_f, b_ih_f, b_hh_f,
                      w_ih_b, w_hh_b, b_ih_b, b_hh_b, H):
    din = w_ih_f.shape[1]
    wtf, wtb = jnp.transpose(w_ih_f), jnp.transpose(w_ih_b)     # (Din, 4H)
    htf, htb = jnp.transpose(w_hh_f), jnp.transpose(w_hh_b)     # (H, 4H)
    bf, bb = b_ih_f + b_hh_f, b_ih_b + b_hh_b                   # (4H,)

    zi = jnp.zeros((din, H), jnp.float32)
    zh = jnp.zeros((H, H), jnp.float32)
    wf_cols, wb_cols, hf_cols, hb_cols, b_cols = [], [], [], [], []
    for k in _GATE_SRC:
        s = slice(k * H, (k + 1) * H)
        wf_cols += [wtf[:, s], zi]      # fwd input weights; bwd slots zeroed
        wb_cols += [zi, wtb[:, s]]      # bwd input weights; fwd slots zeroed
        hf_cols += [htf[:, s], zh]      # h_fwd only drives fwd gate columns
        hb_cols += [zh, htb[:, s]]      # h_bwd only drives bwd gate columns
        b_cols += [bf[s], bb[s]]
    return dict(
        wf=jnp.concatenate(wf_cols, axis=1).astype(jnp.bfloat16),   # (Din, 8H)
        wb=jnp.concatenate(wb_cols, axis=1).astype(jnp.bfloat16),   # (Din, 8H)
        whh=jnp.concatenate(
            [jnp.concatenate(hf_cols, axis=1),
             jnp.concatenate(hb_cols, axis=1)],
            axis=0).astype(jnp.bfloat16),                           # (2H, 8H)
        bias=jnp.concatenate(b_cols).reshape(1, 8 * H).astype(jnp.float32),
    )


def pack_params(raw):
    layers = []
    for l in range(NUM_LAYERS):
        layers.append(_pack_bidir_layer(
            raw[f"w_ih_l{l}"], raw[f"w_hh_l{l}"],
            raw[f"b_ih_l{l}"], raw[f"b_hh_l{l}"],
            raw[f"w_ih_l{l}_rev"], raw[f"w_hh_l{l}_rev"],
            raw[f"b_ih_l{l}_rev"], raw[f"b_hh_l{l}_rev"], HIDDEN))
    return dict(layers=layers,
                fc_w=raw["fc_w"].reshape(1, 2 * HIDDEN).astype(jnp.float32),
                fc_b=raw["fc_b"].reshape(1, 1).astype(jnp.float32))


# ---------------------------------------------------------------------------
# Forward pass (matches SMSRNN.forward semantics)
# ---------------------------------------------------------------------------
@jax.jit
def sms_rnn_forward(x_btf, packed):
    """x_btf: (B, T, input_size), batch_first like the PyTorch module."""
    B, T, _ = x_btf.shape
    H = HIDDEN
    # batch_first -> time-major flat rows (row t*B + b == x[b, t, :]); bf16
    # feeds the MXU, all accumulation inside the kernel is f32.
    x_flat = jnp.transpose(x_btf, (1, 0, 2)).reshape(T * B, -1)
    x_flat = x_flat.astype(jnp.bfloat16)
    l0, l1 = packed["layers"]
    vmem = pl.BlockSpec(memory_space=pltpu.MemorySpace.VMEM)
    # Whole working set (weights + activations) is ~100 KB at these shapes, so
    # a single un-gridded call with everything resident in VMEM is optimal.
    # TODO(synk): at the real sizes (input_size=5000, hidden=128) tile layer-0
    # W_ih over Din with a small grid (or raise vmem_limit_bytes on v5e).
    return pl.pallas_call(
        make_fused_kernel(T, B, H),
        out_shape=jax.ShapeDtypeStruct((B, 1), jnp.float32),
        in_specs=[vmem] * 11,
        out_specs=vmem,
    )(x_flat,
      l0["wf"], l0["wb"], l0["whh"], l0["bias"],
      l1["wf"], l1["wb"], l1["whh"], l1["bias"],
      packed["fc_w"], packed["fc_b"])


def init_params(key):
    params = {}
    bound = 1.0 / (HIDDEN ** 0.5)

    def u(k, shape):
        return jax.random.uniform(k, shape, jnp.float32, -bound, bound)

    keys = iter(jax.random.split(key, 64))
    for l in range(NUM_LAYERS):
        in_sz = INPUT_SIZE if l == 0 else 2 * HIDDEN
        for suf in ("", "_rev"):
            params[f"w_ih_l{l}{suf}"] = u(next(keys), (4 * HIDDEN, in_sz))
            params[f"w_hh_l{l}{suf}"] = u(next(keys), (4 * HIDDEN, HIDDEN))
            params[f"b_ih_l{l}{suf}"] = u(next(keys), (4 * HIDDEN,))
            params[f"b_hh_l{l}{suf}"] = u(next(keys), (4 * HIDDEN,))
    params["fc_w"] = u(next(keys), (1, 2 * HIDDEN))
    params["fc_b"] = u(next(keys), (1,))
    return params


if __name__ == "__main__":
    key = jax.random.PRNGKey(0)
    pkey, xkey = jax.random.split(key)
    raw_params = init_params(pkey)
    packed = pack_params(raw_params)          # one-time weight repack
    x = jax.random.normal(xkey, (BATCH, SEQ, INPUT_SIZE), jnp.float32)
    out = sms_rnn_forward(x, packed)
    jax.block_until_ready(out)
    assert out.shape == (BATCH, 1)
    assert bool(jnp.all(jnp.isfinite(out)))
    print("KERNEL_OK")
</pallas_src>

<mosaic_0001>
module attributes {stable_mosaic.version = 11 : i64} {
  func.func @kernel(%arg0: memref<16x64xbf16, #tpu.memory_space<vmem>>, %arg1: memref<64x256xbf16, #tpu.memory_space<vmem>>, %arg2: memref<64x256xbf16, #tpu.memory_space<vmem>>, %arg3: memref<64x256xbf16, #tpu.memory_space<vmem>>, %arg4: memref<1x256xf32, #tpu.memory_space<vmem>>, %arg5: memref<64x256xbf16, #tpu.memory_space<vmem>>, %arg6: memref<64x256xbf16, #tpu.memory_space<vmem>>, %arg7: memref<64x256xbf16, #tpu.memory_space<vmem>>, %arg8: memref<1x256xf32, #tpu.memory_space<vmem>>, %arg9: memref<1x64xf32, #tpu.memory_space<vmem>>, %arg10: memref<1x1xf32, #tpu.memory_space<vmem>>, %arg11: memref<2x1xf32, #tpu.memory_space<vmem>>) attributes {dimension_semantics = [], scalar_prefetch = 0 : i64, scratch_operands = 0 : i64, tpu.core_type = #tpu.core_type<tc>} {
    %c0 = arith.constant 0 : index
    %c0_0 = arith.constant 0 : index
    %0 = vector.load %arg0[%c0, %c0_0] : memref<16x64xbf16, #tpu.memory_space<vmem>>, vector<16x64xbf16>
    %c0_1 = arith.constant 0 : index
    %c0_2 = arith.constant 0 : index
    %1 = vector.load %arg1[%c0_1, %c0_2] : memref<64x256xbf16, #tpu.memory_space<vmem>>, vector<64x256xbf16>
    %cst = arith.constant dense<0.000000e+00> : vector<16x256xf32>
    %2 = tpu.matmul %0, %1, %cst {dimension_numbers = #tpu.dot_dimension_numbers<[1], [0], [0], [1], [0, 0, 1, 1], [], []>} : vector<16x64xbf16>, vector<64x256xbf16>, vector<16x256xf32> -> vector<16x256xf32>
    %c0_3 = arith.constant 0 : index
    %c0_4 = arith.constant 0 : index
    %3 = vector.load %arg4[%c0_3, %c0_4] : memref<1x256xf32, #tpu.memory_space<vmem>>, vector<1x256xf32>
    %4 = vector.broadcast %3 : vector<1x256xf32> to vector<16x256xf32>
    %5 = arith.addf %2, %4 : vector<16x256xf32>
    %c0_5 = arith.constant 0 : index
    %c0_6 = arith.constant 0 : index
    %6 = vector.load %arg2[%c0_5, %c0_6] : memref<64x256xbf16, #tpu.memory_space<vmem>>, vector<64x256xbf16>
    %cst_7 = arith.constant dense<0.000000e+00> : vector<16x256xf32>
    %7 = tpu.matmul %0, %6, %cst_7 {dimension_numbers = #tpu.dot_dimension_numbers<[1], [0], [0], [1], [0, 0, 1, 1], [], []>} : vector<16x64xbf16>, vector<64x256xbf16>, vector<16x256xf32> -> vector<16x256xf32>
    %c0_8 = arith.constant 0 : index
    %c0_9 = arith.constant 0 : index
    %8 = vector.load %arg3[%c0_8, %c0_9] : memref<64x256xbf16, #tpu.memory_space<vmem>>, vector<64x256xbf16>
    %cst_10 = arith.constant 0.000000e+00 : f32
    %9 = vector.broadcast %cst_10 : f32 to vector<2x64xf32>
    %cst_11 = arith.constant 0.000000e+00 : f32
    %10 = vector.broadcast %cst_11 : f32 to vector<2x64xf32>
    %11 = arith.truncf %9 : vector<2x64xf32> to vector<2x64xbf16>
    %cst_12 = arith.constant dense<0.000000e+00> : vector<2x256xf32>
    %12 = tpu.matmul %11, %8, %cst_12 {dimension_numbers = #tpu.dot_dimension_numbers<[1], [0], [0], [1], [0, 0, 1, 1], [], []>} : vector<2x64xbf16>, vector<64x256xbf16>, vector<2x256xf32> -> vector<2x256xf32>
    %13 = vector.extract_strided_slice %5 {offsets = [0, 0], sizes = [2, 256], strides = [1, 1]} : vector<16x256xf32> to vector<2x256xf32>
    %14 = vector.extract_strided_slice %7 {offsets = [14, 0], sizes = [2, 256], strides = [1, 1]} : vector<16x256xf32> to vector<2x256xf32>
    %15 = arith.addf %13, %14 : vector<2x256xf32>
    %16 = arith.addf %15, %12 : vector<2x256xf32>
    %17 = vector.extract_strided_slice %16 {offsets = [0, 0], sizes = [2, 192], strides = [1, 1]} : vector<2x256xf32> to vector<2x192xf32>
    %18 = arith.negf %17 : vector<2x192xf32>
    %19 = math.exp %18 : vector<2x192xf32>
    %cst_13 = arith.constant 1.000000e+00 : f32
    %20 = vector.broadcast %cst_13 : f32 to vector<2x192xf32>
    %21 = arith.addf %20, %19 : vector<2x192xf32>
    %22 = arith.divf %20, %21 : vector<2x192xf32>
    %23 = vector.extract_strided_slice %16 {offsets = [0, 192], sizes = [2, 64], strides = [1, 1]} : vector<2x256xf32> to vector<2x64xf32>
    %24 = math.tanh %23 : vector<2x64xf32>
    %25 = vector.extract_strided_slice %22 {offsets = [0, 0], sizes = [2, 64], strides = [1, 1]} : vector<2x192xf32> to vector<2x64xf32>
    %26 = vector.extract_strided_slice %22 {offsets = [0, 64], sizes = [2, 64], strides = [1, 1]} : vector<2x192xf32> to vector<2x64xf32>
    %27 = vector.extract_strided_slice %22 {offsets = [0, 128], sizes = [2, 64], strides = [1, 1]} : vector<2x192xf32> to vector<2x64xf32>
    %28 = arith.mulf %26, %10 : vector<2x64xf32>
    %29 = arith.mulf %25, %24 : vector<2x64xf32>
    %30 = arith.addf %28, %29 : vector<2x64xf32>
    %31 = math.tanh %30 : vector<2x64xf32>
    %32 = arith.mulf %27, %31 : vector<2x64xf32>
    %33 = vector.extract_strided_slice %32 {offsets = [0, 0], sizes = [2, 32], strides = [1, 1]} : vector<2x64xf32> to vector<2x32xf32>
    %34 = vector.extract_strided_slice %32 {offsets = [0, 32], sizes = [2, 32], strides = [1, 1]} : vector<2x64xf32> to vector<2x32xf32>
    %35 = arith.truncf %32 : vector<2x64xf32> to vector<2x64xbf16>
    %cst_14 = arith.constant dense<0.000000e+00> : vector<2x256xf32>
    %36 = tpu.matmul %35, %8, %cst_14 {dimension_numbers = #tpu.dot_dimension_numbers<[1], [0], [0], [1], [0, 0, 1, 1], [], []>} : vector<2x64xbf16>, vector<64x256xbf16>, vector<2x256xf32> -> vector<2x256xf32>
    %37 = vector.extract_strided_slice %5 {offsets = [2, 0], sizes = [2, 256], strides = [1, 1]} : vector<16x256xf32> to vector<2x256xf32>
    %38 = vector.extract_strided_slice %7 {offsets = [12, 0], sizes = [2, 256], strides = [1, 1]} : vector<16x256xf32> to vector<2x256xf32>
    %39 = arith.addf %37, %38 : vector<2x256xf32>
    %40 = arith.addf %39, %36 : vector<2x256xf32>
    %41 = vector.extract_strided_slice %40 {offsets = [0, 0], sizes = [2, 192], strides = [1, 1]} : vector<2x256xf32> to vector<2x192xf32>
    %42 = arith.negf %41 : vector<2x192xf32>
    %43 = math.exp %42 : vector<2x192xf32>
    %cst_15 = arith.constant 1.000000e+00 : f32
    %44 = vector.broadcast %cst_15 : f32 to vector<2x192xf32>
    %45 = arith.addf %44, %43 : vector<2x192xf32>
    %46 = arith.divf %44, %45 : vector<2x192xf32>
    %47 = vector.extract_strided_slice %40 {offsets = [0, 192], sizes = [2, 64], strides = [1, 1]} : vector<2x256xf32> to vector<2x64xf32>
    %48 = math.tanh %47 : vector<2x64xf32>
    %49 = vector.extract_strided_slice %46 {offsets = [0, 0], sizes = [2, 64], strides = [1, 1]} : vector<2x192xf32> to vector<2x64xf32>
    %50 = vector.extract_strided_slice %46 {offsets = [0, 64], sizes = [2, 64], strides = [1, 1]} : vector<2x192xf32> to vector<2x64xf32>
    %51 = vector.extract_strided_slice %46 {offsets = [0, 128], sizes = [2, 64], strides = [1, 1]} : vector<2x192xf32> to vector<2x64xf32>
    %52 = arith.mulf %50, %30 : vector<2x64xf32>
    %53 = arith.mulf %49, %48 : vector<2x64xf32>
    %54 = arith.addf %52, %53 : vector<2x64xf32>
    %55 = math.tanh %54 : vector<2x64xf32>
    %56 = arith.mulf %51, %55 : vector<2x64xf32>
    %57 = vector.extract_strided_slice %56 {offsets = [0, 0], sizes = [2, 32], strides = [1, 1]} : vector<2x64xf32> to vector<2x32xf32>
    %58 = vector.extract_strided_slice %56 {offsets = [0, 32], sizes = [2, 32], strides = [1, 1]} : vector<2x64xf32> to vector<2x32xf32>
    %59 = arith.truncf %56 : vector<2x64xf32> to vector<2x64xbf16>
    %cst_16 = arith.constant dense<0.000000e+00> : vector<2x256xf32>
    %60 = tpu.matmul %59, %8, %cst_16 {dimension_numbers = #tpu.dot_dimension_numbers<[1], [0], [0], [1], [0, 0, 1, 1], [], []>} : vector<2x64xbf16>, vector<64x256xbf16>, vector<2x256xf32> -> vector<2x256xf32>
    %61 = vector.extract_strided_slice %5 {offsets = [4, 0], sizes = [2, 256], strides = [1, 1]} : vector<16x256xf32> to vector<2x256xf32>
    %62 = vector.extract_strided_slice %7 {offsets = [10, 0], sizes = [2, 256], strides = [1, 1]} : vector<16x256xf32> to vector<2x256xf32>
    %63 = arith.addf %61, %62 : vector<2x256xf32>
    %64 = arith.addf %63, %60 : vector<2x256xf32>
    %65 = vector.extract_strided_slice %64 {offsets = [0, 0], sizes = [2, 192], strides = [1, 1]} : vector<2x256xf32> to vector<2x192xf32>
    %66 = arith.negf %65 : vector<2x192xf32>
    %67 = math.exp %66 : vector<2x192xf32>
    %cst_17 = arith.constant 1.000000e+00 : f32
    %68 = vector.broadcast %cst_17 : f32 to vector<2x192xf32>
    %69 = arith.addf %68, %67 : vector<2x192xf32>
    %70 = arith.divf %68, %69 : vector<2x192xf32>
    %71 = vector.extract_strided_slice %64 {offsets = [0, 192], sizes = [2, 64], strides = [1, 1]} : vector<2x256xf32> to vector<2x64xf32>
    %72 = math.tanh %71 : vector<2x64xf32>
    %73 = vector.extract_strided_slice %70 {offsets = [0, 0], sizes = [2, 64], strides = [1, 1]} : vector<2x192xf32> to vector<2x64xf32>
    %74 = vector.extract_strided_slice %70 {offsets = [0, 64], sizes = [2, 64], strides = [1, 1]} : vector<2x192xf32> to vector<2x64xf32>
    %75 = vector.extract_strided_slice %70 {offsets = [0, 128], sizes = [2, 64], strides = [1, 1]} : vector<2x192xf32> to vector<2x64xf32>
    %76 = arith.mulf %74, %54 : vector<2x64xf32>
    %77 = arith.mulf %73, %72 : vector<2x64xf32>
    %78 = arith.addf %76, %77 : vector<2x64xf32>
    %79 = math.tanh %78 : vector<2x64xf32>
    %80 = arith.mulf %75, %79 : vector<2x64xf32>
    %81 = vector.extract_strided_slice %80 {offsets = [0, 0], sizes = [2, 32], strides = [1, 1]} : vector<2x64xf32> to vector<2x32xf32>
    %82 = vector.extract_strided_slice %80 {offsets = [0, 32], sizes = [2, 32], strides = [1, 1]} : vector<2x64xf32> to vector<2x32xf32>
    %83 = arith.truncf %80 : vector<2x64xf32> to vector<2x64xbf16>
    %cst_18 = arith.constant dense<0.000000e+00> : vector<2x256xf32>
    %84 = tpu.matmul %83, %8, %cst_18 {dimension_numbers = #tpu.dot_dimension_numbers<[1], [0], [0], [1], [0, 0, 1, 1], [], []>} : vector<2x64xbf16>, vector<64x256xbf16>, vector<2x256xf32> -> vector<2x256xf32>
    %85 = vector.extract_strided_slice %5 {offsets = [6, 0], sizes = [2, 256], strides = [1, 1]} : vector<16x256xf32> to vector<2x256xf32>
    %86 = vector.extract_strided_slice %7 {offsets = [8, 0], sizes = [2, 256], strides = [1, 1]} : vector<16x256xf32> to vector<2x256xf32>
    %87 = arith.addf %85, %86 : vector<2x256xf32>
    %88 = arith.addf %87, %84 : vector<2x256xf32>
    %89 = vector.extract_strided_slice %88 {offsets = [0, 0], sizes = [2, 192], strides = [1, 1]} : vector<2x256xf32> to vector<2x192xf32>
    %90 = arith.negf %89 : vector<2x192xf32>
    %91 = math.exp %90 : vector<2x192xf32>
    %cst_19 = arith.constant 1.000000e+00 : f32
    %92 = vector.broadcast %cst_19 : f32 to vector<2x192xf32>
    %93 = arith.addf %92, %91 : vector<2x192xf32>
    %94 = arith.divf %92, %93 : vector<2x192xf32>
    %95 = vector.extract_strided_slice %88 {offsets = [0, 192], sizes = [2, 64], strides = [1, 1]} : vector<2x256xf32> to vector<2x64xf32>
    %96 = math.tanh %95 : vector<2x64xf32>
    %97 = vector.extract_strided_slice %94 {offsets = [0, 0], sizes = [2, 64], strides = [1, 1]} : vector<2x192xf32> to vector<2x64xf32>
    %98 = vector.extract_strided_slice %94 {offsets = [0, 64], sizes = [2, 64], strides = [1, 1]} : vector<2x192xf32> to vector<2x64xf32>
    %99 = vector.extract_strided_slice %94 {offsets = [0, 128], sizes = [2, 64], strides = [1, 1]} : vector<2x192xf32> to vector<2x64xf32>
    %100 = arith.mulf %98, %78 : vector<2x64xf32>
    %101 = arith.mulf %97, %96 : vector<2x64xf32>
    %102 = arith.addf %100, %101 : vector<2x64xf32>
    %103 = math.tanh %102 : vector<2x64xf32>
    %104 = arith.mulf %99, %103 : vector<2x64xf32>
    %105 = vector.extract_strided_slice %104 {offsets = [0, 0], sizes = [2, 32], strides = [1, 1]} : vector<2x64xf32> to vector<2x32xf32>
    %106 = vector.extract_strided_slice %104 {offsets = [0, 32], sizes = [2, 32], strides = [1, 1]} : vector<2x64xf32> to vector<2x32xf32>
    %107 = arith.truncf %104 : vector<2x64xf32> to vector<2x64xbf16>
    %cst_20 = arith.constant dense<0.000000e+00> : vector<2x256xf32>
    %108 = tpu.matmul %107, %8, %cst_20 {dimension_numbers = #tpu.dot_dimension_numbers<[1], [0], [0], [1], [0, 0, 1, 1], [], []>} : vector<2x64xbf16>, vector<64x256xbf16>, vector<2x256xf32> -> vector<2x256xf32>
    %109 = vector.extract_strided_slice %5 {offsets = [8, 0], sizes = [2, 256], strides = [1, 1]} : vector<16x256xf32> to vector<2x256xf32>
    %110 = vector.extract_strided_slice %7 {offsets = [6, 0], sizes = [2, 256], strides = [1, 1]} : vector<16x256xf32> to vector<2x256xf32>
    %111 = arith.addf %109, %110 : vector<2x256xf32>
    %112 = arith.addf %111, %108 : vector<2x256xf32>
    %113 = vector.extract_strided_slice %112 {offsets = [0, 0], sizes = [2, 192], strides = [1, 1]} : vector<2x256xf32> to vector<2x192xf32>
    %114 = arith.negf %113 : vector<2x192xf32>
    %115 = math.exp %114 : vector<2x192xf32>
    %cst_21 = arith.constant 1.000000e+00 : f32
    %116 = vector.broadcast %cst_21 : f32 to vector<2x192xf32>
    %117 = arith.addf %116, %115 : vector<2x192xf32>
    %118 = arith.divf %116, %117 : vector<2x192xf32>
    %119 = vector.extract_strided_slice %112 {offsets = [0, 192], sizes = [2, 64], strides = [1, 1]} : vector<2x256xf32> to vector<2x64xf32>
    %120 = math.tanh %119 : vector<2x64xf32>
    %121 = vector.extract_strided_slice %118 {offsets = [0, 0], sizes = [2, 64], strides = [1, 1]} : vector<2x192xf32> to vector<2x64xf32>
    %122 = vector.extract_strided_slice %118 {offsets = [0, 64], sizes = [2, 64], strides = [1, 1]} : vector<2x192xf32> to vector<2x64xf32>
    %123 = vector.extract_strided_slice %118 {offsets = [0, 128], sizes = [2, 64], strides = [1, 1]} : vector<2x192xf32> to vector<2x64xf32>
    %124 = arith.mulf %122, %102 : vector<2x64xf32>
    %125 = arith.mulf %121, %120 : vector<2x64xf32>
    %126 = arith.addf %124, %125 : vector<2x64xf32>
    %127 = math.tanh %126 : vector<2x64xf32>
    %128 = arith.mulf %123, %127 : vector<2x64xf32>
    %129 = vector.extract_strided_slice %128 {offsets = [0, 0], sizes = [2, 32], strides = [1, 1]} : vector<2x64xf32> to vector<2x32xf32>
    %130 = vector.extract_strided_slice %128 {offsets = [0, 32], sizes = [2, 32], strides = [1, 1]} : vector<2x64xf32> to vector<2x32xf32>
    %131 = arith.truncf %128 : vector<2x64xf32> to vector<2x64xbf16>
    %cst_22 = arith.constant dense<0.000000e+00> : vector<2x256xf32>
    %132 = tpu.matmul %131, %8, %cst_22 {dimension_numbers = #tpu.dot_dimension_numbers<[1], [0], [0], [1], [0, 0, 1, 1], [], []>} : vector<2x64xbf16>, vector<64x256xbf16>, vector<2x256xf32> -> vector<2x256xf32>
    %133 = vector.extract_strided_slice %5 {offsets = [10, 0], sizes = [2, 256], strides = [1, 1]} : vector<16x256xf32> to vector<2x256xf32>
    %134 = vector.extract_strided_slice %7 {offsets = [4, 0], sizes = [2, 256], strides = [1, 1]} : vector<16x256xf32> to vector<2x256xf32>
    %135 = arith.addf %133, %134 : vector<2x256xf32>
    %136 = arith.addf %135, %132 : vector<2x256xf32>
    %137 = vector.extract_strided_slice %136 {offsets = [0, 0], sizes = [2, 192], strides = [1, 1]} : vector<2x256xf32> to vector<2x192xf32>
    %138 = arith.negf %137 : vector<2x192xf32>
    %139 = math.exp %138 : vector<2x192xf32>
    %cst_23 = arith.constant 1.000000e+00 : f32
    %140 = vector.broadcast %cst_23 : f32 to vector<2x192xf32>
    %141 = arith.addf %140, %139 : vector<2x192xf32>
    %142 = arith.divf %140, %141 : vector<2x192xf32>
    %143 = vector.extract_strided_slice %136 {offsets = [0, 192], sizes = [2, 64], strides = [1, 1]} : vector<2x256xf32> to vector<2x64xf32>
    %144 = math.tanh %143 : vector<2x64xf32>
    %145 = vector.extract_strided_slice %142 {offsets = [0, 0], sizes = [2, 64], strides = [1, 1]} : vector<2x192xf32> to vector<2x64xf32>
    %146 = vector.extract_strided_slice %142 {offsets = [0, 64], sizes = [2, 64], strides = [1, 1]} : vector<2x192xf32> to vector<2x64xf32>
    %147 = vector.extract_strided_slice %142 {offsets = [0, 128], sizes = [2, 64], strides = [1, 1]} : vector<2x192xf32> to vector<2x64xf32>
    %148 = arith.mulf %146, %126 : vector<2x64xf32>
    %149 = arith.mulf %145, %144 : vector<2x64xf32>
    %150 = arith.addf %148, %149 : vector<2x64xf32>
    %151 = math.tanh %150 : vector<2x64xf32>
    %152 = arith.mulf %147, %151 : vector<2x64xf32>
    %153 = vector.extract_strided_slice %152 {offsets = [0, 0], sizes = [2, 32], strides = [1, 1]} : vector<2x64xf32> to vector<2x32xf32>
    %154 = vector.extract_strided_slice %152 {offsets = [0, 32], sizes = [2, 32], strides = [1, 1]} : vector<2x64xf32> to vector<2x32xf32>
    %155 = arith.truncf %152 : vector<2x64xf32> to vector<2x64xbf16>
    %cst_24 = arith.constant dense<0.000000e+00> : vector<2x256xf32>
    %156 = tpu.matmul %155, %8, %cst_24 {dimension_numbers = #tpu.dot_dimension_numbers<[1], [0], [0], [1], [0, 0, 1, 1], [], []>} : vector<2x64xbf16>, vector<64x256xbf16>, vector<2x256xf32> -> vector<2x256xf32>
    %157 = vector.extract_strided_slice %5 {offsets = [12, 0], sizes = [2, 256], strides = [1, 1]} : vector<16x256xf32> to vector<2x256xf32>
    %158 = vector.extract_strided_slice %7 {offsets = [2, 0], sizes = [2, 256], strides = [1, 1]} : vector<16x256xf32> to vector<2x256xf32>
    %159 = arith.addf %157, %158 : vector<2x256xf32>
    %160 = arith.addf %159, %156 : vector<2x256xf32>
    %161 = vector.extract_strided_slice %160 {offsets = [0, 0], sizes = [2, 192], strides = [1, 1]} : vector<2x256xf32> to vector<2x192xf32>
    %162 = arith.negf %161 : vector<2x192xf32>
    %163 = math.exp %162 : vector<2x192xf32>
    %cst_25 = arith.constant 1.000000e+00 : f32
    %164 = vector.broadcast %cst_25 : f32 to vector<2x192xf32>
    %165 = arith.addf %164, %163 : vector<2x192xf32>
    %166 = arith.divf %164, %165 : vector<2x192xf32>
    %167 = vector.extract_strided_slice %160 {offsets = [0, 192], sizes = [2, 64], strides = [1, 1]} : vector<2x256xf32> to vector<2x64xf32>
    %168 = math.tanh %167 : vector<2x64xf32>
    %169 = vector.extract_strided_slice %166 {offsets = [0, 0], sizes = [2, 64], strides = [1, 1]} : vector<2x192xf32> to vector<2x64xf32>
    %170 = vector.extract_strided_slice %166 {offsets = [0, 64], sizes = [2, 64], strides = [1, 1]} : vector<2x192xf32> to vector<2x64xf32>
    %171 = vector.extract_strided_slice %166 {offsets = [0, 128], sizes = [2, 64], strides = [1, 1]} : vector<2x192xf32> to vector<2x64xf32>
    %172 = arith.mulf %170, %150 : vector<2x64xf32>
    %173 = arith.mulf %169, %168 : vector<2x64xf32>
    %174 = arith.addf %172, %173 : vector<2x64xf32>
    %175 = math.tanh %174 : vector<2x64xf32>
    %176 = arith.mulf %171, %175 : vector<2x64xf32>
    %177 = vector.extract_strided_slice %176 {offsets = [0, 0], sizes = [2, 32], strides = [1, 1]} : vector<2x64xf32> to vector<2x32xf32>
    %178 = vector.extract_strided_slice %176 {offsets = [0, 32], sizes = [2, 32], strides = [1, 1]} : vector<2x64xf32> to vector<2x32xf32>
    %179 = arith.truncf %176 : vector<2x64xf32> to vector<2x64xbf16>
    %cst_26 = arith.constant dense<0.000000e+00> : vector<2x256xf32>
    %180 = tpu.matmul %179, %8, %cst_26 {dimension_numbers = #tpu.dot_dimension_numbers<[1], [0], [0], [1], [0, 0, 1, 1], [], []>} : vector<2x64xbf16>, vector<64x256xbf16>, vector<2x256xf32> -> vector<2x256xf32>
    %181 = vector.extract_strided_slice %5 {offsets = [14, 0], sizes = [2, 256], strides = [1, 1]} : vector<16x256xf32> to vector<2x256xf32>
    %182 = vector.extract_strided_slice %7 {offsets = [0, 0], sizes = [2, 256], strides = [1, 1]} : vector<16x256xf32> to vector<2x256xf32>
    %183 = arith.addf %181, %182 : vector<2x256xf32>
    %184 = arith.addf %183, %180 : vector<2x256xf32>
    %185 = vector.extract_strided_slice %184 {offsets = [0, 0], sizes = [2, 192], strides = [1, 1]} : vector<2x256xf32> to vector<2x192xf32>
    %186 = arith.negf %185 : vector<2x192xf32>
    %187 = math.exp %186 : vector<2x192xf32>
    %cst_27 = arith.constant 1.000000e+00 : f32
    %188 = vector.broadcast %cst_27 : f32 to vector<2x192xf32>
    %189 = arith.addf %188, %187 : vector<2x192xf32>
    %190 = arith.divf %188, %189 : vector<2x192xf32>
    %191 = vector.extract_strided_slice %184 {offsets = [0, 192], sizes = [2, 64], strides = [1, 1]} : vector<2x256xf32> to vector<2x64xf32>
    %192 = math.tanh %191 : vector<2x64xf32>
    %193 = vector.extract_strided_slice %190 {offsets = [0, 0], sizes = [2, 64], strides = [1, 1]} : vector<2x192xf32> to vector<2x64xf32>
    %194 = vector.extract_strided_slice %190 {offsets = [0, 64], sizes = [2, 64], strides = [1, 1]} : vector<2x192xf32> to vector<2x64xf32>
    %195 = vector.extract_strided_slice %190 {offsets = [0, 128], sizes = [2, 64], strides = [1, 1]} : vector<2x192xf32> to vector<2x64xf32>
    %196 = arith.mulf %194, %174 : vector<2x64xf32>
    %197 = arith.mulf %193, %192 : vector<2x64xf32>
    %198 = arith.addf %196, %197 : vector<2x64xf32>
    %199 = math.tanh %198 : vector<2x64xf32>
    %200 = arith.mulf %195, %199 : vector<2x64xf32>
    %201 = vector.extract_strided_slice %200 {offsets = [0, 0], sizes = [2, 32], strides = [1, 1]} : vector<2x64xf32> to vector<2x32xf32>
    %202 = vector.extract_strided_slice %200 {offsets = [0, 32], sizes = [2, 32], strides = [1, 1]} : vector<2x64xf32> to vector<2x32xf32>
    %203 = tpu.concatenate %33, %202 in 1 : vector<2x32xf32>, vector<2x32xf32> -> vector<2x64xf32>
    %204 = tpu.concatenate %57, %178 in 1 : vector<2x32xf32>, vector<2x32xf32> -> vector<2x64xf32>
    %205 = tpu.concatenate %81, %154 in 1 : vector<2x32xf32>, vector<2x32xf32> -> vector<2x64xf32>
    %206 = tpu.concatenate %105, %130 in 1 : vector<2x32xf32>, vector<2x32xf32> -> vector<2x64xf32>
    %207 = tpu.concatenate %129, %106 in 1 : vector<2x32xf32>, vector<2x32xf32> -> vector<2x64xf32>
    %208 = tpu.concatenate %153, %82 in 1 : vector<2x32xf32>, vector<2x32xf32> -> vector<2x64xf32>
    %209 = tpu.concatenate %177, %58 in 1 : vector<2x32xf32>, vector<2x32xf32> -> vector<2x64xf32>
    %210 = tpu.concatenate %201, %34 in 1 : vector<2x32xf32>, vector<2x32xf32> -> vector<2x64xf32>
    %211 = tpu.concatenate %203, %204, %205, %206, %207, %208, %209, %210 in 0 : vector<2x64xf32>, vector<2x64xf32>, vector<2x64xf32>, vector<2x64xf32>, vector<2x64xf32>, vector<2x64xf32>, vector<2x64xf32>, vector<2x64xf32> -> vector<16x64xf32>
    %212 = arith.truncf %211 : vector<16x64xf32> to vector<16x64xbf16>
    %c0_28 = arith.constant 0 : index
    %c0_29 = arith.constant 0 : index
    %213 = vector.load %arg5[%c0_28, %c0_29] : memref<64x256xbf16, #tpu.memory_space<vmem>>, vector<64x256xbf16>
    %cst_30 = arith.constant dense<0.000000e+00> : vector<16x256xf32>
    %214 = tpu.matmul %212, %213, %cst_30 {dimension_numbers = #tpu.dot_dimension_numbers<[1], [0], [0], [1], [0, 0, 1, 1], [], []>} : vector<16x64xbf16>, vector<64x256xbf16>, vector<16x256xf32> -> vector<16x256xf32>
    %c0_31 = arith.constant 0 : index
    %c0_32 = arith.constant 0 : index
    %215 = vector.load %arg8[%c0_31, %c0_32] : memref<1x256xf32, #tpu.memory_space<vmem>>, vector<1x256xf32>
    %216 = vector.broadcast %215 : vector<1x256xf32> to vector<16x256xf32>
    %217 = arith.addf %214, %216 : vector<16x256xf32>
    %c0_33 = arith.constant 0 : index
    %c0_34 = arith.constant 0 : index
    %218 = vector.load %arg6[%c0_33, %c0_34] : memref<64x256xbf16, #tpu.memory_space<vmem>>, vector<64x256xbf16>
    %cst_35 = arith.constant dense<0.000000e+00> : vector<16x256xf32>
    %219 = tpu.matmul %212, %218, %cst_35 {dimension_numbers = #tpu.dot_dimension_numbers<[1], [0], [0], [1], [0, 0, 1, 1], [], []>} : vector<16x64xbf16>, vector<64x256xbf16>, vector<16x256xf32> -> vector<16x256xf32>
    %c0_36 = arith.constant 0 : index
    %c0_37 = arith.constant 0 : index
    %220 = vector.load %arg7[%c0_36, %c0_37] : memref<64x256xbf16, #tpu.memory_space<vmem>>, vector<64x256xbf16>
    %cst_38 = arith.constant 0.000000e+00 : f32
    %221 = vector.broadcast %cst_38 : f32 to vector<2x64xf32>
    %cst_39 = arith.constant 0.000000e+00 : f32
    %222 = vector.broadcast %cst_39 : f32 to vector<2x64xf32>
    %223 = arith.truncf %221 : vector<2x64xf32> to vector<2x64xbf16>
    %cst_40 = arith.constant dense<0.000000e+00> : vector<2x256xf32>
    %224 = tpu.matmul %223, %220, %cst_40 {dimension_numbers = #tpu.dot_dimension_numbers<[1], [0], [0], [1], [0, 0, 1, 1], [], []>} : vector<2x64xbf16>, vector<64x256xbf16>, vector<2x256xf32> -> vector<2x256xf32>
    %225 = vector.extract_strided_slice %217 {offsets = [0, 0], sizes = [2, 256], strides = [1, 1]} : vector<16x256xf32> to vector<2x256xf32>
    %226 = vector.extract_strided_slice %219 {offsets = [14, 0], sizes = [2, 256], strides = [1, 1]} : vector<16x256xf32> to vector<2x256xf32>
    %227 = arith.addf %225, %226 : vector<2x256xf32>
    %228 = arith.addf %227, %224 : vector<2x256xf32>
    %229 = vector.extract_strided_slice %228 {offsets = [0, 0], sizes = [2, 192], strides = [1, 1]} : vector<2x256xf32> to vector<2x192xf32>
    %230 = arith.negf %229 : vector<2x192xf32>
    %231 = math.exp %230 : vector<2x192xf32>
    %cst_41 = arith.constant 1.000000e+00 : f32
    %232 = vector.broadcast %cst_41 : f32 to vector<2x192xf32>
    %233 = arith.addf %232, %231 : vector<2x192xf32>
    %234 = arith.divf %232, %233 : vector<2x192xf32>
    %235 = vector.extract_strided_slice %228 {offsets = [0, 192], sizes = [2, 64], strides = [1, 1]} : vector<2x256xf32> to vector<2x64xf32>
    %236 = math.tanh %235 : vector<2x64xf32>
    %237 = vector.extract_strided_slice %234 {offsets = [0, 0], sizes = [2, 64], strides = [1, 1]} : vector<2x192xf32> to vector<2x64xf32>
    %238 = vector.extract_strided_slice %234 {offsets = [0, 64], sizes = [2, 64], strides = [1, 1]} : vector<2x192xf32> to vector<2x64xf32>
    %239 = vector.extract_strided_slice %234 {offsets = [0, 128], sizes = [2, 64], strides = [1, 1]} : vector<2x192xf32> to vector<2x64xf32>
    %240 = arith.mulf %238, %222 : vector<2x64xf32>
    %241 = arith.mulf %237, %236 : vector<2x64xf32>
    %242 = arith.addf %240, %241 : vector<2x64xf32>
    %243 = math.tanh %242 : vector<2x64xf32>
    %244 = arith.mulf %239, %243 : vector<2x64xf32>
    %245 = vector.extract_strided_slice %244 {offsets = [0, 32], sizes = [2, 32], strides = [1, 1]} : vector<2x64xf32> to vector<2x32xf32>
    %246 = arith.truncf %244 : vector<2x64xf32> to vector<2x64xbf16>
    %cst_42 = arith.constant dense<0.000000e+00> : vector<2x256xf32>
    %247 = tpu.matmul %246, %220, %cst_42 {dimension_numbers = #tpu.dot_dimension_numbers<[1], [0], [0], [1], [0, 0, 1, 1], [], []>} : vector<2x64xbf16>, vector<64x256xbf16>, vector<2x256xf32> -> vector<2x256xf32>
    %248 = vector.extract_strided_slice %217 {offsets = [2, 0], sizes = [2, 256], strides = [1, 1]} : vector<16x256xf32> to vector<2x256xf32>
    %249 = vector.extract_strided_slice %219 {offsets = [12, 0], sizes = [2, 256], strides = [1, 1]} : vector<16x256xf32> to vector<2x256xf32>
    %250 = arith.addf %248, %249 : vector<2x256xf32>
    %251 = arith.addf %250, %247 : vector<2x256xf32>
    %252 = vector.extract_strided_slice %251 {offsets = [0, 0], sizes = [2, 192], strides = [1, 1]} : vector<2x256xf32> to vector<2x192xf32>
    %253 = arith.negf %252 : vector<2x192xf32>
    %254 = math.exp %253 : vector<2x192xf32>
    %cst_43 = arith.constant 1.000000e+00 : f32
    %255 = vector.broadcast %cst_43 : f32 to vector<2x192xf32>
    %256 = arith.addf %255, %254 : vector<2x192xf32>
    %257 = arith.divf %255, %256 : vector<2x192xf32>
    %258 = vector.extract_strided_slice %251 {offsets = [0, 192], sizes = [2, 64], strides = [1, 1]} : vector<2x256xf32> to vector<2x64xf32>
    %259 = math.tanh %258 : vector<2x64xf32>
    %260 = vector.extract_strided_slice %257 {offsets = [0, 0], sizes = [2, 64], strides = [1, 1]} : vector<2x192xf32> to vector<2x64xf32>
    %261 = vector.extract_strided_slice %257 {offsets = [0, 64], sizes = [2, 64], strides = [1, 1]} : vector<2x192xf32> to vector<2x64xf32>
    %262 = vector.extract_strided_slice %257 {offsets = [0, 128], sizes = [2, 64], strides = [1, 1]} : vector<2x192xf32> to vector<2x64xf32>
    %263 = arith.mulf %261, %242 : vector<2x64xf32>
    %264 = arith.mulf %260, %259 : vector<2x64xf32>
    %265 = arith.addf %263, %264 : vector<2x64xf32>
    %266 = math.tanh %265 : vector<2x64xf32>
    %267 = arith.mulf %262, %266 : vector<2x64xf32>
    %268 = arith.truncf %267 : vector<2x64xf32> to vector<2x64xbf16>
    %cst_44 = arith.constant dense<0.000000e+00> : vector<2x256xf32>
    %269 = tpu.matmul %268, %220, %cst_44 {dimension_numbers = #tpu.dot_dimension_numbers<[1], [0], [0], [1], [0, 0, 1, 1], [], []>} : vector<2x64xbf16>, vector<64x256xbf16>, vector<2x256xf32> -> vector<2x256xf32>
    %270 = vector.extract_strided_slice %217 {offsets = [4, 0], sizes = [2, 256], strides = [1, 1]} : vector<16x256xf32> to vector<2x256xf32>
    %271 = vector.extract_strided_slice %219 {offsets = [10, 0], sizes = [2, 256], strides = [1, 1]} : vector<16x256xf32> to vector<2x256xf32>
    %272 = arith.addf %270, %271 : vector<2x256xf32>
    %273 = arith.addf %272, %269 : vector<2x256xf32>
    %274 = vector.extract_strided_slice %273 {offsets = [0, 0], sizes = [2, 192], strides = [1, 1]} : vector<2x256xf32> to vector<2x192xf32>
    %275 = arith.negf %274 : vector<2x192xf32>
    %276 = math.exp %275 : vector<2x192xf32>
    %cst_45 = arith.constant 1.000000e+00 : f32
    %277 = vector.broadcast %cst_45 : f32 to vector<2x192xf32>
    %278 = arith.addf %277, %276 : vector<2x192xf32>
    %279 = arith.divf %277, %278 : vector<2x192xf32>
    %280 = vector.extract_strided_slice %273 {offsets = [0, 192], sizes = [2, 64], strides = [1, 1]} : vector<2x256xf32> to vector<2x64xf32>
    %281 = math.tanh %280 : vector<2x64xf32>
    %282 = vector.extract_strided_slice %279 {offsets = [0, 0], sizes = [2, 64], strides = [1, 1]} : vector<2x192xf32> to vector<2x64xf32>
    %283 = vector.extract_strided_slice %279 {offsets = [0, 64], sizes = [2, 64], strides = [1, 1]} : vector<2x192xf32> to vector<2x64xf32>
    %284 = vector.extract_strided_slice %279 {offsets = [0, 128], sizes = [2, 64], strides = [1, 1]} : vector<2x192xf32> to vector<2x64xf32>
    %285 = arith.mulf %283, %265 : vector<2x64xf32>
    %286 = arith.mulf %282, %281 : vector<2x64xf32>
    %287 = arith.addf %285, %286 : vector<2x64xf32>
    %288 = math.tanh %287 : vector<2x64xf32>
    %289 = arith.mulf %284, %288 : vector<2x64xf32>
    %290 = arith.truncf %289 : vector<2x64xf32> to vector<2x64xbf16>
    %cst_46 = arith.constant dense<0.000000e+00> : vector<2x256xf32>
    %291 = tpu.matmul %290, %220, %cst_46 {dimension_numbers = #tpu.dot_dimension_numbers<[1], [0], [0], [1], [0, 0, 1, 1], [], []>} : vector<2x64xbf16>, vector<64x256xbf16>, vector<2x256xf32> -> vector<2x256xf32>
    %292 = vector.extract_strided_slice %217 {offsets = [6, 0], sizes = [2, 256], strides = [1, 1]} : vector<16x256xf32> to vector<2x256xf32>
    %293 = vector.extract_strided_slice %219 {offsets = [8, 0], sizes = [2, 256], strides = [1, 1]} : vector<16x256xf32> to vector<2x256xf32>
    %294 = arith.addf %292, %293 : vector<2x256xf32>
    %295 = arith.addf %294, %291 : vector<2x256xf32>
    %296 = vector.extract_strided_slice %295 {offsets = [0, 0], sizes = [2, 192], strides = [1, 1]} : vector<2x256xf32> to vector<2x192xf32>
    %297 = arith.negf %296 : vector<2x192xf32>
    %298 = math.exp %297 : vector<2x192xf32>
    %cst_47 = arith.constant 1.000000e+00 : f32
    %299 = vector.broadcast %cst_47 : f32 to vector<2x192xf32>
    %300 = arith.addf %299, %298 : vector<2x192xf32>
    %301 = arith.divf %299, %300 : vector<2x192xf32>
    %302 = vector.extract_strided_slice %295 {offsets = [0, 192], sizes = [2, 64], strides = [1, 1]} : vector<2x256xf32> to vector<2x64xf32>
    %303 = math.tanh %302 : vector<2x64xf32>
    %304 = vector.extract_strided_slice %301 {offsets = [0, 0], sizes = [2, 64], strides = [1, 1]} : vector<2x192xf32> to vector<2x64xf32>
    %305 = vector.extract_strided_slice %301 {offsets = [0, 64], sizes = [2, 64], strides = [1, 1]} : vector<2x192xf32> to vector<2x64xf32>
    %306 = vector.extract_strided_slice %301 {offsets = [0, 128], sizes = [2, 64], strides = [1, 1]} : vector<2x192xf32> to vector<2x64xf32>
    %307 = arith.mulf %305, %287 : vector<2x64xf32>
    %308 = arith.mulf %304, %303 : vector<2x64xf32>
    %309 = arith.addf %307, %308 : vector<2x64xf32>
    %310 = math.tanh %309 : vector<2x64xf32>
    %311 = arith.mulf %306, %310 : vector<2x64xf32>
    %312 = arith.truncf %311 : vector<2x64xf32> to vector<2x64xbf16>
    %cst_48 = arith.constant dense<0.000000e+00> : vector<2x256xf32>
    %313 = tpu.matmul %312, %220, %cst_48 {dimension_numbers = #tpu.dot_dimension_numbers<[1], [0], [0], [1], [0, 0, 1, 1], [], []>} : vector<2x64xbf16>, vector<64x256xbf16>, vector<2x256xf32> -> vector<2x256xf32>
    %314 = vector.extract_strided_slice %217 {offsets = [8, 0], sizes = [2, 256], strides = [1, 1]} : vector<16x256xf32> to vector<2x256xf32>
    %315 = vector.extract_strided_slice %219 {offsets = [6, 0], sizes = [2, 256], strides = [1, 1]} : vector<16x256xf32> to vector<2x256xf32>
    %316 = arith.addf %314, %315 : vector<2x256xf32>
    %317 = arith.addf %316, %313 : vector<2x256xf32>
    %318 = vector.extract_strided_slice %317 {offsets = [0, 0], sizes = [2, 192], strides = [1, 1]} : vector<2x256xf32> to vector<2x192xf32>
    %319 = arith.negf %318 : vector<2x192xf32>
    %320 = math.exp %319 : vector<2x192xf32>
    %cst_49 = arith.constant 1.000000e+00 : f32
    %321 = vector.broadcast %cst_49 : f32 to vector<2x192xf32>
    %322 = arith.addf %321, %320 : vector<2x192xf32>
    %323 = arith.divf %321, %322 : vector<2x192xf32>
    %324 = vector.extract_strided_slice %317 {offsets = [0, 192], sizes = [2, 64], strides = [1, 1]} : vector<2x256xf32> to vector<2x64xf32>
    %325 = math.tanh %324 : vector<2x64xf32>
    %326 = vector.extract_strided_slice %323 {offsets = [0, 0], sizes = [2, 64], strides = [1, 1]} : vector<2x192xf32> to vector<2x64xf32>
    %327 = vector.extract_strided_slice %323 {offsets = [0, 64], sizes = [2, 64], strides = [1, 1]} : vector<2x192xf32> to vector<2x64xf32>
    %328 = vector.extract_strided_slice %323 {offsets = [0, 128], sizes = [2, 64], strides = [1, 1]} : vector<2x192xf32> to vector<2x64xf32>
    %329 = arith.mulf %327, %309 : vector<2x64xf32>
    %330 = arith.mulf %326, %325 : vector<2x64xf32>
    %331 = arith.addf %329, %330 : vector<2x64xf32>
    %332 = math.tanh %331 : vector<2x64xf32>
    %333 = arith.mulf %328, %332 : vector<2x64xf32>
    %334 = arith.truncf %333 : vector<2x64xf32> to vector<2x64xbf16>
    %cst_50 = arith.constant dense<0.000000e+00> : vector<2x256xf32>
    %335 = tpu.matmul %334, %220, %cst_50 {dimension_numbers = #tpu.dot_dimension_numbers<[1], [0], [0], [1], [0, 0, 1, 1], [], []>} : vector<2x64xbf16>, vector<64x256xbf16>, vector<2x256xf32> -> vector<2x256xf32>
    %336 = vector.extract_strided_slice %217 {offsets = [10, 0], sizes = [2, 256], strides = [1, 1]} : vector<16x256xf32> to vector<2x256xf32>
    %337 = vector.extract_strided_slice %219 {offsets = [4, 0], sizes = [2, 256], strides = [1, 1]} : vector<16x256xf32> to vector<2x256xf32>
    %338 = arith.addf %336, %337 : vector<2x256xf32>
    %339 = arith.addf %338, %335 : vector<2x256xf32>
    %340 = vector.extract_strided_slice %339 {offsets = [0, 0], sizes = [2, 192], strides = [1, 1]} : vector<2x256xf32> to vector<2x192xf32>
    %341 = arith.negf %340 : vector<2x192xf32>
    %342 = math.exp %341 : vector<2x192xf32>
    %cst_51 = arith.constant 1.000000e+00 : f32
    %343 = vector.broadcast %cst_51 : f32 to vector<2x192xf32>
    %344 = arith.addf %343, %342 : vector<2x192xf32>
    %345 = arith.divf %343, %344 : vector<2x192xf32>
    %346 = vector.extract_strided_slice %339 {offsets = [0, 192], sizes = [2, 64], strides = [1, 1]} : vector<2x256xf32> to vector<2x64xf32>
    %347 = math.tanh %346 : vector<2x64xf32>
    %348 = vector.extract_strided_slice %345 {offsets = [0, 0], sizes = [2, 64], strides = [1, 1]} : vector<2x192xf32> to vector<2x64xf32>
    %349 = vector.extract_strided_slice %345 {offsets = [0, 64], sizes = [2, 64], strides = [1, 1]} : vector<2x192xf32> to vector<2x64xf32>
    %350 = vector.extract_strided_slice %345 {offsets = [0, 128], sizes = [2, 64], strides = [1, 1]} : vector<2x192xf32> to vector<2x64xf32>
    %351 = arith.mulf %349, %331 : vector<2x64xf32>
    %352 = arith.mulf %348, %347 : vector<2x64xf32>
    %353 = arith.addf %351, %352 : vector<2x64xf32>
    %354 = math.tanh %353 : vector<2x64xf32>
    %355 = arith.mulf %350, %354 : vector<2x64xf32>
    %356 = arith.truncf %355 : vector<2x64xf32> to vector<2x64xbf16>
    %cst_52 = arith.constant dense<0.000000e+00> : vector<2x256xf32>
    %357 = tpu.matmul %356, %220, %cst_52 {dimension_numbers = #tpu.dot_dimension_numbers<[1], [0], [0], [1], [0, 0, 1, 1], [], []>} : vector<2x64xbf16>, vector<64x256xbf16>, vector<2x256xf32> -> vector<2x256xf32>
    %358 = vector.extract_strided_slice %217 {offsets = [12, 0], sizes = [2, 256], strides = [1, 1]} : vector<16x256xf32> to vector<2x256xf32>
    %359 = vector.extract_strided_slice %219 {offsets = [2, 0], sizes = [2, 256], strides = [1, 1]} : vector<16x256xf32> to vector<2x256xf32>
    %360 = arith.addf %358, %359 : vector<2x256xf32>
    %361 = arith.addf %360, %357 : vector<2x256xf32>
    %362 = vector.extract_strided_slice %361 {offsets = [0, 0], sizes = [2, 192], strides = [1, 1]} : vector<2x256xf32> to vector<2x192xf32>
    %363 = arith.negf %362 : vector<2x192xf32>
    %364 = math.exp %363 : vector<2x192xf32>
    %cst_53 = arith.constant 1.000000e+00 : f32
    %365 = vector.broadcast %cst_53 : f32 to vector<2x192xf32>
    %366 = arith.addf %365, %364 : vector<2x192xf32>
    %367 = arith.divf %365, %366 : vector<2x192xf32>
    %368 = vector.extract_strided_slice %361 {offsets = [0, 192], sizes = [2, 64], strides = [1, 1]} : vector<2x256xf32> to vector<2x64xf32>
    %369 = math.tanh %368 : vector<2x64xf32>
    %370 = vector.extract_strided_slice %367 {offsets = [0, 0], sizes = [2, 64], strides = [1, 1]} : vector<2x192xf32> to vector<2x64xf32>
    %371 = vector.extract_strided_slice %367 {offsets = [0, 64], sizes = [2, 64], strides = [1, 1]} : vector<2x192xf32> to vector<2x64xf32>
    %372 = vector.extract_strided_slice %367 {offsets = [0, 128], sizes = [2, 64], strides = [1, 1]} : vector<2x192xf32> to vector<2x64xf32>
    %373 = arith.mulf %371, %353 : vector<2x64xf32>
    %374 = arith.mulf %370, %369 : vector<2x64xf32>
    %375 = arith.addf %373, %374 : vector<2x64xf32>
    %376 = math.tanh %375 : vector<2x64xf32>
    %377 = arith.mulf %372, %376 : vector<2x64xf32>
    %378 = arith.truncf %377 : vector<2x64xf32> to vector<2x64xbf16>
    %cst_54 = arith.constant dense<0.000000e+00> : vector<2x256xf32>
    %379 = tpu.matmul %378, %220, %cst_54 {dimension_numbers = #tpu.dot_dimension_numbers<[1], [0], [0], [1], [0, 0, 1, 1], [], []>} : vector<2x64xbf16>, vector<64x256xbf16>, vector<2x256xf32> -> vector<2x256xf32>
    %380 = vector.extract_strided_slice %217 {offsets = [14, 0], sizes = [2, 256], strides = [1, 1]} : vector<16x256xf32> to vector<2x256xf32>
    %381 = vector.extract_strided_slice %219 {offsets = [0, 0], sizes = [2, 256], strides = [1, 1]} : vector<16x256xf32> to vector<2x256xf32>
    %382 = arith.addf %380, %381 : vector<2x256xf32>
    %383 = arith.addf %382, %379 : vector<2x256xf32>
    %384 = vector.extract_strided_slice %383 {offsets = [0, 0], sizes = [2, 192], strides = [1, 1]} : vector<2x256xf32> to vector<2x192xf32>
    %385 = arith.negf %384 : vector<2x192xf32>
    %386 = math.exp %385 : vector<2x192xf32>
    %cst_55 = arith.constant 1.000000e+00 : f32
    %387 = vector.broadcast %cst_55 : f32 to vector<2x192xf32>
    %388 = arith.addf %387, %386 : vector<2x192xf32>
    %389 = arith.divf %387, %388 : vector<2x192xf32>
    %390 = vector.extract_strided_slice %383 {offsets = [0, 192], sizes = [2, 64], strides = [1, 1]} : vector<2x256xf32> to vector<2x64xf32>
    %391 = math.tanh %390 : vector<2x64xf32>
    %392 = vector.extract_strided_slice %389 {offsets = [0, 0], sizes = [2, 64], strides = [1, 1]} : vector<2x192xf32> to vector<2x64xf32>
    %393 = vector.extract_strided_slice %389 {offsets = [0, 64], sizes = [2, 64], strides = [1, 1]} : vector<2x192xf32> to vector<2x64xf32>
    %394 = vector.extract_strided_slice %389 {offsets = [0, 128], sizes = [2, 64], strides = [1, 1]} : vector<2x192xf32> to vector<2x64xf32>
    %395 = arith.mulf %393, %375 : vector<2x64xf32>
    %396 = arith.mulf %392, %391 : vector<2x64xf32>
    %397 = arith.addf %395, %396 : vector<2x64xf32>
    %398 = math.tanh %397 : vector<2x64xf32>
    %399 = arith.mulf %394, %398 : vector<2x64xf32>
    %400 = vector.extract_strided_slice %399 {offsets = [0, 0], sizes = [2, 32], strides = [1, 1]} : vector<2x64xf32> to vector<2x32xf32>
    %401 = tpu.concatenate %400, %245 in 1 : vector<2x32xf32>, vector<2x32xf32> -> vector<2x64xf32>
    %c0_56 = arith.constant 0 : index
    %c0_57 = arith.constant 0 : index
    %402 = vector.load %arg9[%c0_56, %c0_57] : memref<1x64xf32, #tpu.memory_space<vmem>>, vector<1x64xf32>
    %403 = vector.broadcast %402 : vector<1x64xf32> to vector<2x64xf32>
    %404 = arith.mulf %401, %403 : vector<2x64xf32>
    %cst_58 = arith.constant dense<0.000000e+00> : vector<2xf32>
    %405 = vector.multi_reduction <add>, %404, %cst_58 [1] : vector<2x64xf32> to vector<2xf32>
    %406 = vector.shape_cast %405 : vector<2xf32> to vector<2x1xf32>
    %c0_59 = arith.constant 0 : index
    %c0_60 = arith.constant 0 : index
    %407 = vector.load %arg10[%c0_59, %c0_60] : memref<1x1xf32, #tpu.memory_space<vmem>>, vector<1x1xf32>
    %408 = vector.broadcast %407 : vector<1x1xf32> to vector<2x1xf32>
    %409 = arith.addf %406, %408 : vector<2x1xf32>
    %410 = arith.negf %409 : vector<2x1xf32>
    %411 = math.exp %410 : vector<2x1xf32>
    %cst_61 = arith.constant 1.000000e+00 : f32
    %412 = vector.broadcast %cst_61 : f32 to vector<2x1xf32>
    %413 = arith.addf %412, %411 : vector<2x1xf32>
    %414 = arith.divf %412, %413 : vector<2x1xf32>
    %c0_62 = arith.constant 0 : index
    %c0_63 = arith.constant 0 : index
    %415 = vector.load %arg11[%c0_62, %c0_63] : memref<2x1xf32, #tpu.memory_space<vmem>>, vector<2x1xf32>
    tpu.vector_store %arg11[%c0_62, %c0_63], %414 {strides = array<i32>} : memref<2x1xf32, #tpu.memory_space<vmem>>, vector<2x1xf32>,
    return
  }
}

</mosaic_0001>

<bundles_post_ra>
// kernel: sms_rnn_forward.1
= control target key start
LH: loop header
LB: loop body
LE: loop exit
PB: predicated region body
PF: predicated region fallthrough
CT: control target
= control target key end

     0   :  { %s3511_s0 = inlined_call_operand.vmem [shape: bf16[16,64], index: 0, kind: input, shape index: {}]   ;;  %s3512_s1 = inlined_call_operand.hbm [shape: bf16[64,256], index: 1, kind: input, shape index: {}]   ;;  %s3513_s2 = inlined_call_operand.hbm [shape: bf16[64,256], index: 2, kind: input, shape index: {}]   ;;  %s3514_s3 = inlined_call_operand.hbm [shape: bf16[64,256], index: 3, kind: input, shape index: {}]   ;;  %s3515_s4 = inlined_call_operand.vmem [shape: f32[1,256], index: 4, kind: input, shape index: {}]   ;;  %s3516_s5 = inlined_call_operand.hbm [shape: bf16[64,256], index: 5, kind: input, shape index: {}]   ;;  %s3517_s6 = inlined_call_operand.hbm [shape: bf16[64,256], index: 6, kind: input, shape index: {}]   ;;  %s3518_s7 = inlined_call_operand.hbm [shape: bf16[64,256], index: 7, kind: input, shape index: {}]   ;;  %s3519_s8 = inlined_call_operand.vmem [shape: f32[1,256], index: 8, kind: input, shape index: {}]   ;;  %s3520_s9 = inlined_call_operand.vmem [shape: f32[1,64], index: 9, kind: input, shape index: {}]   ;;  %s3521_s10 = inlined_call_operand.<no memory space> [shape: f32[1,1], index: 10, kind: input, shape index: {}]   ;;  %s3522_s11 = inlined_call_operand.vmem [shape: f32[2,1], index: 11, kind: output, shape index: {}]  }
   0x1   :  { %v16_v0 = vstv %s3521_s10 }
   0x2   :  { %17 = vst [vmem:[#allocation2] sm:$0x1] %v16_v0 }
   0x3   :  { %18 = vsyncpa [#allocation4], 0 }
   0x4   :  { %19 = vsyncpa [#allocation6], 0 }
   0x5   :  { %20 = vsyncpa [#allocation9], 0 }
   0x6   :  { %21 = vsyncpa [#allocation12], 0  ;;  %s41_s21 = sshll.u32 %s3513_s2, 4  ;;  %s2918_s22 = smov [#allocation5]   ;;  %s42_s21 = int_to_ptr.hbm [resolvable:$true] %s41_s21 }
   0x7   :  { %s43_s23 = sshll.u32 %s2918_s22, 4  ;;  %s69_s26 = sshll.u32 %s3516_s5, 4  ;;  %s44_s23 = int_to_ptr.vmem [resolvable:$true] %s43_s23  ;;  %s70_s26 = int_to_ptr.hbm [resolvable:$true] %s69_s26 }
   0x8   :  { %s2919_s27 = smov 128   ;;  %s2920_s28 = smov 8  }
   0x9   :  { %49 = dma.hbm_to_vmem [thread:$0]  %s42_s21, 1024, %s44_s23, [#allocation6], %s2919_s27, %s2919_s27, %s2920_s28  }
   0xa   :  { %s2921_s10 = smov [#allocation8]   ;;  %s28_s2 = sshll.u32 %s3512_s1, 4  ;;  %s29_s2 = int_to_ptr.hbm [resolvable:$true] %s28_s2 }
   0xb   :  { %s71_s29 = sshll.u32 %s2921_s10, 4  ;;  %s54_s14 = sshll.u32 %s3514_s3, 4  ;;  %s72_s29 = int_to_ptr.vmem [resolvable:$true] %s71_s29  ;;  %s55_s14 = int_to_ptr.hbm [resolvable:$true] %s54_s14 }
   0xc   :  { %77 = dma.hbm_to_vmem [thread:$0]  %s70_s26, 1024, %s72_s29, [#allocation9], %s2919_s27, %s2919_s27, %s2920_s28  }
   0xd   :  { %s2922_s15 = smov [#allocation3]   ;;  %s2923_s17 = smov [#allocation7]  }
   0xe   :  { %s30_s16 = sshll.u32 %s2922_s15, 4  ;;  %s56_s1 = sshll.u32 %s2923_s17, 4  ;;  %s31_s16 = int_to_ptr.vmem [resolvable:$true] %s30_s16  ;;  %s57_s1 = int_to_ptr.vmem [resolvable:$true] %s56_s1 }
   0xf   :  { %36 = dma.hbm_to_vmem [thread:$0]  %s29_s2, 1024, %s31_s16, [#allocation4], %s2919_s27, %s2919_s27, %s2920_s28  }
  0x10   :  { %s82_s20 = sshll.u32 %s3517_s6, 4  ;;  %s95_s22 = sshll.u32 %s3518_s7, 4  ;;  %s83_s20 = int_to_ptr.hbm [resolvable:$true] %s82_s20  ;;  %s96_s22 = int_to_ptr.hbm [resolvable:$true] %s95_s22 }
  0x11   :  { %62 = dma.hbm_to_vmem [thread:$0]  %s55_s14, 1024, %s57_s1, [#allocation6], %s2919_s27, %s2919_s27, %s2920_s28  }
  0x12   :  { %s2924_s23 = smov [#allocation10]   ;;  %s2925_s25 = smov [#allocation11]  }
  0x13   :  { %s84_s24 = sshll.u32 %s2924_s23, 4  ;;  %s97_s6 = sshll.u32 %s2925_s25, 4  ;;  %s85_s24 = int_to_ptr.vmem [resolvable:$true] %s84_s24  ;;  %s98_s6 = int_to_ptr.vmem [resolvable:$true] %s97_s6 }
  0x14   :  { %90 = dma.hbm_to_vmem [thread:$0]  %s83_s20, 1024, %s85_s24, [#allocation9], %s2919_s27, %s2919_s27, %s2920_s28  }
  0x15   :  { %103 = dma.hbm_to_vmem [thread:$0]  %s96_s22, 1024, %s98_s6, [#allocation12], %s2919_s27, %s2919_s27, %s2920_s28  }
  0x16   :  { %2910 = dma.done.wait [#allocation4], 1024  }
  0x17   :  { %2911 = vsyncadd [#allocation4], 4294966272 }
  0x18   :  { %2912 = dma.done.wait [#allocation6], 2048  }
  0x19   :  { %2913 = vsyncadd [#allocation6], 4294965248 }
  0x1a   :  { %2914 = dma.done.wait [#allocation9], 2048  }
  0x1b   :  { %2915 = vsyncadd [#allocation9], 4294965248 }
  0x1c   :  { %2916 = dma.done.wait [#allocation12], 1024  }
  0x1d   :  { %2917 = vsyncadd [#allocation12], 4294966272  ;;  %v2516_v1 = vld [vmem:[#allocation3 + $0x34] sm:$0xf]  ;;  %v2276_v2 = vld [vmem:[#allocation3 + $0x38] sm:$0xf0] }
  0x1e   :  { %v2524_v3 = vld [vmem:[#allocation5 + $0x34] sm:$0xf]  ;;  %v2279_v4 = vor.u32 %v2516_v1, %v2276_v2  ;;  %v2310_v5 = vld [vmem:[#allocation5 + $0x38] sm:$0xf0]  ;;  %v2514_v6 = vld [vmem:[#allocation3 + $0x24] sm:$0xf] }
  0x1f   :  { %v2268_v7 = vld [vmem:[#allocation3 + $0x28] sm:$0xf0]  ;;  %v2313_v8 = vor.u32 %v2524_v3, %v2310_v5  ;;  %v2522_v9 = vld [vmem:[#allocation5 + $0x24] sm:$0xf]  ;;  %v2512_v13 = vld [vmem:[#allocation3 + $0x14] sm:$0xf] }
  0x20   :  { %v2302_v10 = vld [vmem:[#allocation5 + $0x28] sm:$0xf0]  ;;  %218 = vmatpush.bf16.msra.mxu1 %v2279_v4  ;;  %v2271_v11 = vor.u32 %v2514_v6, %v2268_v7  ;;  %v2260_v14 = vld [vmem:[#allocation3 + $0x18] sm:$0xf0]  ;;  %v2520_v15 = vld [vmem:[#allocation5 + $0x14] sm:$0xf] }
  0x21   :  { %294 = vmatpush.bf16.msra.mxu3 %v2313_v8  ;;  %v2305_v12 = vor.u32 %v2522_v9, %v2302_v10  ;;  %v2294_v16 = vld [vmem:[#allocation5 + $0x18] sm:$0xf0]  ;;  %v2510_v17 = vld [vmem:[#allocation3 + $0x4] sm:$0xf]  ;;  %v2252_v18 = vld [vmem:[#allocation3 + $0x8] sm:$0xf0]  ;;  %v2263_v19 = vor.u32 %v2512_v13, %v2260_v14 }
  0x22   :  { %v2518_v20 = vld [vmem:[#allocation5 + $0x4] sm:$0xf]  ;;  %v2286_v21 = vld [vmem:[#allocation5 + $0x8] sm:$0xf0]  ;;  %v2532_v22 = vld [vmem:[#allocation7 + $0x34] sm:$0xf]  ;;  %v2297_v23 = vor.u32 %v2520_v15, %v2294_v16  ;;  %v2255_v35 = vor.u32 %v2510_v17, %v2252_v18 }
  0x23   :  { %v2344_v24 = vld [vmem:[#allocation7 + $0x38] sm:$0xf0]  ;;  %v2308_v25 = vld [vmem:[#allocation5 + $0x30] sm:$0xf]  ;;  %v2525_v26 = vld [vmem:[#allocation5 + $0x34] sm:$0xf0]  ;;  %v2289_v37 = vor.u32 %v2518_v20, %v2286_v21 }
  0x24   :  { %219 = vmatpush.bf16.msra.mxu1 %v2271_v11  ;;  %v2309_v27 = vor.u32 %v2525_v26, %v2308_v25  ;;  %v2274_v28 = vld [vmem:[#allocation3 + $0x30] sm:$0xf]  ;;  %v2517_v29 = vld [vmem:[#allocation3 + $0x34] sm:$0xf0]  ;;  %v2300_v30 = vld [vmem:[#allocation5 + $0x20] sm:$0xf]  ;;  %v3027_v38 = vor.u32 %v2532_v22, %v2344_v24 }
  0x25   :  { %295 = vmatpush.bf16.msra.mxu3 %v2305_v12  ;;  %v2275_v31 = vor.u32 %v2517_v29, %v2274_v28  ;;  %v2523_v32 = vld [vmem:[#allocation5 + $0x24] sm:$0xf0]  ;;  %v2266_v33 = vld [vmem:[#allocation3 + $0x20] sm:$0xf]  ;;  %v2292_v39 = vld [vmem:[#allocation5 + $0x10] sm:$0xf] }
  0x26   :  { %v2515_v34 = vld [vmem:[#allocation3 + $0x24] sm:$0xf0]  ;;  %280 = vmatpush.bf16.msra.mxu2 %v2309_v27  ;;  %v2301_v36 = vor.u32 %v2523_v32, %v2300_v30  ;;  %v2521_v40 = vld [vmem:[#allocation5 + $0x14] sm:$0xf0]  ;;  %v2530_v41 = vld [vmem:[#allocation7 + $0x24] sm:$0xf] }
  0x27   :  { %204 = vmatpush.bf16.msra.mxu0 %v2275_v31  ;;  %v2336_v42 = vld [vmem:[#allocation7 + $0x28] sm:$0xf0]  ;;  %v2267_v43 = vor.u32 %v2515_v34, %v2266_v33  ;;  %v2509_v44 = vld [vmem:[%s3511_s0] sm:$0xff]  ;;  %v2258_v45 = vld [vmem:[#allocation3 + $0x10] sm:$0xf]  ;;  %vm196_vm0 = vcmask 523264   ;;  %v2293_v47 = vor.u32 %v2521_v40, %v2292_v39 }
  0x28   :  { %220 = vmatpush.bf16.msra.mxu1 %v2263_v19  ;;  %v2513_v46 = vld [vmem:[#allocation3 + $0x14] sm:$0xf0]  ;;  %v3033_v48 = vor.u32 %v2530_v41, %v2336_v42  ;;  %v2284_v49 = vld [vmem:[#allocation5] sm:$0xf]  ;;  %v2519_v50 = vld [vmem:[#allocation5 + $0x4] sm:$0xf0] }
  0x29   :  { %296 = vmatpush.bf16.msra.mxu3 %v2297_v23  ;;  %v2528_v51 = vld [vmem:[#allocation7 + $0x14] sm:$0xf]  ;;  %v2328_v52 = vld [vmem:[#allocation7 + $0x18] sm:$0xf0]  ;;  %v2259_v53 = vor.u32 %v2513_v46, %v2258_v45  ;;  %v2250_v54 = vld [vmem:[#allocation3] sm:$0xf]  ;;  %v2285_v56 = vor.u32 %v2519_v50, %v2284_v49 }
  0x2a   :  { %281 = vmatpush.bf16.msra.mxu2 %v2301_v36  ;;  %v2511_v55 = vld [vmem:[#allocation3 + $0x4] sm:$0xf0]  ;;  %v2342_v57 = vld [vmem:[#allocation7 + $0x30] sm:$0xf]  ;;  %v2533_v58 = vld [vmem:[#allocation7 + $0x34] sm:$0xf0]  ;;  %v3039_v59 = vor.u32 %v2528_v51, %v2328_v52 }
  0x2b   :  { %205 = vmatpush.bf16.msra.mxu0 %v2267_v43  ;;  %v2526_v60 = vld [vmem:[#allocation7 + $0x4] sm:$0xf]  ;;  %v2320_v61 = vld [vmem:[#allocation7 + $0x8] sm:$0xf0]  ;;  %v2251_v62 = vor.u32 %v2511_v55, %v2250_v54  ;;  %v3042_v63 = vor.u32 %v2533_v58, %v2342_v57  ;;  %v2334_v0 = vld [vmem:[#allocation7 + $0x20] sm:$0xf] }
  0x2c   :  { %221 = vmatpush.bf16.msra.mxu1 %v2255_v35  ;;  %v2531_v1 = vld [vmem:[#allocation7 + $0x24] sm:$0xf0]  ;;  %v3045_v2 = vor.u32 %v2526_v60, %v2320_v61  ;;  %v2326_v4 = vld [vmem:[#allocation7 + $0x10] sm:$0xf]  ;;  %v2529_v5 = vld [vmem:[#allocation7 + $0x14] sm:$0xf0] }
  0x2d   :  { %297 = vmatpush.bf16.msra.mxu3 %v2289_v37  ;;  %v3051_v3 = vor.u32 %v2531_v1, %v2334_v0  ;;  %v3058_v6 = vor.u32 %v2529_v5, %v2326_v4  ;;  %v2318_v7 = vld [vmem:[#allocation7] sm:$0xf]  ;;  %v2527_v8 = vld [vmem:[#allocation7 + $0x4] sm:$0xf0]  ;;  %v2926_v9 = vmov 0  }
  0x2e   :  { %282 = vmatpush.bf16.msra.mxu2 %v2293_v47  ;;  %v3065_v10 = vor.u32 %v2527_v8, %v2318_v7  ;;  %v145_v12 = vld [vmem:[%s3515_s4] sm:$0x3]  ;;  %s2927_s4 = smov 64  }
  0x2f   :  { %2281 = vmatmul.msk.bf16.vlgmr.msra.gmra.mxu1 %vm196_vm0, %v2509_v44  ;;  %206 = vmatpush.bf16.msra.mxu0 %v2259_v53  ;;  %v148_v13 = vperm.slane %v145_v12, 1  ;;  %v147_v27 = vperm.slane %v145_v12, 0 }
  0x30   :  { %372 = vmatpush.bf16.msrb.mxu1 %v3027_v38  ;;  %2315 = vmatmul.msk.bf16.vlgmr.msra.gmra.mxu3 %vm196_vm0, %v2509_v44 }
  0x31   :  { %468 = vmatpush.bf16.msrb.mxu3 %v3027_v38 }
  0x32   :  { %283 = vmatpush.bf16.msra.mxu2 %v2285_v56 }
  0x33   :  { %207 = vmatpush.bf16.msra.mxu0 %v2251_v62 }
  0x34   :  { %373 = vmatpush.bf16.msrb.mxu1 %v3033_v48 }
  0x35   :  { %469 = vmatpush.bf16.msrb.mxu3 %v3033_v48  ;;  %2314 = vmatmul.msk.bf16.vlgmr.msra.gmra.mxu2 %vm196_vm0, %v2509_v44 }
  0x36   :  { %455 = vmatpush.bf16.msrb.mxu2 %v3042_v63  ;;  %2280 = vmatmul.msk.bf16.vlgmr.msra.gmra.mxu0 %vm196_vm0, %v2509_v44 }
  0x37   :  { %359 = vmatpush.bf16.msrb.mxu0 %v3042_v63 }
  0x38   :  { %374 = vmatpush.bf16.msrb.mxu1 %v3039_v59 }
  0x39   :  { %470 = vmatpush.bf16.msrb.mxu3 %v3039_v59 }
  0x3a   :  { %456 = vmatpush.bf16.msrb.mxu2 %v3051_v3 }
  0x3b   :  { %360 = vmatpush.bf16.msrb.mxu0 %v3051_v3 }
  0x3c   :  { %375 = vmatpush.bf16.msrb.mxu1 %v3045_v2 }
  0x3d   :  { %471 = vmatpush.bf16.msrb.mxu3 %v3045_v2 }
  0x3e   :  { %457 = vmatpush.bf16.msrb.mxu2 %v3058_v6 }
  0x3f   :  { %376 = vmatmul.bf16.vlgmr.msrb.gmra.mxu1 %v2926_v9  ;;  %361 = vmatpush.bf16.msrb.mxu0 %v3058_v6 }
  0x40   :  { %573 = vmatpush.bf16.msra.mxu1 %v3027_v38 }
  0x41   :  { %672 = vmatpush.bf16.msra.mxu3 %v3027_v38 }
  0x42   :  { %458 = vmatpush.bf16.msrb.mxu2 %v3065_v10 }
  0x43   :  { %362 = vmatpush.bf16.msrb.mxu0 %v3065_v10 }
  0x44   :  { %574 = vmatpush.bf16.msra.mxu1 %v3033_v48 }
  0x45   :  { %673 = vmatpush.bf16.msra.mxu3 %v3033_v48 }
  0x46   :  { %659 = vmatpush.bf16.msra.mxu2 %v3042_v63  ;;  %363 = vmatmul.bf16.vlgmr.msrb.gmra.mxu0 %v2926_v9 }
  0x47   :  { %560 = vmatpush.bf16.msra.mxu0 %v3042_v63 }
  0x48   :  { %575 = vmatpush.bf16.msra.mxu1 %v3039_v59 }
  0x49   :  { %674 = vmatpush.bf16.msra.mxu3 %v3039_v59 }
  0x4a   :  { %660 = vmatpush.bf16.msra.mxu2 %v3051_v3 }
  0x4b   :  { %561 = vmatpush.bf16.msra.mxu0 %v3051_v3 }
  0x4c   :  { %576 = vmatpush.bf16.msra.mxu1 %v3045_v2 }
  0x4d   :  { %675 = vmatpush.bf16.msra.mxu3 %v3045_v2 }
  0x4e   :  { %661 = vmatpush.bf16.msra.mxu2 %v3058_v6 }
  0x4f   :  { %562 = vmatpush.bf16.msra.mxu0 %v3058_v6 }
  0x50   :  { %771 = vmatpush.bf16.msrb.mxu1 %v3027_v38 }
  0x52   :  { %662 = vmatpush.bf16.msra.mxu2 %v3065_v10 }
  0x53   :  { %563 = vmatpush.bf16.msra.mxu0 %v3065_v10 }
  0x54   :  { %772 = vmatpush.bf16.msrb.mxu1 %v3033_v48 }
  0x57   :  { %758 = vmatpush.bf16.msrb.mxu0 %v3042_v63 }
  0x58   :  { %773 = vmatpush.bf16.msrb.mxu1 %v3039_v59 }
  0x5b   :  { %759 = vmatpush.bf16.msrb.mxu0 %v3051_v3 }
  0x5c   :  { %774 = vmatpush.bf16.msrb.mxu1 %v3045_v2 }
  0x5f   :  { %760 = vmatpush.bf16.msrb.mxu0 %v3058_v6 }
  0x63   :  { %761 = vmatpush.bf16.msrb.mxu0 %v3065_v10 }
  0xac   :  { %v223_v11 = vpop.f32.mrf.mxu1 }
  0xad   :  { %v3101_v23 = vadd.f32 %v223_v11, %v148_v13 }
  0xb3   :  { %v299_v14 = vpop.f32.mrf.mxu3  ;;  %v209_v19 = vpop.f32.mrf.mxu0 }
  0xb4   :  { %v225_v15 = vpop.f32.mrf.mxu1  ;;  %v783_v16 = vrot.slane %v299_v14, 6  ;;  %v880_v17 = vrot.slane %v299_v14, 2  ;;  %v3115_v42 = vadd.f32 %v209_v19, %v147_v27 }
  0xb5   :  { %v226_v18 = vadd.f32 %v225_v15, %v148_v13 }
  0xb7   :  { %v3095_v20 = vadd.f32 %v880_v17, %v226_v18  ;;  %v3097_v21 = vadd.f32 %v783_v16, %v226_v18 }
  0xb8   :  { %v285_v26 = vpop.f32.mrf.mxu2 }
  0xb9   :  { %v879_v28 = vrot.slane %v285_v26, 2  ;;  %v782_v39 = vrot.slane %v285_v26, 6 }
  0xbb   :  { %v3099_v22 = vpop.f32.mrf.mxu3  ;;  %v211_v30 = vpop.f32.mrf.mxu0 }
  0xbc   :  { %v384_v24 = vrot.slane %v3099_v22, 6  ;;  %v377_v25 = vpop.f32.mrf.mxu1  ;;  %v212_v31 = vadd.f32 %v211_v30, %v147_v27  ;;  %v478_v30 = vrot.slane %v3099_v22, 2 }
  0xbe   :  { %v3105_v29 = vadd.f32 %v384_v24, %v3101_v23  ;;  %v3108_v33 = vadd.f32 %v879_v28, %v212_v31  ;;  %v3111_v40 = vadd.f32 %v782_v39, %v212_v31 }
  0xc0   :  { %v390_v32 = vadd.f32 %v3105_v29, %v377_v25  ;;  %v3113_v41 = vpop.f32.mrf.mxu2 }
  0xc1   :  { %v383_v43 = vrot.slane %v3113_v41, 6 }
  0xc2   :  { %2570 = vtanh.f32 %v390_v32  ;;  %v2349_v7 = vmul.f32 -1.442695, %v390_v32 }
  0xc3   :  { %v364_v35 = vpop.f32.mrf.mxu0  ;;  %v3119_v44 = vadd.f32 %v383_v43, %v3115_v42 }
  0xc4   :  { %v379_v34 = vpop.f32.mrf.mxu1 }
  0xc5   :  { %v389_v45 = vadd.f32 %v3119_v44, %v364_v35  ;;  %v3143_v34 = vadd.f32 %v478_v30, %v3101_v23 }
  0xc7   :  { %v2348_v46 = vmul.f32 -1.442695, %v389_v45  ;;  %v477_v45 = vrot.slane %v3113_v41, 2 }
  0xc8   :  { %v2571_v36 = vpop.eup %2570 }
  0xc9   :  { %432 = vrot.lane.b32.xlu0 %v2571_v36, %s2927_s4  ;;  %2572 = vpow2.f32 %v2348_v46 }
  0xcb   :  { %v366_v37 = vpop.f32.mrf.mxu0 }
  0xcf   :  { %v2573_v47 = vpop.eup %2572 }
  0xd0   :  { %v397_v49 = vadd.f32 1.0, %v2573_v47  ;;  %v3149_v47 = vadd.f32 %v477_v45, %v3115_v42 }
  0xd2   :  { %2574 = vrcp.f32 %v397_v49  ;;  %vm404_vm1 = vweird.f32 %v397_v49  ;;  %v410_v54 = vand.u32 2147483648, %v397_v49  ;;  %v408_v56 = vand.u32 2147483647, %v397_v49 }
  0xd4   :  { %v411_v57 = vor.u32 1.1754944e-38, %v410_v54  ;;  %vm409_vm4 = vcmp.eq.f32.partialorder %v408_v56, 8.507059e+37 }
  0xd8   :  { %v2575_v50 = vpop.eup %2574 }
  0xd9   :  { %v400_v51 = vmul.f32 %v2575_v50, %v397_v49  ;;  %vm405_vm2 = vweird.f32 %v2575_v50 }
  0xda   :  { %vm406_vm3 = vmor %vm404_vm1, %vm405_vm2 }
  0xdb   :  { %v401_v52 = vsub.f32 1.0, %v400_v51 }
  0xdd   :  { %v402_v53 = vmul.f32 %v2575_v50, %v401_v52 }
  0xdf   :  { %v403_v55 = vadd.f32 %v2575_v50, %v402_v53 }
  0xe1   :  { %v407_v58 = vsel %vm406_vm3, %v2575_v50, %v403_v55 }
  0xe2   :  { %v412_v61 = vsel %vm409_vm4, %v411_v57, %v407_v58 }
  0xe3   :  { %v430_v0 = vmul.f32 0.0, %v412_v61 }
 0x13b   :  { %v433_v60 = vpop.permute.xlu0 %432 }
 0x13c   :  { %v435_v62 = vmul.f32 %v433_v60, %v412_v61 }
 0x13e   :  { %437 = vrot.lane.b32.xlu0 %v435_v62, %s2927_s4 }
 0x1b0   :  { %v438_v1 = vpop.permute.xlu0 %437 }
 0x1b1   :  { %v3123_v4 = vadd.f32 %v438_v1, %v430_v0 }
 0x1b3   :  { %2576 = vtanh.f32 %v3123_v4  ;;  %v531_v62 = vrot.slane %v3123_v4, 6 }
 0x1b4   :  { %2578 = vpow2.f32 %v2349_v7 }
 0x1b9   :  { %v2577_v5 = vpop.eup %2576 }
 0x1ba   :  { %443 = vrot.lane.b32.xlu1 %v2577_v5, %s2927_s4  ;;  %v2579_v8 = vpop.eup %2578 }
 0x1bb   :  { %v398_v11 = vadd.f32 1.0, %v2579_v8 }
 0x1bd   :  { %2580 = vrcp.f32 %v398_v11  ;;  %v425_v17 = vand.u32 2147483648, %v398_v11  ;;  %vm419_vm6 = vweird.f32 %v398_v11  ;;  %v423_v18 = vand.u32 2147483647, %v398_v11 }
 0x1bf   :  { %v426_v24 = vor.u32 1.1754944e-38, %v425_v17  ;;  %vm424_vm8 = vcmp.eq.f32.partialorder %v423_v18, 8.507059e+37 }
 0x1c3   :  { %v2581_v12 = vpop.eup %2580 }
 0x1c4   :  { %v415_v13 = vmul.f32 %v2581_v12, %v398_v11  ;;  %vm420_vm5 = vweird.f32 %v2581_v12 }
 0x1c5   :  { %vm421_vm7 = vmor %vm419_vm6, %vm420_vm5 }
 0x1c6   :  { %v416_v14 = vsub.f32 1.0, %v415_v13 }
 0x1c8   :  { %v417_v15 = vmul.f32 %v2581_v12, %v416_v14 }
 0x1ca   :  { %v418_v16 = vadd.f32 %v2581_v12, %v417_v15 }
 0x1cc   :  { %v422_v19 = vsel %vm421_vm7, %v2581_v12, %v418_v16 }
 0x1cd   :  { %v427_v25 = vsel %vm424_vm8, %v426_v24, %v422_v19 }
 0x22c   :  { %v444_v26 = vpop.permute.xlu1 %443 }
 0x22d   :  { %v3127_v27 = vmul.f32 %v444_v26, %v427_v25 }
 0x22f   :  { %v447_v28 = vpack.c.bf16 %v3127_v27, %v3127_v27 }
 0x231   :  { %2350 = vmatmul.msk.bf16.vlgmr.msrb.gmra.mxu2 %vm196_vm0, %v447_v28  ;;  %2351 = vmatmul.msk.bf16.vlgmr.msrb.gmra.mxu3 %vm196_vm0, %v447_v28 }
 0x232   :  { %870 = vmatpush.bf16.msrb.mxu3 %v3027_v38  ;;  %857 = vmatpush.bf16.msrb.mxu2 %v3042_v63 }
 0x236   :  { %871 = vmatpush.bf16.msrb.mxu3 %v3033_v48  ;;  %858 = vmatpush.bf16.msrb.mxu2 %v3051_v3 }
 0x23a   :  { %872 = vmatpush.bf16.msrb.mxu3 %v3039_v59  ;;  %859 = vmatpush.bf16.msrb.mxu2 %v3058_v6 }
 0x23e   :  { %873 = vmatpush.bf16.msrb.mxu3 %v3045_v2  ;;  %860 = vmatpush.bf16.msrb.mxu2 %v3065_v10 }
 0x2b4   :  { %v460_v31 = vpop.f32.mrf.mxu2  ;;  %v473_v32 = vpop.f32.mrf.mxu3 }
 0x2b5   :  { %v486_v35 = vrot.slane %v473_v32, 6  ;;  %v485_v46 = vrot.slane %v460_v31, 6 }
 0x2b7   :  { %v490_v36 = vadd.f32 %v486_v35, %v3143_v34  ;;  %v489_v22 = vadd.f32 %v485_v46, %v3149_v47 }
 0x2b9   :  { %2582 = vtanh.f32 %v490_v36  ;;  %v2352_v49 = vmul.f32 -1.442695, %v489_v22  ;;  %v2353_v8 = vmul.f32 -1.442695, %v490_v36 }
 0x2bb   :  { %2584 = vpow2.f32 %v2352_v49 }
 0x2bc   :  { %v462_v37 = vpop.f32.mrf.mxu2  ;;  %v475_v39 = vpop.f32.mrf.mxu3 }
 0x2bf   :  { %v2583_v43 = vpop.eup %2582 }
 0x2c0   :  { %535 = vrot.lane.b32.xlu1 %v2583_v43, %s2927_s4 }
 0x2c1   :  { %v2585_v23 = vpop.eup %2584 }
 0x2c2   :  { %v497_v50 = vadd.f32 1.0, %v2585_v23 }
 0x2c4   :  { %2586 = vrcp.f32 %v497_v50  ;;  %v510_v56 = vand.u32 2147483648, %v497_v50  ;;  %vm504_vm10 = vweird.f32 %v497_v50  ;;  %v508_v41 = vand.u32 2147483647, %v497_v50 }
 0x2c6   :  { %v511_v42 = vor.u32 1.1754944e-38, %v510_v56  ;;  %vm509_vm12 = vcmp.eq.f32.partialorder %v508_v41, 8.507059e+37 }
 0x2ca   :  { %v2587_v51 = vpop.eup %2586 }
 0x2cb   :  { %v500_v52 = vmul.f32 %v2587_v51, %v497_v50  ;;  %vm505_vm9 = vweird.f32 %v2587_v51 }
 0x2cc   :  { %vm506_vm11 = vmor %vm504_vm10, %vm505_vm9 }
 0x2cd   :  { %v501_v53 = vsub.f32 1.0, %v500_v52 }
 0x2cf   :  { %v502_v54 = vmul.f32 %v2587_v51, %v501_v53 }
 0x2d1   :  { %v503_v55 = vadd.f32 %v2587_v51, %v502_v54 }
 0x2d3   :  { %v507_v57 = vsel %vm506_vm11, %v2587_v51, %v503_v55 }
 0x2d4   :  { %v512_v60 = vsel %vm509_vm12, %v511_v42, %v507_v57 }
 0x2d5   :  { %v533_v0 = vmul.f32 %v531_v62, %v512_v60 }
 0x332   :  { %v536_v58 = vpop.permute.xlu1 %535 }
 0x333   :  { %v538_v61 = vmul.f32 %v536_v58, %v512_v60 }
 0x335   :  { %540 = vrot.lane.b32.xlu2 %v538_v61, %s2927_s4 }
 0x38f   :  { %v541_v1 = vpop.permute.xlu2 %540 }
 0x390   :  { %v3154_v5 = vadd.f32 %v541_v1, %v533_v0 }
 0x392   :  { %2588 = vtanh.f32 %v3154_v5  ;;  %v630_v60 = vrot.slane %v3154_v5, 6 }
 0x393   :  { %2590 = vpow2.f32 %v2353_v8 }
 0x398   :  { %v2589_v7 = vpop.eup %2588 }
 0x399   :  { %546 = vrot.lane.b32.xlu2 %v2589_v7, %s2927_s4  ;;  %v2591_v11 = vpop.eup %2590 }
 0x39a   :  { %v498_v12 = vadd.f32 1.0, %v2591_v11 }
 0x39c   :  { %2592 = vrcp.f32 %v498_v12  ;;  %v525_v4 = vand.u32 2147483648, %v498_v12  ;;  %vm519_vm14 = vweird.f32 %v498_v12  ;;  %v523_v18 = vand.u32 2147483647, %v498_v12 }
 0x39e   :  { %v526_v24 = vor.u32 1.1754944e-38, %v525_v4  ;;  %vm524_vm1 = vcmp.eq.f32.partialorder %v523_v18, 8.507059e+37 }
 0x3a2   :  { %v2593_v13 = vpop.eup %2592 }
 0x3a3   :  { %v515_v14 = vmul.f32 %v2593_v13, %v498_v12  ;;  %vm520_vm13 = vweird.f32 %v2593_v13 }
 0x3a4   :  { %vm521_vm15 = vmor %vm519_vm14, %vm520_vm13 }
 0x3a5   :  { %v516_v15 = vsub.f32 1.0, %v515_v14 }
 0x3a7   :  { %v517_v16 = vmul.f32 %v2593_v13, %v516_v15 }
 0x3a9   :  { %v518_v17 = vadd.f32 %v2593_v13, %v517_v16 }
 0x3ab   :  { %v522_v19 = vsel %vm521_vm15, %v2593_v13, %v518_v17 }
 0x3ac   :  { %v527_v25 = vsel %vm524_vm1, %v526_v24, %v522_v19 }
 0x3f3   :  { %v547_v26 = vpop.permute.xlu2 %546 }
 0x3f4   :  { %v3158_v28 = vmul.f32 %v547_v26, %v527_v25 }
 0x3f6   :  { %v550_v30 = vpack.c.bf16 %v3158_v28, %v3158_v28 }
 0x3f8   :  { %v552_v31 = vrot.slane %v550_v30, 1 }
 0x3fa   :  { %2354 = vmatmul.msk.bf16.vlgmr.msra.gmra.mxu0 %vm196_vm0, %v552_v31  ;;  %2355 = vmatmul.msk.bf16.vlgmr.msra.gmra.mxu1 %vm196_vm0, %v552_v31 }
 0x3fb   :  { %975 = vmatpush.bf16.msra.mxu1 %v3027_v38  ;;  %962 = vmatpush.bf16.msra.mxu0 %v3042_v63 }
 0x3ff   :  { %976 = vmatpush.bf16.msra.mxu1 %v3033_v48  ;;  %963 = vmatpush.bf16.msra.mxu0 %v3051_v3 }
 0x403   :  { %977 = vmatpush.bf16.msra.mxu1 %v3039_v59  ;;  %964 = vmatpush.bf16.msra.mxu0 %v3058_v6 }
 0x407   :  { %978 = vmatpush.bf16.msra.mxu1 %v3045_v2  ;;  %965 = vmatpush.bf16.msra.mxu0 %v3065_v10 }
 0x477   :  { %v565_v32 = vpop.f32.mrf.mxu0  ;;  %v578_v35 = vpop.f32.mrf.mxu1 }
 0x478   :  { %v585_v36 = vrot.slane %v578_v35, 4  ;;  %v584_v46 = vrot.slane %v565_v32, 4 }
 0x47a   :  { %v589_v37 = vadd.f32 %v585_v36, %v3105_v29  ;;  %v588_v22 = vadd.f32 %v584_v46, %v3119_v44 }
 0x47c   :  { %2594 = vtanh.f32 %v589_v37  ;;  %v2356_v49 = vmul.f32 -1.442695, %v588_v22  ;;  %v2357_v7 = vmul.f32 -1.442695, %v589_v37 }
 0x47e   :  { %2596 = vpow2.f32 %v2356_v49 }
 0x47f   :  { %v567_v39 = vpop.f32.mrf.mxu0  ;;  %v580_v43 = vpop.f32.mrf.mxu1 }
 0x482   :  { %v2595_v45 = vpop.eup %2594 }
 0x483   :  { %634 = vrot.lane.b32.xlu0 %v2595_v45, %s2927_s4 }
 0x484   :  { %v2597_v23 = vpop.eup %2596 }
 0x485   :  { %v596_v50 = vadd.f32 1.0, %v2597_v23 }
 0x487   :  { %2598 = vrcp.f32 %v596_v50  ;;  %v609_v29 = vand.u32 2147483648, %v596_v50  ;;  %vm603_vm3 = vweird.f32 %v596_v50  ;;  %v607_v56 = vand.u32 2147483647, %v596_v50 }
 0x489   :  { %v610_v57 = vor.u32 1.1754944e-38, %v609_v29  ;;  %vm608_vm5 = vcmp.eq.f32.partialorder %v607_v56, 8.507059e+37 }
 0x48d   :  { %v2599_v51 = vpop.eup %2598 }
 0x48e   :  { %v599_v52 = vmul.f32 %v2599_v51, %v596_v50  ;;  %vm604_vm2 = vweird.f32 %v2599_v51 }
 0x48f   :  { %vm605_vm4 = vmor %vm603_vm3, %vm604_vm2 }
 0x490   :  { %v600_v53 = vsub.f32 1.0, %v599_v52 }
 0x492   :  { %v601_v54 = vmul.f32 %v2599_v51, %v600_v53 }
 0x494   :  { %v602_v55 = vadd.f32 %v2599_v51, %v601_v54 }
 0x496   :  { %v606_v41 = vsel %vm605_vm4, %v2599_v51, %v602_v55 }
 0x497   :  { %v611_v44 = vsel %vm608_vm5, %v610_v57, %v606_v41 }
 0x498   :  { %v632_v61 = vmul.f32 %v630_v60, %v611_v44 }
 0x4f5   :  { %v635_v42 = vpop.permute.xlu0 %634 }
 0x4f6   :  { %v637_v58 = vmul.f32 %v635_v42, %v611_v44 }
 0x4f8   :  { %639 = vrot.lane.b32.xlu1 %v637_v58, %s2927_s4 }
 0x56a   :  { %v640_v62 = vpop.permute.xlu1 %639 }
 0x56b   :  { %v3177_v0 = vadd.f32 %v640_v62, %v632_v61 }
 0x56d   :  { %2600 = vtanh.f32 %v3177_v0  ;;  %v729_v52 = vrot.slane %v3177_v0, 6 }
 0x56e   :  { %2602 = vpow2.f32 %v2357_v7 }
 0x573   :  { %v2601_v1 = vpop.eup %2600 }
 0x574   :  { %645 = vrot.lane.b32.xlu2 %v2601_v1, %s2927_s4  ;;  %v2603_v8 = vpop.eup %2602 }
 0x575   :  { %v597_v11 = vadd.f32 1.0, %v2603_v8 }
 0x577   :  { %2604 = vrcp.f32 %v597_v11  ;;  %v624_v5 = vand.u32 2147483648, %v597_v11  ;;  %vm618_vm7 = vweird.f32 %v597_v11  ;;  %v622_v17 = vand.u32 2147483647, %v597_v11 }
 0x579   :  { %v625_v18 = vor.u32 1.1754944e-38, %v624_v5  ;;  %vm623_vm9 = vcmp.eq.f32.partialorder %v622_v17, 8.507059e+37 }
 0x57d   :  { %v2605_v12 = vpop.eup %2604 }
 0x57e   :  { %v614_v13 = vmul.f32 %v2605_v12, %v597_v11  ;;  %vm619_vm6 = vweird.f32 %v2605_v12 }
 0x57f   :  { %vm620_vm8 = vmor %vm618_vm7, %vm619_vm6 }
 0x580   :  { %v615_v14 = vsub.f32 1.0, %v614_v13 }
 0x582   :  { %v616_v15 = vmul.f32 %v2605_v12, %v615_v14 }
 0x584   :  { %v617_v16 = vadd.f32 %v2605_v12, %v616_v15 }
 0x586   :  { %v621_v4 = vsel %vm620_vm8, %v2605_v12, %v617_v16 }
 0x587   :  { %v626_v19 = vsel %vm623_vm9, %v625_v18, %v621_v4 }
 0x5ce   :  { %v646_v24 = vpop.permute.xlu2 %645 }
 0x5cf   :  { %v3181_v25 = vmul.f32 %v646_v24, %v626_v19 }
 0x5d1   :  { %v649_v26 = vpack.c.bf16 %v3181_v25, %v3181_v25 }
 0x5d3   :  { %v651_v30 = vrot.slane %v649_v26, 2 }
 0x5d5   :  { %2358 = vmatmul.msk.bf16.vlgmr.msra.gmra.mxu2 %vm196_vm0, %v651_v30  ;;  %2359 = vmatmul.msk.bf16.vlgmr.msra.gmra.mxu3 %vm196_vm0, %v651_v30 }
 0x5d6   :  { %1074 = vmatpush.bf16.msra.mxu3 %v3027_v38  ;;  %1061 = vmatpush.bf16.msra.mxu2 %v3042_v63 }
 0x5da   :  { %1075 = vmatpush.bf16.msra.mxu3 %v3033_v48  ;;  %1062 = vmatpush.bf16.msra.mxu2 %v3051_v3 }
 0x5de   :  { %1076 = vmatpush.bf16.msra.mxu3 %v3039_v59  ;;  %1063 = vmatpush.bf16.msra.mxu2 %v3058_v6 }
 0x5e2   :  { %1077 = vmatpush.bf16.msra.mxu3 %v3045_v2  ;;  %1064 = vmatpush.bf16.msra.mxu2 %v3065_v10 }
 0x658   :  { %v664_v31 = vpop.f32.mrf.mxu2  ;;  %v677_v32 = vpop.f32.mrf.mxu3 }
 0x659   :  { %v684_v35 = vrot.slane %v677_v32, 2  ;;  %v683_v48 = vrot.slane %v664_v31, 2 }
 0x65b   :  { %v688_v36 = vadd.f32 %v684_v35, %v3143_v34  ;;  %v687_v59 = vadd.f32 %v683_v48, %v3149_v47 }
 0x65d   :  { %2606 = vtanh.f32 %v688_v36  ;;  %v2360_v3 = vmul.f32 -1.442695, %v687_v59  ;;  %v2361_v56 = vmul.f32 -1.442695, %v688_v36 }
 0x65f   :  { %2608 = vpow2.f32 %v2360_v3 }
 0x660   :  { %v666_v38 = vpop.f32.mrf.mxu2  ;;  %v679_v63 = vpop.f32.mrf.mxu3 }
 0x663   :  { %v2607_v37 = vpop.eup %2606 }
 0x664   :  { %733 = vrot.lane.b32.xlu0 %v2607_v37, %s2927_s4 }
 0x665   :  { %v2609_v6 = vpop.eup %2608 }
 0x666   :  { %v695_v2 = vadd.f32 1.0, %v2609_v6 }
 0x668   :  { %2610 = vrcp.f32 %v695_v2  ;;  %v708_v34 = vand.u32 2147483648, %v695_v2  ;;  %vm702_vm11 = vweird.f32 %v695_v2  ;;  %v706_v22 = vand.u32 2147483647, %v695_v2 }
 0x66a   :  { %v709_v23 = vor.u32 1.1754944e-38, %v708_v34  ;;  %vm707_vm13 = vcmp.eq.f32.partialorder %v706_v22, 8.507059e+37 }
 0x66e   :  { %v2611_v10 = vpop.eup %2610 }
 0x66f   :  { %v698_v39 = vmul.f32 %v2611_v10, %v695_v2  ;;  %vm703_vm10 = vweird.f32 %v2611_v10 }
 0x670   :  { %vm704_vm12 = vmor %vm702_vm11, %vm703_vm10 }
 0x671   :  { %v699_v43 = vsub.f32 1.0, %v698_v39 }
 0x673   :  { %v700_v45 = vmul.f32 %v2611_v10, %v699_v43 }
 0x675   :  { %v701_v46 = vadd.f32 %v2611_v10, %v700_v45 }
 0x677   :  { %v705_v49 = vsel %vm704_vm12, %v2611_v10, %v701_v46 }
 0x678   :  { %v710_v47 = vsel %vm707_vm13, %v709_v23, %v705_v49 }
 0x679   :  { %v731_v53 = vmul.f32 %v729_v52, %v710_v47 }
 0x6d6   :  { %v734_v50 = vpop.permute.xlu0 %733 }
 0x6d7   :  { %v736_v51 = vmul.f32 %v734_v50, %v710_v47 }
 0x6d9   :  { %738 = vrot.lane.b32.xlu1 %v736_v51, %s2927_s4 }
 0x74b   :  { %v739_v54 = vpop.permute.xlu1 %738 }
 0x74c   :  { %v741_v55 = vadd.f32 %v739_v54, %v731_v53 }
 0x74e   :  { %2612 = vtanh.f32 %v741_v55  ;;  %v830_v10 = vrot.slane %v741_v55, 6 }
 0x74f   :  { %2614 = vpow2.f32 %v2361_v56 }
 0x754   :  { %v2613_v29 = vpop.eup %2612 }
 0x755   :  { %744 = vrot.lane.b32.xlu2 %v2613_v29, %s2927_s4  ;;  %v2615_v41 = vpop.eup %2614 }
 0x756   :  { %v696_v57 = vadd.f32 1.0, %v2615_v41 }
 0x758   :  { %2616 = vrcp.f32 %v696_v57  ;;  %v723_v62 = vand.u32 2147483648, %v696_v57  ;;  %vm717_vm15 = vweird.f32 %v696_v57  ;;  %v721_v0 = vand.u32 2147483647, %v696_v57 }
 0x75a   :  { %v724_v7 = vor.u32 1.1754944e-38, %v723_v62  ;;  %vm722_vm2 = vcmp.eq.f32.partialorder %v721_v0, 8.507059e+37 }
 0x75e   :  { %v2617_v42 = vpop.eup %2616 }
 0x75f   :  { %v713_v44 = vmul.f32 %v2617_v42, %v696_v57  ;;  %vm718_vm14 = vweird.f32 %v2617_v42 }
 0x760   :  { %vm719_vm1 = vmor %vm717_vm15, %vm718_vm14 }
 0x761   :  { %v714_v58 = vsub.f32 1.0, %v713_v44 }
 0x763   :  { %v715_v60 = vmul.f32 %v2617_v42, %v714_v58 }
 0x765   :  { %v716_v61 = vadd.f32 %v2617_v42, %v715_v60 }
 0x767   :  { %v720_v1 = vsel %vm719_vm1, %v2617_v42, %v716_v61 }
 0x768   :  { %v725_v8 = vsel %vm722_vm2, %v724_v7, %v720_v1 }
 0x7af   :  { %v745_v11 = vpop.permute.xlu2 %744 }
 0x7b0   :  { %v3201_v12 = vmul.f32 %v745_v11, %v725_v8 }
 0x7b2   :  { %v748_v13 = vpack.c.bf16 %v3201_v12, %v3201_v12 }
 0x7b4   :  { %v750_v14 = vrot.slane %v748_v13, 3 }
 0x7b6   :  { %2362 = vmatmul.msk.bf16.vlgmr.msrb.gmra.mxu0 %vm196_vm0, %v750_v14  ;;  %2363 = vmatmul.msk.bf16.vlgmr.msrb.gmra.mxu1 %vm196_vm0, %v750_v14 }
 0x833   :  { %v763_v15 = vpop.f32.mrf.mxu0  ;;  %v776_v16 = vpop.f32.mrf.mxu1 }
 0x834   :  { %v789_v5 = vadd.f32 %v3097_v21, %v776_v16  ;;  %v788_v19 = vadd.f32 %v3111_v40, %v763_v15 }
 0x836   :  { %2618 = vtanh.f32 %v789_v5  ;;  %v2364_v24 = vmul.f32 -1.442695, %v788_v19  ;;  %v2365_v34 = vmul.f32 -1.442695, %v789_v5 }
 0x838   :  { %2620 = vpow2.f32 %v2364_v24 }
 0x83b   :  { %v765_v17 = vpop.f32.mrf.mxu0  ;;  %v778_v4 = vpop.f32.mrf.mxu1 }
 0x83c   :  { %v2619_v18 = vpop.eup %2618 }
 0x83d   :  { %834 = vrot.lane.b32.xlu0 %v2619_v18, %s2927_s4 }
 0x83e   :  { %v2621_v26 = vpop.eup %2620 }
 0x83f   :  { %v796_v30 = vadd.f32 1.0, %v2621_v26 }
 0x841   :  { %2622 = vrcp.f32 %v796_v30  ;;  %v809_v63 = vand.u32 2147483648, %v796_v30  ;;  %vm803_vm4 = vweird.f32 %v796_v30  ;;  %v807_v37 = vand.u32 2147483647, %v796_v30 }
 0x843   :  { %v810_v59 = vor.u32 1.1754944e-38, %v809_v63  ;;  %vm808_vm6 = vcmp.eq.f32.partialorder %v807_v37, 8.507059e+37 }
 0x847   :  { %v2623_v31 = vpop.eup %2622 }
 0x848   :  { %v799_v32 = vmul.f32 %v2623_v31, %v796_v30  ;;  %vm804_vm3 = vweird.f32 %v2623_v31 }
 0x849   :  { %vm805_vm5 = vmor %vm803_vm4, %vm804_vm3  ;;  %vm1153_vm4 = vcmask 261120  }
 0x84a   :  { %v800_v35 = vsub.f32 1.0, %v799_v32 }
 0x84c   :  { %v801_v36 = vmul.f32 %v2623_v31, %v800_v35 }
 0x84e   :  { %v802_v38 = vadd.f32 %v2623_v31, %v801_v36 }
 0x850   :  { %v806_v48 = vsel %vm805_vm5, %v2623_v31, %v802_v38  ;;  %vm1183_vm5 = vcmask 1041408  }
 0x851   :  { %v811_v6 = vsel %vm808_vm6, %v810_v59, %v806_v48 }
 0x852   :  { %v832_v39 = vmul.f32 %v830_v10, %v811_v6 }
 0x8af   :  { %v835_v3 = vpop.permute.xlu0 %834 }
 0x8b0   :  { %v837_v2 = vmul.f32 %v835_v3, %v811_v6 }
 0x8b2   :  { %839 = vrot.lane.b32.xlu1 %v837_v2, %s2927_s4 }
 0x924   :  { %v840_v43 = vpop.permute.xlu1 %839 }
 0x925   :  { %v3211_v45 = vadd.f32 %v840_v43, %v832_v39 }
 0x927   :  { %2624 = vtanh.f32 %v3211_v45  ;;  %v933_v35 = vrot.slane %v3211_v45, 6 }
 0x928   :  { %2626 = vpow2.f32 %v2365_v34 }
 0x92d   :  { %v2625_v46 = vpop.eup %2624 }
 0x92e   :  { %845 = vrot.lane.b32.xlu2 %v2625_v46, %s2927_s4  ;;  %v2627_v22 = vpop.eup %2626 }
 0x92f   :  { %v797_v49 = vadd.f32 1.0, %v2627_v22 }
 0x931   :  { %2628 = vrcp.f32 %v797_v49  ;;  %v824_v53 = vand.u32 2147483648, %v797_v49  ;;  %vm818_vm8 = vweird.f32 %v797_v49  ;;  %v822_v54 = vand.u32 2147483647, %v797_v49 }
 0x933   :  { %v825_v29 = vor.u32 1.1754944e-38, %v824_v53  ;;  %vm823_vm10 = vcmp.eq.f32.partialorder %v822_v54, 8.507059e+37 }
 0x937   :  { %v2629_v23 = vpop.eup %2628 }
 0x938   :  { %v814_v50 = vmul.f32 %v2629_v23, %v797_v49  ;;  %vm819_vm7 = vweird.f32 %v2629_v23 }
 0x939   :  { %vm820_vm9 = vmor %vm818_vm8, %vm819_vm7 }
 0x93a   :  { %v815_v47 = vsub.f32 1.0, %v814_v50  ;;  %v1172_v50 = vrot.slane %v3181_v25, 2 }
 0x93c   :  { %v816_v51 = vmul.f32 %v2629_v23, %v815_v47  ;;  %v1168_v47 = vrot.slane %v3201_v12, 6 }
 0x93e   :  { %v817_v52 = vadd.f32 %v2629_v23, %v816_v51 }
 0x940   :  { %v821_v55 = vsel %vm820_vm9, %v2629_v23, %v817_v52 }
 0x941   :  { %v826_v56 = vsel %vm823_vm10, %v825_v29, %v821_v55 }
 0x988   :  { %v846_v41 = vpop.permute.xlu2 %845 }
 0x989   :  { %v3215_v57 = vmul.f32 %v846_v41, %v826_v56 }
 0x98b   :  { %v849_v42 = vpack.c.bf16 %v3215_v57, %v3215_v57  ;;  %v1170_v52 = vsel %vm1153_vm4, %v3215_v57, %v1168_v47 }
 0x98d   :  { %2366 = vmatmul.msk.bf16.vlgmr.msrb.gmra.mxu2 %vm196_vm0, %v849_v42  ;;  %2367 = vmatmul.msk.bf16.vlgmr.msrb.gmra.mxu3 %vm196_vm0, %v849_v42 }
 0xa10   :  { %v862_v44 = vpop.f32.mrf.mxu2  ;;  %v875_v58 = vpop.f32.mrf.mxu3 }
 0xa11   :  { %v888_v60 = vrot.slane %v875_v58, 6  ;;  %v887_v7 = vrot.slane %v862_v44, 6 }
 0xa13   :  { %v892_v61 = vadd.f32 %v888_v60, %v3095_v20  ;;  %v891_v8 = vadd.f32 %v887_v7, %v3108_v33 }
 0xa15   :  { %2630 = vtanh.f32 %v892_v61  ;;  %v2368_v11 = vmul.f32 -1.442695, %v891_v8  ;;  %v2369_v48 = vmul.f32 -1.442695, %v892_v61 }
 0xa17   :  { %2632 = vpow2.f32 %v2368_v11 }
 0xa18   :  { %v864_v62 = vpop.f32.mrf.mxu2  ;;  %v877_v0 = vpop.f32.mrf.mxu3 }
 0xa1b   :  { %v2631_v1 = vpop.eup %2630 }
 0xa1c   :  { %937 = vrot.lane.b32.xlu0 %v2631_v1, %s2927_s4 }
 0xa1d   :  { %v2633_v13 = vpop.eup %2632 }
 0xa1e   :  { %v899_v14 = vadd.f32 1.0, %v2633_v13 }
 0xa20   :  { %2634 = vrcp.f32 %v899_v14  ;;  %v912_v18 = vand.u32 2147483648, %v899_v14  ;;  %vm906_vm12 = vweird.f32 %v899_v14  ;;  %v910_v19 = vand.u32 2147483647, %v899_v14 }
 0xa22   :  { %v913_v26 = vor.u32 1.1754944e-38, %v912_v18  ;;  %vm911_vm14 = vcmp.eq.f32.partialorder %v910_v19, 8.507059e+37 }
 0xa26   :  { %v2635_v15 = vpop.eup %2634 }
 0xa27   :  { %v902_v16 = vmul.f32 %v2635_v15, %v899_v14  ;;  %vm907_vm11 = vweird.f32 %v2635_v15 }
 0xa28   :  { %vm908_vm13 = vmor %vm906_vm12, %vm907_vm11 }
 0xa29   :  { %v903_v5 = vsub.f32 1.0, %v902_v16 }
 0xa2b   :  { %v904_v17 = vmul.f32 %v2635_v15, %v903_v5 }
 0xa2d   :  { %v905_v4 = vadd.f32 %v2635_v15, %v904_v17 }
 0xa2f   :  { %v909_v24 = vsel %vm908_vm13, %v2635_v15, %v905_v4 }
 0xa30   :  { %v914_v31 = vsel %vm911_vm14, %v913_v26, %v909_v24  ;;  %vm1185_vm14 = vcmask 1043456  }
 0xa31   :  { %v935_v36 = vmul.f32 %v933_v35, %v914_v31 }
 0xa8e   :  { %v938_v30 = vpop.permute.xlu0 %937 }
 0xa8f   :  { %v940_v32 = vmul.f32 %v938_v30, %v914_v31 }
 0xa91   :  { %942 = vrot.lane.b32.xlu1 %v940_v32, %s2927_s4 }
 0xb03   :  { %v943_v38 = vpop.permute.xlu1 %942 }
 0xb04   :  { %v3226_v63 = vadd.f32 %v943_v38, %v935_v36 }
 0xb06   :  { %2636 = vtanh.f32 %v3226_v63  ;;  %v1032_v24 = vrot.slane %v3226_v63, 6 }
 0xb07   :  { %2638 = vpow2.f32 %v2369_v48 }
 0xb0c   :  { %v2637_v37 = vpop.eup %2636 }
 0xb0d   :  { %948 = vrot.lane.b32.xlu2 %v2637_v37, %s2927_s4  ;;  %v2639_v59 = vpop.eup %2638 }
 0xb0e   :  { %v900_v3 = vadd.f32 1.0, %v2639_v59 }
 0xb10   :  { %2640 = vrcp.f32 %v900_v3  ;;  %v927_v45 = vand.u32 2147483648, %v900_v3  ;;  %vm921_vm1 = vweird.f32 %v900_v3  ;;  %v925_v46 = vand.u32 2147483647, %v900_v3 }
 0xb12   :  { %v928_v22 = vor.u32 1.1754944e-38, %v927_v45  ;;  %vm926_vm3 = vcmp.eq.f32.partialorder %v925_v46, 8.507059e+37  ;;  %v1176_v46 = vrot.slane %v3158_v28, 6 }
 0xb16   :  { %v2641_v6 = vpop.eup %2640 }
 0xb17   :  { %v917_v2 = vmul.f32 %v2641_v6, %v900_v3  ;;  %vm922_vm15 = vweird.f32 %v2641_v6 }
 0xb18   :  { %vm923_vm2 = vmor %vm921_vm1, %vm922_vm15 }
 0xb19   :  { %v918_v10 = vsub.f32 1.0, %v917_v2 }
 0xb1b   :  { %v919_v39 = vmul.f32 %v2641_v6, %v918_v10 }
 0xb1d   :  { %v920_v43 = vadd.f32 %v2641_v6, %v919_v39 }
 0xb1f   :  { %v924_v34 = vsel %vm923_vm2, %v2641_v6, %v920_v43 }
 0xb20   :  { %v929_v49 = vsel %vm926_vm3, %v928_v22, %v924_v34 }
 0xb67   :  { %v949_v23 = vpop.permute.xlu2 %948 }
 0xb68   :  { %v3232_v51 = vmul.f32 %v949_v23, %v929_v49 }
 0xb6a   :  { %v952_v53 = vpack.c.bf16 %v3232_v51, %v3232_v51  ;;  %v1174_v54 = vsel %vm1153_vm4, %v3232_v51, %v1172_v50 }
 0xb6b   :  { %v3241_v55 = vsel %vm1183_vm5, %v1170_v52, %v1174_v54 }
 0xb6c   :  { %v954_v29 = vrot.slane %v952_v53, 1 }
 0xb6e   :  { %2370 = vmatmul.msk.bf16.vlgmr.msra.gmra.mxu0 %vm196_vm0, %v954_v29  ;;  %2371 = vmatmul.msk.bf16.vlgmr.msra.gmra.mxu1 %vm196_vm0, %v954_v29 }
 0xbeb   :  { %v967_v56 = vpop.f32.mrf.mxu0  ;;  %v980_v41 = vpop.f32.mrf.mxu1 }
 0xbec   :  { %v987_v42 = vrot.slane %v980_v41, 4  ;;  %v986_v62 = vrot.slane %v967_v56, 4 }
 0xbee   :  { %v991_v44 = vadd.f32 %v987_v42, %v3097_v21  ;;  %v990_v0 = vadd.f32 %v986_v62, %v3111_v40 }
 0xbf0   :  { %2642 = vtanh.f32 %v991_v44  ;;  %v2372_v1 = vmul.f32 -1.442695, %v990_v0  ;;  %v2373_v35 = vmul.f32 -1.442695, %v991_v44 }
 0xbf2   :  { %2644 = vpow2.f32 %v2372_v1 }
 0xbf3   :  { %v969_v58 = vpop.f32.mrf.mxu0  ;;  %v982_v60 = vpop.f32.mrf.mxu1 }
 0xbf6   :  { %v2643_v61 = vpop.eup %2642 }
 0xbf7   :  { %1036 = vrot.lane.b32.xlu0 %v2643_v61, %s2927_s4 }
 0xbf8   :  { %v2645_v7 = vpop.eup %2644 }
 0xbf9   :  { %v998_v8 = vadd.f32 1.0, %v2645_v7 }
 0xbfb   :  { %2646 = vrcp.f32 %v998_v8  ;;  %v1011_v21 = vand.u32 2147483648, %v998_v8  ;;  %vm1005_vm7 = vweird.f32 %v998_v8  ;;  %v1009_v5 = vand.u32 2147483647, %v998_v8 }
 0xbfd   :  { %v1012_v4 = vor.u32 1.1754944e-38, %v1011_v21  ;;  %vm1010_vm9 = vcmp.eq.f32.partialorder %v1009_v5, 8.507059e+37  ;;  %v2440_v21 = vld [vmem:[#allocation10 + $0x38] sm:$0xf0]  ;;  %v2404_v5 = vld [vmem:[#allocation8 + $0x30] sm:$0xf] }
 0xc01   :  { %v2647_v11 = vpop.eup %2646 }
 0xc02   :  { %v1001_v13 = vmul.f32 %v2647_v11, %v998_v8  ;;  %vm1006_vm6 = vweird.f32 %v2647_v11 }
 0xc03   :  { %vm1007_vm8 = vmor %vm1005_vm7, %vm1006_vm6 }
 0xc04   :  { %v1002_v14 = vsub.f32 1.0, %v1001_v13 }
 0xc06   :  { %v1003_v15 = vmul.f32 %v2647_v11, %v1002_v14 }
 0xc08   :  { %v1004_v16 = vadd.f32 %v2647_v11, %v1003_v15 }
 0xc0a   :  { %v1008_v17 = vsel %vm1007_vm8, %v2647_v11, %v1004_v16  ;;  %v2548_v16 = vld [vmem:[#allocation10 + $0x34] sm:$0xf] }
 0xc0b   :  { %v1013_v40 = vsel %vm1010_vm9, %v1012_v4, %v1008_v17  ;;  %v2443_v17 = vor.u32 %v2548_v16, %v2440_v21  ;;  %v2541_v4 = vld [vmem:[#allocation8 + $0x34] sm:$0xf0] }
 0xc0c   :  { %v1034_v26 = vmul.f32 %v1032_v24, %v1013_v40 }
 0xc0d   :  { %1344 = vmatpush.bf16.msrb.mxu3 %v2443_v17  ;;  %v2474_v17 = vld [vmem:[#allocation11 + $0x38] sm:$0xf0] }
 0xc69   :  { %v1037_v18 = vpop.permute.xlu0 %1036 }
 0xc6a   :  { %v1039_v19 = vmul.f32 %v1037_v18, %v1013_v40  ;;  %v2540_v18 = vld [vmem:[#allocation8 + $0x34] sm:$0xf]  ;;  %v2406_v40 = vld [vmem:[#allocation8 + $0x38] sm:$0xf0] }
 0xc6b   :  { %v2409_v24 = vor.u32 %v2540_v18, %v2406_v40  ;;  %v2472_v18 = vld [vmem:[#allocation11 + $0x30] sm:$0xf]  ;;  %v2557_v40 = vld [vmem:[#allocation11 + $0x34] sm:$0xf0] }
 0xc6c   :  { %1041 = vrot.lane.b32.xlu1 %v1039_v19, %s2927_s4  ;;  %v2405_v19 = vor.u32 %v2541_v4, %v2404_v5  ;;  %v2556_v5 = vld [vmem:[#allocation11 + $0x34] sm:$0xf] }
 0xc6d   :  { %1268 = vmatpush.bf16.msrb.mxu1 %v2409_v24  ;;  %v3280_v4 = vor.u32 %v2556_v5, %v2474_v17 }
 0xc6e   :  { %1254 = vmatpush.bf16.msrb.mxu0 %v2405_v19  ;;  %v2554_v19 = vld [vmem:[#allocation11 + $0x24] sm:$0xf] }
 0xcde   :  { %v1042_v30 = vpop.permute.xlu1 %1041 }
 0xcdf   :  { %v3250_v31 = vadd.f32 %v1042_v30, %v1034_v26  ;;  %v2438_v26 = vld [vmem:[#allocation10 + $0x30] sm:$0xf]  ;;  %v2549_v30 = vld [vmem:[#allocation10 + $0x34] sm:$0xf0] }
 0xce1   :  { %2648 = vtanh.f32 %v3250_v31 }
 0xce2   :  { %2650 = vpow2.f32 %v2373_v35  ;;  %v2439_v35 = vor.u32 %v2549_v30, %v2438_v26  ;;  %v3284_v26 = vor.u32 %v2557_v40, %v2472_v18  ;;  %v2466_v30 = vld [vmem:[#allocation11 + $0x28] sm:$0xf0] }
 0xce4   :  { %1330 = vmatpush.bf16.msrb.mxu2 %v2439_v35  ;;  %v2555_v35 = vld [vmem:[#allocation11 + $0x24] sm:$0xf0] }
 0xce7   :  { %v2649_v32 = vpop.eup %2648 }
 0xce8   :  { %1047 = vrot.lane.b32.xlu2 %v2649_v32, %s2927_s4  ;;  %v2651_v36 = vpop.eup %2650  ;;  %v2546_v32 = vld [vmem:[#allocation10 + $0x24] sm:$0xf] }
 0xce9   :  { %v999_v38 = vadd.f32 1.0, %v2651_v36  ;;  %v2432_v36 = vld [vmem:[#allocation10 + $0x28] sm:$0xf0] }
 0xceb   :  { %2652 = vrcp.f32 %v999_v38  ;;  %v1026_v63 = vand.u32 2147483648, %v999_v38  ;;  %vm1020_vm11 = vweird.f32 %v999_v38  ;;  %v1024_v2 = vand.u32 2147483647, %v999_v38 }
 0xced   :  { %v1027_v39 = vor.u32 1.1754944e-38, %v1026_v63  ;;  %vm1025_vm13 = vcmp.eq.f32.partialorder %v1024_v2, 8.507059e+37  ;;  %v2430_v63 = vld [vmem:[#allocation10 + $0x20] sm:$0xf] }
 0xcf1   :  { %v2653_v37 = vpop.eup %2652 }
 0xcf2   :  { %v1016_v48 = vmul.f32 %v2653_v37, %v999_v38  ;;  %vm1021_vm10 = vweird.f32 %v2653_v37  ;;  %v2396_v38 = vld [vmem:[#allocation8 + $0x20] sm:$0xf] }
 0xcf3   :  { %vm1022_vm12 = vmor %vm1020_vm11, %vm1021_vm10  ;;  %vm1187_vm10 = vcmask 1045504  }
 0xcf4   :  { %v1017_v59 = vsub.f32 1.0, %v1016_v48  ;;  %v2435_v48 = vor.u32 %v2546_v32, %v2432_v36  ;;  %v2464_v32 = vld [vmem:[#allocation11 + $0x20] sm:$0xf]  ;;  %v3287_v36 = vor.u32 %v2554_v19, %v2466_v30 }
 0xcf6   :  { %v1018_v3 = vmul.f32 %v2653_v37, %v1017_v59  ;;  %1345 = vmatpush.bf16.msrb.mxu3 %v2435_v48  ;;  %v3290_v48 = vor.u32 %v2555_v35, %v2464_v32 }
 0xcf8   :  { %v1019_v6 = vadd.f32 %v2653_v37, %v1018_v3  ;;  %v2538_v3 = vld [vmem:[#allocation8 + $0x24] sm:$0xf] }
 0xcfa   :  { %v1023_v10 = vsel %vm1022_vm12, %v2653_v37, %v1019_v6  ;;  %v2539_v37 = vld [vmem:[#allocation8 + $0x24] sm:$0xf0]  ;;  %v2398_v6 = vld [vmem:[#allocation8 + $0x28] sm:$0xf0] }
 0xcfb   :  { %v1028_v43 = vsel %vm1025_vm13, %v1027_v39, %v1023_v10  ;;  %v2397_v59 = vor.u32 %v2539_v37, %v2396_v38  ;;  %v2401_v2 = vor.u32 %v2538_v3, %v2398_v6  ;;  %v2547_v10 = vld [vmem:[#allocation10 + $0x24] sm:$0xf0]  ;;  %v2552_v38 = vld [vmem:[#allocation11 + $0x14] sm:$0xf]  ;;  %v2458_v37 = vld [vmem:[#allocation11 + $0x18] sm:$0xf0] }
 0xcfc   :  { %v2431_v39 = vor.u32 %v2547_v10, %v2430_v63  ;;  %v2553_v3 = vld [vmem:[#allocation11 + $0x14] sm:$0xf0]  ;;  %v3294_v63 = vor.u32 %v2552_v38, %v2458_v37  ;;  %v2450_v10 = vld [vmem:[#allocation11 + $0x8] sm:$0xf0] }
 0xcfd   :  { %1255 = vmatpush.bf16.msrb.mxu0 %v2397_v59  ;;  %1269 = vmatpush.bf16.msrb.mxu1 %v2401_v2  ;;  %v2456_v59 = vld [vmem:[#allocation11 + $0x10] sm:$0xf]  ;;  %v2550_v2 = vld [vmem:[#allocation11 + $0x4] sm:$0xf] }
 0xcfe   :  { %1331 = vmatpush.bf16.msrb.mxu2 %v2431_v39  ;;  %v3298_v39 = vor.u32 %v2553_v3, %v2456_v59 }
 0xd42   :  { %v1048_v45 = vpop.permute.xlu2 %1047 }
 0xd43   :  { %v3255_v34 = vmul.f32 %v1048_v45, %v1028_v43  ;;  %v1131_v43 = vrot.slane %v3250_v31, 6  ;;  %v2390_v31 = vld [vmem:[#allocation8 + $0x18] sm:$0xf0] }
 0xd45   :  { %v1051_v22 = vpack.c.bf16 %v3255_v34, %v3255_v34  ;;  %v1178_v49 = vsel %vm1153_vm4, %v3255_v34, %v1176_v46 }
 0xd46   :  { %v3263_v23 = vsel %vm1185_vm14, %v3241_v55, %v1178_v49 }
 0xd47   :  { %v1053_v50 = vrot.slane %v1051_v22, 2 }
 0xd49   :  { %2374 = vmatmul.msk.bf16.vlgmr.msra.gmra.mxu2 %vm196_vm0, %v1053_v50  ;;  %2375 = vmatmul.msk.bf16.vlgmr.msra.gmra.mxu3 %vm196_vm0, %v1053_v50 }
 0xdcc   :  { %v1066_v47 = vpop.f32.mrf.mxu2  ;;  %v1079_v52 = vpop.f32.mrf.mxu3 }
 0xdcd   :  { %v1086_v53 = vrot.slane %v1079_v52, 2  ;;  %v1085_v55 = vrot.slane %v1066_v47, 2 }
 0xdcf   :  { %v3268_v54 = vadd.f32 %v1086_v53, %v3095_v20  ;;  %v1089_v42 = vadd.f32 %v1085_v55, %v3108_v33  ;;  %v2544_v53 = vld [vmem:[#allocation10 + $0x14] sm:$0xf]  ;;  %v2537_v55 = vld [vmem:[#allocation8 + $0x14] sm:$0xf0] }
 0xdd1   :  { %2654 = vtanh.f32 %v3268_v54  ;;  %v2376_v44 = vmul.f32 -1.442695, %v1089_v42  ;;  %v2377_v50 = vmul.f32 -1.442695, %v3268_v54  ;;  %v2536_v42 = vld [vmem:[#allocation8 + $0x14] sm:$0xf] }
 0xdd2   :  { %v2542_v54 = vld [vmem:[#allocation10 + $0x4] sm:$0xf] }
 0xdd3   :  { %2656 = vpow2.f32 %v2376_v44 }
 0xdd4   :  { %v1068_v29 = vpop.f32.mrf.mxu2  ;;  %v1081_v56 = vpop.f32.mrf.mxu3 }
 0xdd5   :  { %v2424_v29 = vld [vmem:[#allocation10 + $0x18] sm:$0xf0]  ;;  %v2388_v56 = vld [vmem:[#allocation8 + $0x10] sm:$0xf] }
 0xdd6   :  { %v2389_v44 = vor.u32 %v2537_v55, %v2388_v56 }
 0xdd7   :  { %v2655_v41 = vpop.eup %2654 }
 0xdd8   :  { %1135 = vrot.lane.b32.xlu0 %v2655_v41, %s2927_s4  ;;  %v2427_v41 = vor.u32 %v2544_v53, %v2424_v29  ;;  %1256 = vmatpush.bf16.msrb.mxu0 %v2389_v44 }
 0xdd9   :  { %v2657_v58 = vpop.eup %2656 }
 0xdda   :  { %v1097_v60 = vadd.f32 1.0, %v2657_v58  ;;  %v2393_v58 = vor.u32 %v2536_v42, %v2390_v31  ;;  %1346 = vmatpush.bf16.msrb.mxu3 %v2427_v41  ;;  %v1180_v42 = vrot.slane %v3127_v27, 2  ;;  %v1156_v31 = vrot.slane %v3255_v34, 2 }
 0xddc   :  { %2658 = vrcp.f32 %v1097_v60  ;;  %v1110_v7 = vand.u32 2147483648, %v1097_v60  ;;  %vm1104_vm1 = vweird.f32 %v1097_v60  ;;  %v1108_v8 = vand.u32 2147483647, %v1097_v60  ;;  %1270 = vmatpush.bf16.msrb.mxu1 %v2393_v58 }
 0xddd   :  { %v1160_v58 = vrot.slane %v3232_v51, 6 }
 0xdde   :  { %v1111_v13 = vor.u32 1.1754944e-38, %v1110_v7  ;;  %vm1109_vm3 = vcmp.eq.f32.partialorder %v1108_v8, 8.507059e+37  ;;  %v2535_v7 = vld [vmem:[#allocation8 + $0x4] sm:$0xf0]  ;;  %v2534_v8 = vld [vmem:[#allocation8 + $0x4] sm:$0xf] }
 0xddf   :  { %v1162_v34 = vsel %vm1153_vm4, %v3181_v25, %v1160_v58 }
 0xde2   :  { %v2659_v61 = vpop.eup %2658 }
 0xde3   :  { %v1100_v62 = vmul.f32 %v2659_v61, %v1097_v60  ;;  %vm1105_vm15 = vweird.f32 %v2659_v61  ;;  %v2422_v60 = vld [vmem:[#allocation10 + $0x10] sm:$0xf] }
 0xde4   :  { %vm1106_vm2 = vmor %vm1104_vm1, %vm1105_vm15 }
 0xde5   :  { %v1101_v0 = vsub.f32 1.0, %v1100_v62 }
 0xde7   :  { %v1102_v20 = vmul.f32 %v2659_v61, %v1101_v0  ;;  %v2416_v0 = vld [vmem:[#allocation10 + $0x8] sm:$0xf0] }
 0xde9   :  { %v1103_v1 = vadd.f32 %v2659_v61, %v1102_v20  ;;  %v2380_v20 = vld [vmem:[#allocation8] sm:$0xf] }
 0xdeb   :  { %v1107_v11 = vsel %vm1106_vm2, %v2659_v61, %v1103_v1  ;;  %v2545_v61 = vld [vmem:[#allocation10 + $0x14] sm:$0xf0]  ;;  %v2419_v1 = vor.u32 %v2542_v54, %v2416_v0  ;;  %v1158_v54 = vsel %vm1153_vm4, %v3158_v28, %v1156_v31 }
 0xdec   :  { %v1112_v33 = vsel %vm1109_vm3, %v1111_v13, %v1107_v11  ;;  %v2423_v62 = vor.u32 %v2545_v61, %v2422_v60  ;;  %v2382_v11 = vld [vmem:[#allocation8 + $0x8] sm:$0xf0]  ;;  %v2381_v13 = vor.u32 %v2535_v7, %v2380_v20 }
 0xded   :  { %v1133_v45 = vmul.f32 %v1131_v43, %v1112_v33  ;;  %1347 = vmatpush.bf16.msrb.mxu3 %v2419_v1  ;;  %v2448_v43 = vld [vmem:[#allocation11] sm:$0xf] }
 0xdee   :  { %1332 = vmatpush.bf16.msrb.mxu2 %v2423_v62  ;;  %1257 = vmatpush.bf16.msrb.mxu0 %v2381_v13 }
 0xdf1   :  { %1515 = vmatpush.bf16.msra.mxu3 %v3280_v4 }
 0xdf2   :  { %1406 = vmatpush.bf16.msra.mxu0 %v3284_v26 }
 0xdf5   :  { %1516 = vmatpush.bf16.msra.mxu3 %v3287_v36 }
 0xdf6   :  { %1407 = vmatpush.bf16.msra.mxu0 %v3290_v48 }
 0xdf9   :  { %1517 = vmatpush.bf16.msra.mxu3 %v3294_v63 }
 0xdfa   :  { %1408 = vmatpush.bf16.msra.mxu0 %v3298_v39 }
 0xe4a   :  { %v1136_v14 = vpop.permute.xlu0 %1135 }
 0xe4b   :  { %v1138_v15 = vmul.f32 %v1136_v14, %v1112_v33  ;;  %v2385_v14 = vor.u32 %v2534_v8, %v2382_v11  ;;  %v2414_v33 = vld [vmem:[#allocation10] sm:$0xf] }
 0xe4d   :  { %1140 = vrot.lane.b32.xlu1 %v1138_v15, %s2927_s4  ;;  %v2543_v15 = vld [vmem:[#allocation10 + $0x4] sm:$0xf0]  ;;  %1271 = vmatpush.bf16.msrb.mxu1 %v2385_v14 }
 0xe4e   :  { %v2415_v16 = vor.u32 %v2543_v15, %v2414_v33 }
 0xe50   :  { %1333 = vmatpush.bf16.msrb.mxu2 %v2415_v16 }
 0xe51   :  { %1419 = vmatpush.bf16.msra.mxu1 %v3280_v4 }
 0xe54   :  { %1502 = vmatpush.bf16.msra.mxu2 %v3284_v26 }
 0xe55   :  { %1420 = vmatpush.bf16.msra.mxu1 %v3287_v36 }
 0xe58   :  { %1503 = vmatpush.bf16.msra.mxu2 %v3290_v48 }
 0xe59   :  { %1421 = vmatpush.bf16.msra.mxu1 %v3294_v63 }
 0xe5c   :  { %1504 = vmatpush.bf16.msra.mxu2 %v3298_v39 }
 0xebf   :  { %v1141_v46 = vpop.permute.xlu1 %1140 }
 0xec0   :  { %v1143_v22 = vadd.f32 %v1141_v46, %v1133_v45  ;;  %v2551_v45 = vld [vmem:[#allocation11 + $0x4] sm:$0xf0] }
 0xec2   :  { %2660 = vtanh.f32 %v1143_v22  ;;  %v3302_v22 = vor.u32 %v2550_v2, %v2450_v10 }
 0xec3   :  { %2662 = vpow2.f32 %v2377_v50 }
 0xec4   :  { %1422 = vmatpush.bf16.msra.mxu1 %v3302_v22  ;;  %1518 = vmatpush.bf16.msra.mxu3 %v3302_v22 }
 0xec8   :  { %v2661_v49 = vpop.eup %2660 }
 0xec9   :  { %1146 = vrot.lane.b32.xlu2 %v2661_v49, %s2927_s4  ;;  %v2663_v47 = vpop.eup %2662  ;;  %v3306_v49 = vor.u32 %v2551_v45, %v2448_v43 }
 0xeca   :  { %v3277_v52 = vadd.f32 1.0, %v2663_v47 }
 0xecb   :  { %1409 = vmatpush.bf16.msra.mxu0 %v3306_v49  ;;  %1505 = vmatpush.bf16.msra.mxu2 %v3306_v49 }
 0xecc   :  { %2664 = vrcp.f32 %v3277_v52  ;;  %v1125_v47 = vand.u32 2147483648, %v3277_v52  ;;  %vm1119_vm7 = vweird.f32 %v3277_v52  ;;  %v1123_v53 = vand.u32 2147483647, %v3277_v52 }
 0xece   :  { %v1126_v56 = vor.u32 1.1754944e-38, %v1125_v47  ;;  %vm1124_vm9 = vcmp.eq.f32.partialorder %v1123_v53, 8.507059e+37 }
 0xed2   :  { %v2665_v21 = vpop.eup %2664 }
 0xed3   :  { %v1115_v24 = vmul.f32 %v2665_v21, %v3277_v52  ;;  %vm1120_vm6 = vweird.f32 %v2665_v21  ;;  %v1164_v52 = vrot.slane %v3215_v57, 2 }
 0xed4   :  { %vm1121_vm8 = vmor %vm1119_vm7, %vm1120_vm6 }
 0xed5   :  { %v1116_v6 = vsub.f32 1.0, %v1115_v24  ;;  %v1166_v51 = vsel %vm1153_vm4, %v3201_v12, %v1164_v52 }
 0xed7   :  { %v1117_v46 = vmul.f32 %v2665_v21, %v1116_v6 }
 0xed9   :  { %v1118_v50 = vadd.f32 %v2665_v21, %v1117_v46 }
 0xedb   :  { %v1122_v29 = vsel %vm1121_vm8, %v2665_v21, %v1118_v50 }
 0xedc   :  { %v1127_v41 = vsel %vm1124_vm9, %v1126_v56, %v1122_v29 }
 0xf23   :  { %v1147_v55 = vpop.permute.xlu2 %1146 }
 0xf24   :  { %v1149_v44 = vmul.f32 %v1147_v55, %v1127_v41 }
 0xf26   :  { %v1151_v60 = vrot.slane %v1149_v44, 6  ;;  %v1182_v61 = vsel %vm1153_vm4, %v1149_v44, %v1180_v42 }
 0xf27   :  { %v1191_v62 = vsel %vm1187_vm10, %v3263_v23, %v1182_v61 }
 0xf28   :  { %v1154_v0 = vsel %vm1153_vm4, %v3127_v27, %v1151_v60 }
 0xf29   :  { %v1184_v20 = vsel %vm1183_vm5, %v1154_v0, %v1158_v54 }
 0xf2a   :  { %v1186_v57 = vsel %vm1185_vm14, %v1184_v20, %v1162_v34 }
 0xf2b   :  { %v1188_v1 = vsel %vm1187_vm10, %v1186_v57, %v1166_v51 }
 0xf2c   :  { %v1192_v7 = vpack.c.bf16 %v1191_v62, %v1188_v1 }
 0xf2e   :  { %2410 = vmatmul.msk.bf16.vlgmr.msrb.gmra.mxu0 %vm196_vm0, %v1192_v7  ;;  %2411 = vmatmul.msk.bf16.vlgmr.msrb.gmra.mxu1 %vm196_vm0, %v1192_v7 }
 0xf2f   :  { %2444 = vmatmul.msk.bf16.vlgmr.msrb.gmra.mxu2 %vm196_vm0, %v1192_v7  ;;  %2445 = vmatmul.msk.bf16.vlgmr.msrb.gmra.mxu3 %vm196_vm0, %v1192_v7 }
 0xf30   :  { %1620 = vmatpush.bf16.msrb.mxu1 %v3280_v4  ;;  %1607 = vmatpush.bf16.msrb.mxu0 %v3284_v26 }
 0xf31   :  { %1719 = vmatpush.bf16.msrb.mxu3 %v3280_v4  ;;  %1706 = vmatpush.bf16.msrb.mxu2 %v3284_v26 }
 0xf34   :  { %1621 = vmatpush.bf16.msrb.mxu1 %v3287_v36  ;;  %1608 = vmatpush.bf16.msrb.mxu0 %v3290_v48 }
 0xf35   :  { %1720 = vmatpush.bf16.msrb.mxu3 %v3287_v36  ;;  %1707 = vmatpush.bf16.msrb.mxu2 %v3290_v48 }
 0xf38   :  { %1622 = vmatpush.bf16.msrb.mxu1 %v3294_v63  ;;  %1609 = vmatpush.bf16.msrb.mxu0 %v3298_v39 }
 0xf39   :  { %1721 = vmatpush.bf16.msrb.mxu3 %v3294_v63  ;;  %1708 = vmatpush.bf16.msrb.mxu2 %v3298_v39 }
 0xf3c   :  { %1623 = vmatpush.bf16.msrb.mxu1 %v3302_v22  ;;  %1610 = vmatpush.bf16.msrb.mxu0 %v3306_v49 }
 0xf3d   :  { %1722 = vmatpush.bf16.msrb.mxu3 %v3302_v22  ;;  %1709 = vmatpush.bf16.msrb.mxu2 %v3306_v49 }
 0xf3e   :  { %1423 = vmatmul.bf16.vlgmr.msra.gmra.mxu1 %v2926_v9  ;;  %1410 = vmatmul.bf16.vlgmr.msra.gmra.mxu0 %v2926_v9  ;;  %v1201_v9 = vld [vmem:[%s3519_s8] sm:$0x3] }
 0xf3f   :  { %v1203_v25 = vperm.slane %v1201_v9, 0  ;;  %v1204_v12 = vperm.slane %v1201_v9, 1 }
 0xf40   :  { %1818 = vmatpush.bf16.msra.mxu1 %v3280_v4  ;;  %1805 = vmatpush.bf16.msra.mxu0 %v3284_v26 }
 0xf44   :  { %1819 = vmatpush.bf16.msra.mxu1 %v3287_v36  ;;  %1806 = vmatpush.bf16.msra.mxu0 %v3290_v48 }
 0xf48   :  { %1820 = vmatpush.bf16.msra.mxu1 %v3294_v63  ;;  %1807 = vmatpush.bf16.msra.mxu0 %v3298_v39 }
 0xf4c   :  { %1821 = vmatpush.bf16.msra.mxu1 %v3302_v22  ;;  %1808 = vmatpush.bf16.msra.mxu0 %v3306_v49 }
 0xfab   :  { %v1259_v27 = vpop.f32.mrf.mxu0  ;;  %v1273_v28 = vpop.f32.mrf.mxu1 }
 0xfac   :  { %v3375_v30 = vadd.f32 %v1273_v28, %v1204_v12  ;;  %v3386_v45 = vadd.f32 %v1259_v27, %v1203_v25 }
 0xfb2   :  { %v1335_v23 = vpop.f32.mrf.mxu2  ;;  %v1349_v8 = vpop.f32.mrf.mxu3 }
 0xfb3   :  { %v1829_v11 = vrot.slane %v1335_v23, 6  ;;  %v1926_v13 = vrot.slane %v1335_v23, 2  ;;  %v1261_v14 = vpop.f32.mrf.mxu0  ;;  %v1275_v33 = vpop.f32.mrf.mxu1  ;;  %v1830_v15 = vrot.slane %v1349_v8, 6  ;;  %v1927_v16 = vrot.slane %v1349_v8, 2 }
 0xfb4   :  { %v1262_v21 = vadd.f32 %v1261_v14, %v1203_v25  ;;  %v1276_v5 = vadd.f32 %v1275_v33, %v1204_v12 }
 0xfb6   :  { %v3365_v17 = vadd.f32 %v1926_v13, %v1262_v21  ;;  %v3367_v18 = vadd.f32 %v1927_v16, %v1276_v5  ;;  %v3369_v40 = vadd.f32 %v1829_v11, %v1262_v21  ;;  %v3371_v19 = vadd.f32 %v1830_v15, %v1276_v5 }
 0xfba   :  { %v3373_v24 = vpop.f32.mrf.mxu3  ;;  %v3383_v10 = vpop.f32.mrf.mxu2 }
 0xfbb   :  { %v1431_v32 = vrot.slane %v3373_v24, 6  ;;  %v1424_v35 = vpop.f32.mrf.mxu1  ;;  %v1411_v38 = vpop.f32.mrf.mxu0  ;;  %v1430_v43 = vrot.slane %v3383_v10, 6  ;;  %v1525_v21 = vrot.slane %v3373_v24, 2 }
 0xfbd   :  { %v3379_v37 = vadd.f32 %v1431_v32, %v3375_v30  ;;  %v3389_v46 = vadd.f32 %v1430_v43, %v3386_v45  ;;  %v1524_v43 = vrot.slane %v3383_v10, 2 }
 0xfbf   :  { %v1437_v59 = vadd.f32 %v3379_v37, %v1424_v35  ;;  %v1436_v50 = vadd.f32 %v3389_v46, %v1411_v38  ;;  %v3413_v35 = vadd.f32 %v1525_v21, %v3375_v30 }
 0xfc1   :  { %2666 = vtanh.f32 %v1437_v59  ;;  %v2478_v47 = vmul.f32 -1.442695, %v1436_v50  ;;  %v2479_v57 = vmul.f32 -1.442695, %v1437_v59 }
 0xfc3   :  { %v1426_v3 = vpop.f32.mrf.mxu1  ;;  %v1413_v6 = vpop.f32.mrf.mxu0  ;;  %2668 = vpow2.f32 %v2478_v47  ;;  %v3419_v47 = vadd.f32 %v1524_v43, %v3386_v45 }
 0xfc7   :  { %v2667_v2 = vpop.eup %2666 }
 0xfc8   :  { %1479 = vrot.lane.b32.xlu0 %v2667_v2, %s2927_s4 }
 0xfc9   :  { %v2669_v53 = vpop.eup %2668 }
 0xfca   :  { %v1444_v29 = vadd.f32 1.0, %v2669_v53 }
 0xfcc   :  { %2670 = vrcp.f32 %v1444_v29  ;;  %v1457_v44 = vand.u32 2147483648, %v1444_v29  ;;  %vm1451_vm11 = vweird.f32 %v1444_v29  ;;  %v1455_v58 = vand.u32 2147483647, %v1444_v29 }
 0xfce   :  { %v1458_v60 = vor.u32 1.1754944e-38, %v1457_v44  ;;  %vm1456_vm13 = vcmp.eq.f32.partialorder %v1455_v58, 8.507059e+37 }
 0xfd2   :  { %v2671_v56 = vpop.eup %2670 }
 0xfd3   :  { %v1447_v41 = vmul.f32 %v2671_v56, %v1444_v29  ;;  %vm1452_vm5 = vweird.f32 %v2671_v56 }
 0xfd4   :  { %vm1453_vm12 = vmor %vm1451_vm11, %vm1452_vm5 }
 0xfd5   :  { %v1448_v55 = vsub.f32 1.0, %v1447_v41 }
 0xfd7   :  { %v1449_v42 = vmul.f32 %v2671_v56, %v1448_v55 }
 0xfd9   :  { %v1450_v31 = vadd.f32 %v2671_v56, %v1449_v42 }
 0xfdb   :  { %v1454_v52 = vsel %vm1453_vm12, %v2671_v56, %v1450_v31 }
 0xfdc   :  { %v1459_v62 = vsel %vm1456_vm13, %v1458_v60, %v1454_v52 }
 0xfdd   :  { %v1477_v0 = vmul.f32 0.0, %v1459_v62 }
0x103a   :  { %v1480_v61 = vpop.permute.xlu0 %1479 }
0x103b   :  { %v1482_v54 = vmul.f32 %v1480_v61, %v1459_v62 }
0x103d   :  { %1484 = vrot.lane.b32.xlu1 %v1482_v54, %s2927_s4 }
0x10af   :  { %v1485_v34 = vpop.permute.xlu1 %1484 }
0x10b0   :  { %v3393_v20 = vadd.f32 %v1485_v34, %v1477_v0 }
0x10b2   :  { %2672 = vtanh.f32 %v3393_v20  ;;  %v1578_v62 = vrot.slane %v3393_v20, 6 }
0x10b3   :  { %2674 = vpow2.f32 %v2479_v57 }
0x10b8   :  { %v2673_v51 = vpop.eup %2672 }
0x10b9   :  { %1490 = vrot.lane.b32.xlu2 %v2673_v51, %s2927_s4  ;;  %v2675_v1 = vpop.eup %2674 }
0x10ba   :  { %v1445_v7 = vadd.f32 1.0, %v2675_v1 }
0x10bc   :  { %2676 = vrcp.f32 %v1445_v7  ;;  %v1472_v23 = vand.u32 2147483648, %v1445_v7  ;;  %vm1466_vm15 = vweird.f32 %v1445_v7  ;;  %v1470_v8 = vand.u32 2147483647, %v1445_v7 }
0x10be   :  { %v1473_v13 = vor.u32 1.1754944e-38, %v1472_v23  ;;  %vm1471_vm2 = vcmp.eq.f32.partialorder %v1470_v8, 8.507059e+37 }
0x10c2   :  { %v2677_v27 = vpop.eup %2676 }
0x10c3   :  { %v1462_v28 = vmul.f32 %v2677_v27, %v1445_v7  ;;  %vm1467_vm14 = vweird.f32 %v2677_v27 }
0x10c4   :  { %vm1468_vm1 = vmor %vm1466_vm15, %vm1467_vm14 }
0x10c5   :  { %v1463_v9 = vsub.f32 1.0, %v1462_v28 }
0x10c7   :  { %v1464_v25 = vmul.f32 %v2677_v27, %v1463_v9 }
0x10c9   :  { %v1465_v12 = vadd.f32 %v2677_v27, %v1464_v25 }
0x10cb   :  { %v1469_v11 = vsel %vm1468_vm1, %v2677_v27, %v1465_v12 }
0x10cc   :  { %v1474_v14 = vsel %vm1471_vm2, %v1473_v13, %v1469_v11 }
0x1113   :  { %v1491_v33 = vpop.permute.xlu2 %1490 }
0x1114   :  { %v3397_v15 = vmul.f32 %v1491_v33, %v1474_v14 }
0x1116   :  { %v1494_v16 = vpack.c.bf16 %v3397_v15, %v3397_v15 }
0x1118   :  { %2480 = vmatmul.msk.bf16.vlgmr.msra.gmra.mxu2 %vm196_vm0, %v1494_v16  ;;  %2481 = vmatmul.msk.bf16.vlgmr.msra.gmra.mxu3 %vm196_vm0, %v1494_v16 }
0x1119   :  { %1917 = vmatpush.bf16.msra.mxu3 %v3280_v4  ;;  %1904 = vmatpush.bf16.msra.mxu2 %v3284_v26 }
0x111d   :  { %1918 = vmatpush.bf16.msra.mxu3 %v3287_v36  ;;  %1905 = vmatpush.bf16.msra.mxu2 %v3290_v48 }
0x1121   :  { %1919 = vmatpush.bf16.msra.mxu3 %v3294_v63  ;;  %1906 = vmatpush.bf16.msra.mxu2 %v3298_v39 }
0x1125   :  { %1920 = vmatpush.bf16.msra.mxu3 %v3302_v22  ;;  %1907 = vmatpush.bf16.msra.mxu2 %v3306_v49 }
0x119b   :  { %v1507_v5 = vpop.f32.mrf.mxu2  ;;  %v1520_v32 = vpop.f32.mrf.mxu3 }
0x119c   :  { %v1533_v38 = vrot.slane %v1520_v32, 6  ;;  %v1532_v50 = vrot.slane %v1507_v5, 6 }
0x119e   :  { %v1537_v59 = vadd.f32 %v1533_v38, %v3413_v35  ;;  %v1536_v24 = vadd.f32 %v1532_v50, %v3419_v47 }
0x11a0   :  { %2678 = vtanh.f32 %v1537_v59  ;;  %v2482_v53 = vmul.f32 -1.442695, %v1536_v24  ;;  %v2483_v57 = vmul.f32 -1.442695, %v1537_v59 }
0x11a2   :  { %2680 = vpow2.f32 %v2482_v53 }
0x11a3   :  { %v1509_v3 = vpop.f32.mrf.mxu2  ;;  %v1522_v6 = vpop.f32.mrf.mxu3 }
0x11a6   :  { %v2679_v2 = vpop.eup %2678 }
0x11a7   :  { %1582 = vrot.lane.b32.xlu0 %v2679_v2, %s2927_s4 }
0x11a8   :  { %v2681_v30 = vpop.eup %2680 }
0x11a9   :  { %v1544_v29 = vadd.f32 1.0, %v2681_v30 }
0x11ab   :  { %2682 = vrcp.f32 %v1544_v29  ;;  %v1557_v44 = vand.u32 2147483648, %v1544_v29  ;;  %vm1551_vm6 = vweird.f32 %v1544_v29  ;;  %v1555_v10 = vand.u32 2147483647, %v1544_v29 }
0x11ad   :  { %v1558_v45 = vor.u32 1.1754944e-38, %v1557_v44  ;;  %vm1556_vm8 = vcmp.eq.f32.partialorder %v1555_v10, 8.507059e+37 }
0x11b1   :  { %v2683_v56 = vpop.eup %2682 }
0x11b2   :  { %v1547_v41 = vmul.f32 %v2683_v56, %v1544_v29  ;;  %vm1552_vm3 = vweird.f32 %v2683_v56 }
0x11b3   :  { %vm1553_vm7 = vmor %vm1551_vm6, %vm1552_vm3 }
0x11b4   :  { %v1548_v55 = vsub.f32 1.0, %v1547_v41 }
0x11b6   :  { %v1549_v42 = vmul.f32 %v2683_v56, %v1548_v55 }
0x11b8   :  { %v1550_v31 = vadd.f32 %v2683_v56, %v1549_v42 }
0x11ba   :  { %v1554_v58 = vsel %vm1553_vm7, %v2683_v56, %v1550_v31 }
0x11bb   :  { %v1559_v60 = vsel %vm1556_vm8, %v1558_v45, %v1554_v58 }
0x11bc   :  { %v1580_v54 = vmul.f32 %v1578_v62, %v1559_v60 }
0x1219   :  { %v1583_v52 = vpop.permute.xlu0 %1582 }
0x121a   :  { %v1585_v61 = vmul.f32 %v1583_v52, %v1559_v60 }
0x121c   :  { %1587 = vrot.lane.b32.xlu1 %v1585_v61, %s2927_s4 }
0x128e   :  { %v1588_v0 = vpop.permute.xlu1 %1587 }
0x128f   :  { %v3424_v34 = vadd.f32 %v1588_v0, %v1580_v54 }
0x1291   :  { %2684 = vtanh.f32 %v3424_v34  ;;  %v1677_v52 = vrot.slane %v3424_v34, 6 }
0x1292   :  { %2686 = vpow2.f32 %v2483_v57 }
0x1297   :  { %v2685_v51 = vpop.eup %2684 }
0x1298   :  { %1593 = vrot.lane.b32.xlu2 %v2685_v51, %s2927_s4  ;;  %v2687_v1 = vpop.eup %2686 }
0x1299   :  { %v1545_v7 = vadd.f32 1.0, %v2687_v1 }
0x129b   :  { %2688 = vrcp.f32 %v1545_v7  ;;  %v1572_v20 = vand.u32 2147483648, %v1545_v7  ;;  %vm1566_vm10 = vweird.f32 %v1545_v7  ;;  %v1570_v23 = vand.u32 2147483647, %v1545_v7 }
0x129d   :  { %v1573_v11 = vor.u32 1.1754944e-38, %v1572_v20  ;;  %vm1571_vm11 = vcmp.eq.f32.partialorder %v1570_v23, 8.507059e+37 }
0x12a1   :  { %v2689_v27 = vpop.eup %2688 }
0x12a2   :  { %v1562_v28 = vmul.f32 %v2689_v27, %v1545_v7  ;;  %vm1567_vm9 = vweird.f32 %v2689_v27 }
0x12a3   :  { %vm1568_vm5 = vmor %vm1566_vm10, %vm1567_vm9 }
0x12a4   :  { %v1563_v9 = vsub.f32 1.0, %v1562_v28 }
0x12a6   :  { %v1564_v25 = vmul.f32 %v2689_v27, %v1563_v9 }
0x12a8   :  { %v1565_v12 = vadd.f32 %v2689_v27, %v1564_v25 }
0x12aa   :  { %v1569_v8 = vsel %vm1568_vm5, %v2689_v27, %v1565_v12 }
0x12ab   :  { %v1574_v13 = vsel %vm1571_vm11, %v1573_v11, %v1569_v8 }
0x12f2   :  { %v1594_v14 = vpop.permute.xlu2 %1593 }
0x12f3   :  { %v1596_v33 = vmul.f32 %v1594_v14, %v1574_v13 }
0x12f5   :  { %v1597_v16 = vpack.c.bf16 %v1596_v33, %v1596_v33 }
0x12f7   :  { %v1599_v21 = vrot.slane %v1597_v16, 1 }
0x12f9   :  { %2484 = vmatmul.msk.bf16.vlgmr.msrb.gmra.mxu0 %vm196_vm0, %v1599_v21  ;;  %2485 = vmatmul.msk.bf16.vlgmr.msrb.gmra.mxu1 %vm196_vm0, %v1599_v21 }
0x12fa   :  { %2022 = vmatpush.bf16.msrb.mxu1 %v3280_v4  ;;  %2009 = vmatpush.bf16.msrb.mxu0 %v3284_v26 }
0x12fe   :  { %2023 = vmatpush.bf16.msrb.mxu1 %v3287_v36  ;;  %2010 = vmatpush.bf16.msrb.mxu0 %v3290_v48 }
0x1302   :  { %2024 = vmatpush.bf16.msrb.mxu1 %v3294_v63  ;;  %2011 = vmatpush.bf16.msrb.mxu0 %v3298_v39 }
0x1306   :  { %2025 = vmatpush.bf16.msrb.mxu1 %v3302_v22  ;;  %2012 = vmatpush.bf16.msrb.mxu0 %v3306_v49 }
0x1376   :  { %v1612_v5 = vpop.f32.mrf.mxu0  ;;  %v1625_v32 = vpop.f32.mrf.mxu1 }
0x1377   :  { %v1632_v38 = vrot.slane %v1625_v32, 4  ;;  %v1631_v43 = vrot.slane %v1612_v5, 4 }
0x1379   :  { %v1636_v59 = vadd.f32 %v1632_v38, %v3379_v37  ;;  %v1635_v50 = vadd.f32 %v1631_v43, %v3389_v46 }
0x137b   :  { %2690 = vtanh.f32 %v1636_v59  ;;  %v2486_v24 = vmul.f32 -1.442695, %v1635_v50  ;;  %v2487_v0 = vmul.f32 -1.442695, %v1636_v59 }
0x137d   :  { %2692 = vpow2.f32 %v2486_v24 }
0x137e   :  { %v1614_v3 = vpop.f32.mrf.mxu0  ;;  %v1627_v6 = vpop.f32.mrf.mxu1 }
0x1381   :  { %v2691_v2 = vpop.eup %2690 }
0x1382   :  { %1681 = vrot.lane.b32.xlu0 %v2691_v2, %s2927_s4 }
0x1383   :  { %v2693_v53 = vpop.eup %2692 }
0x1384   :  { %v1643_v30 = vadd.f32 1.0, %v2693_v53 }
0x1386   :  { %2694 = vrcp.f32 %v1643_v30  ;;  %v1656_v37 = vand.u32 2147483648, %v1643_v30  ;;  %vm1650_vm13 = vweird.f32 %v1643_v30  ;;  %v1654_v31 = vand.u32 2147483647, %v1643_v30 }
0x1388   :  { %v1657_v10 = vor.u32 1.1754944e-38, %v1656_v37  ;;  %vm1655_vm15 = vcmp.eq.f32.partialorder %v1654_v31, 8.507059e+37 }
0x138c   :  { %v2695_v29 = vpop.eup %2694 }
0x138d   :  { %v1646_v56 = vmul.f32 %v2695_v29, %v1643_v30  ;;  %vm1651_vm12 = vweird.f32 %v2695_v29 }
0x138e   :  { %vm1652_vm14 = vmor %vm1650_vm13, %vm1651_vm12 }
0x138f   :  { %v1647_v41 = vsub.f32 1.0, %v1646_v56 }
0x1391   :  { %v1648_v55 = vmul.f32 %v2695_v29, %v1647_v41 }
0x1393   :  { %v1649_v42 = vadd.f32 %v2695_v29, %v1648_v55 }
0x1395   :  { %v1653_v44 = vsel %vm1652_vm14, %v2695_v29, %v1649_v42 }
0x1396   :  { %v1658_v46 = vsel %vm1655_vm15, %v1657_v10, %v1653_v44 }
0x1397   :  { %v1679_v60 = vmul.f32 %v1677_v52, %v1658_v46 }
0x13f4   :  { %v1682_v58 = vpop.permute.xlu0 %1681 }
0x13f5   :  { %v1684_v45 = vmul.f32 %v1682_v58, %v1658_v46 }
0x13f7   :  { %1686 = vrot.lane.b32.xlu1 %v1684_v45, %s2927_s4 }
0x1469   :  { %v1687_v61 = vpop.permute.xlu1 %1686 }
0x146a   :  { %v3443_v62 = vadd.f32 %v1687_v61, %v1679_v60 }
0x146c   :  { %2696 = vtanh.f32 %v3443_v62  ;;  %v1776_v30 = vrot.slane %v3443_v62, 6 }
0x146d   :  { %2698 = vpow2.f32 %v2487_v0 }
0x1472   :  { %v2697_v54 = vpop.eup %2696 }
0x1473   :  { %1692 = vrot.lane.b32.xlu2 %v2697_v54, %s2927_s4  ;;  %v2699_v51 = vpop.eup %2698 }
0x1474   :  { %v1644_v57 = vadd.f32 1.0, %v2699_v51 }
0x1476   :  { %2700 = vrcp.f32 %v1644_v57  ;;  %v1671_v34 = vand.u32 2147483648, %v1644_v57  ;;  %vm1665_vm2 = vweird.f32 %v1644_v57  ;;  %v1669_v25 = vand.u32 2147483647, %v1644_v57 }
0x1478   :  { %v1672_v20 = vor.u32 1.1754944e-38, %v1671_v34  ;;  %vm1670_vm6 = vcmp.eq.f32.partialorder %v1669_v25, 8.507059e+37 }
0x147c   :  { %v2701_v1 = vpop.eup %2700 }
0x147d   :  { %v1661_v7 = vmul.f32 %v2701_v1, %v1644_v57  ;;  %vm1666_vm1 = vweird.f32 %v2701_v1 }
0x147e   :  { %vm1667_vm3 = vmor %vm1665_vm2, %vm1666_vm1 }
0x147f   :  { %v1662_v27 = vsub.f32 1.0, %v1661_v7 }
0x1481   :  { %v1663_v28 = vmul.f32 %v2701_v1, %v1662_v27 }
0x1483   :  { %v1664_v9 = vadd.f32 %v2701_v1, %v1663_v28 }
0x1485   :  { %v1668_v12 = vsel %vm1667_vm3, %v2701_v1, %v1664_v9 }
0x1486   :  { %v1673_v23 = vsel %vm1670_vm6, %v1672_v20, %v1668_v12 }
0x14cd   :  { %v1693_v8 = vpop.permute.xlu2 %1692 }
0x14ce   :  { %v1695_v11 = vmul.f32 %v1693_v8, %v1673_v23 }
0x14d0   :  { %v1696_v13 = vpack.c.bf16 %v1695_v11, %v1695_v11 }
0x14d2   :  { %v1698_v14 = vrot.slane %v1696_v13, 2 }
0x14d4   :  { %2488 = vmatmul.msk.bf16.vlgmr.msrb.gmra.mxu2 %vm196_vm0, %v1698_v14  ;;  %2489 = vmatmul.msk.bf16.vlgmr.msrb.gmra.mxu3 %vm196_vm0, %v1698_v14 }
0x14d5   :  { %2121 = vmatpush.bf16.msrb.mxu3 %v3280_v4  ;;  %2108 = vmatpush.bf16.msrb.mxu2 %v3284_v26 }
0x14d9   :  { %2122 = vmatpush.bf16.msrb.mxu3 %v3287_v36  ;;  %2109 = vmatpush.bf16.msrb.mxu2 %v3290_v48 }
0x14dd   :  { %2123 = vmatpush.bf16.msrb.mxu3 %v3294_v63  ;;  %2110 = vmatpush.bf16.msrb.mxu2 %v3298_v39 }
0x14e1   :  { %2124 = vmatpush.bf16.msrb.mxu3 %v3302_v22  ;;  %2111 = vmatpush.bf16.msrb.mxu2 %v3306_v49 }
0x1557   :  { %v1711_v33 = vpop.f32.mrf.mxu2  ;;  %v1724_v16 = vpop.f32.mrf.mxu3 }
0x1558   :  { %v1731_v21 = vrot.slane %v1724_v16, 2  ;;  %v1730_v36 = vrot.slane %v1711_v33, 2 }
0x155a   :  { %v1735_v5 = vadd.f32 %v1731_v21, %v3413_v35  ;;  %v1734_v48 = vadd.f32 %v1730_v36, %v3419_v47 }
0x155c   :  { %2702 = vtanh.f32 %v1735_v5  ;;  %v2490_v63 = vmul.f32 -1.442695, %v1734_v48  ;;  %v2491_v42 = vmul.f32 -1.442695, %v1735_v5 }
0x155e   :  { %2704 = vpow2.f32 %v2490_v63 }
0x155f   :  { %v1713_v4 = vpop.f32.mrf.mxu2  ;;  %v1726_v26 = vpop.f32.mrf.mxu3 }
0x1562   :  { %v2703_v32 = vpop.eup %2702 }
0x1563   :  { %1780 = vrot.lane.b32.xlu0 %v2703_v32, %s2927_s4 }
0x1564   :  { %v2705_v39 = vpop.eup %2704 }
0x1565   :  { %v1742_v22 = vadd.f32 1.0, %v2705_v39 }
0x1567   :  { %2706 = vrcp.f32 %v1742_v22  ;;  %v1755_v35 = vand.u32 2147483648, %v1742_v22  ;;  %vm1749_vm8 = vweird.f32 %v1742_v22  ;;  %v1753_v2 = vand.u32 2147483647, %v1742_v22 }
0x1569   :  { %v1756_v50 = vor.u32 1.1754944e-38, %v1755_v35  ;;  %vm1754_vm10 = vcmp.eq.f32.partialorder %v1753_v2, 8.507059e+37 }
0x156d   :  { %v2707_v49 = vpop.eup %2706 }
0x156e   :  { %v1745_v38 = vmul.f32 %v2707_v49, %v1742_v22  ;;  %vm1750_vm7 = vweird.f32 %v2707_v49 }
0x156f   :  { %vm1751_vm9 = vmor %vm1749_vm8, %vm1750_vm7 }
0x1570   :  { %v1746_v59 = vsub.f32 1.0, %v1745_v38 }
0x1572   :  { %v1747_v3 = vmul.f32 %v2707_v49, %v1746_v59 }
0x1574   :  { %v1748_v6 = vadd.f32 %v2707_v49, %v1747_v3 }
0x1576   :  { %v1752_v43 = vsel %vm1751_vm9, %v2707_v49, %v1748_v6 }
0x1577   :  { %v1757_v47 = vsel %vm1754_vm10, %v1756_v50, %v1752_v43 }
0x1578   :  { %v1778_v29 = vmul.f32 %v1776_v30, %v1757_v47 }
0x15d5   :  { %v1781_v24 = vpop.permute.xlu0 %1780 }
0x15d6   :  { %v1783_v53 = vmul.f32 %v1781_v24, %v1757_v47 }
0x15d8   :  { %1785 = vrot.lane.b32.xlu1 %v1783_v53, %s2927_s4 }
0x164a   :  { %v1786_v56 = vpop.permute.xlu1 %1785 }
0x164b   :  { %v1788_v41 = vadd.f32 %v1786_v56, %v1778_v29 }
0x164d   :  { %2708 = vtanh.f32 %v1788_v41  ;;  %v1877_v63 = vrot.slane %v1788_v41, 6 }
0x164e   :  { %2710 = vpow2.f32 %v2491_v42 }
0x1653   :  { %v2709_v55 = vpop.eup %2708 }
0x1654   :  { %1791 = vrot.lane.b32.xlu2 %v2709_v55, %s2927_s4  ;;  %v2711_v37 = vpop.eup %2710 }
0x1655   :  { %v1743_v31 = vadd.f32 1.0, %v2711_v37 }
0x1657   :  { %2712 = vrcp.f32 %v1743_v31  ;;  %v1770_v52 = vand.u32 2147483648, %v1743_v31  ;;  %vm1764_vm11 = vweird.f32 %v1743_v31  ;;  %v1768_v60 = vand.u32 2147483647, %v1743_v31 }
0x1659   :  { %v1771_v62 = vor.u32 1.1754944e-38, %v1770_v52  ;;  %vm1769_vm13 = vcmp.eq.f32.partialorder %v1768_v60, 8.507059e+37 }
0x165d   :  { %v2713_v44 = vpop.eup %2712 }
0x165e   :  { %v1760_v10 = vmul.f32 %v2713_v44, %v1743_v31  ;;  %vm1765_vm5 = vweird.f32 %v2713_v44 }
0x165f   :  { %vm1766_vm12 = vmor %vm1764_vm11, %vm1765_vm5 }
0x1660   :  { %v1761_v58 = vsub.f32 1.0, %v1760_v10 }
0x1662   :  { %v1762_v46 = vmul.f32 %v2713_v44, %v1761_v58 }
0x1664   :  { %v1763_v45 = vadd.f32 %v2713_v44, %v1762_v46 }
0x1666   :  { %v1767_v61 = vsel %vm1766_vm12, %v2713_v44, %v1763_v45 }
0x1667   :  { %v1772_v54 = vsel %vm1769_vm13, %v1771_v62, %v1767_v61 }
0x16ae   :  { %v1792_v0 = vpop.permute.xlu2 %1791 }
0x16af   :  { %v1794_v51 = vmul.f32 %v1792_v0, %v1772_v54 }
0x16b1   :  { %v1795_v57 = vpack.c.bf16 %v1794_v51, %v1794_v51 }
0x16b3   :  { %v1797_v1 = vrot.slane %v1795_v57, 3 }
0x16b5   :  { %2492 = vmatmul.msk.bf16.vlgmr.msra.gmra.mxu0 %vm196_vm0, %v1797_v1  ;;  %2493 = vmatmul.msk.bf16.vlgmr.msra.gmra.mxu1 %vm196_vm0, %v1797_v1 }
0x1732   :  { %v1810_v7 = vpop.f32.mrf.mxu0  ;;  %v1823_v27 = vpop.f32.mrf.mxu1 }
0x1733   :  { %v1836_v28 = vadd.f32 %v3371_v19, %v1823_v27  ;;  %v1835_v12 = vadd.f32 %v3369_v40, %v1810_v7 }
0x1735   :  { %2714 = vtanh.f32 %v1836_v28  ;;  %v2494_v20 = vmul.f32 -1.442695, %v1835_v12  ;;  %v2495_v59 = vmul.f32 -1.442695, %v1836_v28 }
0x1737   :  { %2716 = vpow2.f32 %v2494_v20 }
0x173a   :  { %v1812_v9 = vpop.f32.mrf.mxu0  ;;  %v1825_v34 = vpop.f32.mrf.mxu1 }
0x173b   :  { %v2715_v25 = vpop.eup %2714 }
0x173c   :  { %1881 = vrot.lane.b32.xlu0 %v2715_v25, %s2927_s4 }
0x173d   :  { %v2717_v23 = vpop.eup %2716 }
0x173e   :  { %v1843_v8 = vadd.f32 1.0, %v2717_v23 }
0x1740   :  { %2718 = vrcp.f32 %v1843_v8  ;;  %v1856_v21 = vand.u32 2147483648, %v1843_v8  ;;  %vm1850_vm15 = vweird.f32 %v1843_v8  ;;  %v1854_v5 = vand.u32 2147483647, %v1843_v8 }
0x1742   :  { %v1857_v26 = vor.u32 1.1754944e-38, %v1856_v21  ;;  %vm1855_vm2 = vcmp.eq.f32.partialorder %v1854_v5, 8.507059e+37 }
0x1746   :  { %v2719_v11 = vpop.eup %2718 }
0x1747   :  { %v1846_v13 = vmul.f32 %v2719_v11, %v1843_v8  ;;  %vm1851_vm14 = vweird.f32 %v2719_v11 }
0x1748   :  { %vm1852_vm1 = vmor %vm1850_vm15, %vm1851_vm14 }
0x1749   :  { %v1847_v14 = vsub.f32 1.0, %v1846_v13 }
0x174b   :  { %v1848_v33 = vmul.f32 %v2719_v11, %v1847_v14 }
0x174d   :  { %v1849_v16 = vadd.f32 %v2719_v11, %v1848_v33 }
0x174f   :  { %v1853_v4 = vsel %vm1852_vm1, %v2719_v11, %v1849_v16 }
0x1750   :  { %v1858_v36 = vsel %vm1855_vm2, %v1857_v26, %v1853_v4 }
0x1751   :  { %v1879_v39 = vmul.f32 %v1877_v63, %v1858_v36 }
0x17ae   :  { %v1882_v32 = vpop.permute.xlu0 %1881 }
0x17af   :  { %v1884_v48 = vmul.f32 %v1882_v32, %v1858_v36 }
0x17b1   :  { %1886 = vrot.lane.b32.xlu1 %v1884_v48, %s2927_s4 }
0x1823   :  { %v1887_v22 = vpop.permute.xlu1 %1886 }
0x1824   :  { %v3469_v49 = vadd.f32 %v1887_v22, %v1879_v39 }
0x1826   :  { %2720 = vtanh.f32 %v3469_v49  ;;  %v1980_v23 = vrot.slane %v3469_v49, 6 }
0x1827   :  { %2722 = vpow2.f32 %v2495_v59 }
0x182c   :  { %v2721_v38 = vpop.eup %2720 }
0x182d   :  { %1892 = vrot.lane.b32.xlu2 %v2721_v38, %s2927_s4  ;;  %v2723_v3 = vpop.eup %2722 }
0x182e   :  { %v1844_v6 = vadd.f32 1.0, %v2723_v3 }
0x1830   :  { %2724 = vrcp.f32 %v1844_v6  ;;  %v1871_v47 = vand.u32 2147483648, %v1844_v6  ;;  %vm1865_vm6 = vweird.f32 %v1844_v6  ;;  %v1869_v53 = vand.u32 2147483647, %v1844_v6 }
0x1832   :  { %v1872_v29 = vor.u32 1.1754944e-38, %v1871_v47  ;;  %vm1870_vm8 = vcmp.eq.f32.partialorder %v1869_v53, 8.507059e+37 }
0x1836   :  { %v2725_v35 = vpop.eup %2724 }
0x1837   :  { %v1861_v2 = vmul.f32 %v2725_v35, %v1844_v6  ;;  %vm1866_vm3 = vweird.f32 %v2725_v35 }
0x1838   :  { %vm1867_vm7 = vmor %vm1865_vm6, %vm1866_vm3 }
0x1839   :  { %v1862_v43 = vsub.f32 1.0, %v1861_v2 }
0x183b   :  { %v1863_v50 = vmul.f32 %v2725_v35, %v1862_v43 }
0x183d   :  { %v1864_v24 = vadd.f32 %v2725_v35, %v1863_v50 }
0x183f   :  { %v1868_v30 = vsel %vm1867_vm7, %v2725_v35, %v1864_v24 }
0x1840   :  { %v1873_v56 = vsel %vm1870_vm8, %v1872_v29, %v1868_v30 }
0x1887   :  { %v1893_v41 = vpop.permute.xlu2 %1892 }
0x1888   :  { %v1895_v55 = vmul.f32 %v1893_v41, %v1873_v56 }
0x188a   :  { %v1896_v42 = vpack.c.bf16 %v1895_v55, %v1895_v55 }
0x188c   :  { %2496 = vmatmul.msk.bf16.vlgmr.msra.gmra.mxu2 %vm196_vm0, %v1896_v42  ;;  %2497 = vmatmul.msk.bf16.vlgmr.msra.gmra.mxu3 %vm196_vm0, %v1896_v42 }
0x190f   :  { %v1909_v37 = vpop.f32.mrf.mxu2  ;;  %v1922_v31 = vpop.f32.mrf.mxu3 }
0x1910   :  { %v1935_v44 = vrot.slane %v1922_v31, 6  ;;  %v1934_v52 = vrot.slane %v1909_v37, 6 }
0x1912   :  { %v1939_v10 = vadd.f32 %v1935_v44, %v3367_v18  ;;  %v1938_v60 = vadd.f32 %v1934_v52, %v3365_v17 }
0x1914   :  { %2726 = vtanh.f32 %v1939_v10  ;;  %v2498_v61 = vmul.f32 -1.442695, %v1938_v60  ;;  %v2499_v33 = vmul.f32 -1.442695, %v1939_v10 }
0x1916   :  { %2728 = vpow2.f32 %v2498_v61 }
0x1917   :  { %v1911_v58 = vpop.f32.mrf.mxu2  ;;  %v1924_v46 = vpop.f32.mrf.mxu3 }
0x191a   :  { %v2727_v45 = vpop.eup %2726 }
0x191b   :  { %1984 = vrot.lane.b32.xlu0 %v2727_v45, %s2927_s4 }
0x191c   :  { %v2729_v62 = vpop.eup %2728 }
0x191d   :  { %v1946_v54 = vadd.f32 1.0, %v2729_v62 }
0x191f   :  { %2730 = vrcp.f32 %v1946_v54  ;;  %v1959_v27 = vand.u32 2147483648, %v1946_v54  ;;  %vm1953_vm10 = vweird.f32 %v1946_v54  ;;  %v1957_v28 = vand.u32 2147483647, %v1946_v54 }
0x1921   :  { %v1960_v34 = vor.u32 1.1754944e-38, %v1959_v27  ;;  %vm1958_vm11 = vcmp.eq.f32.partialorder %v1957_v28, 8.507059e+37 }
0x1925   :  { %v2731_v0 = vpop.eup %2730 }
0x1926   :  { %v1949_v51 = vmul.f32 %v2731_v0, %v1946_v54  ;;  %vm1954_vm9 = vweird.f32 %v2731_v0 }
0x1927   :  { %vm1955_vm5 = vmor %vm1953_vm10, %vm1954_vm9 }
0x1928   :  { %v1950_v57 = vsub.f32 1.0, %v1949_v51 }
0x192a   :  { %v1951_v1 = vmul.f32 %v2731_v0, %v1950_v57 }
0x192c   :  { %v1952_v7 = vadd.f32 %v2731_v0, %v1951_v1 }
0x192e   :  { %v1956_v9 = vsel %vm1955_vm5, %v2731_v0, %v1952_v7 }
0x192f   :  { %v1961_v12 = vsel %vm1958_vm11, %v1960_v34, %v1956_v9 }
0x1930   :  { %v1982_v8 = vmul.f32 %v1980_v23, %v1961_v12 }
0x198d   :  { %v1985_v25 = vpop.permute.xlu0 %1984 }
0x198e   :  { %v1987_v20 = vmul.f32 %v1985_v25, %v1961_v12 }
0x1990   :  { %1989 = vrot.lane.b32.xlu1 %v1987_v20, %s2927_s4 }
0x1a02   :  { %v1990_v11 = vpop.permute.xlu1 %1989 }
0x1a03   :  { %v3480_v13 = vadd.f32 %v1990_v11, %v1982_v8 }
0x1a05   :  { %2732 = vtanh.f32 %v3480_v13  ;;  %v2079_v61 = vrot.slane %v3480_v13, 6 }
0x1a06   :  { %2734 = vpow2.f32 %v2499_v33 }
0x1a0b   :  { %v2733_v14 = vpop.eup %2732 }
0x1a0c   :  { %1995 = vrot.lane.b32.xlu2 %v2733_v14, %s2927_s4  ;;  %v2735_v16 = vpop.eup %2734 }
0x1a0d   :  { %v1947_v21 = vadd.f32 1.0, %v2735_v16 }
0x1a0f   :  { %2736 = vrcp.f32 %v1947_v21  ;;  %v1974_v48 = vand.u32 2147483648, %v1947_v21  ;;  %vm1968_vm13 = vweird.f32 %v1947_v21  ;;  %v1972_v63 = vand.u32 2147483647, %v1947_v21 }
0x1a11   :  { %v1975_v22 = vor.u32 1.1754944e-38, %v1974_v48  ;;  %vm1973_vm15 = vcmp.eq.f32.partialorder %v1972_v63, 8.507059e+37 }
0x1a15   :  { %v2737_v5 = vpop.eup %2736 }
0x1a16   :  { %v1964_v4 = vmul.f32 %v2737_v5, %v1947_v21  ;;  %vm1969_vm12 = vweird.f32 %v2737_v5 }
0x1a17   :  { %vm1970_vm14 = vmor %vm1968_vm13, %vm1969_vm12 }
0x1a18   :  { %v1965_v26 = vsub.f32 1.0, %v1964_v4 }
0x1a1a   :  { %v1966_v32 = vmul.f32 %v2737_v5, %v1965_v26 }
0x1a1c   :  { %v1967_v36 = vadd.f32 %v2737_v5, %v1966_v32 }
0x1a1e   :  { %v1971_v39 = vsel %vm1970_vm14, %v2737_v5, %v1967_v36 }
0x1a1f   :  { %v1976_v49 = vsel %vm1973_vm15, %v1975_v22, %v1971_v39 }
0x1a66   :  { %v1996_v38 = vpop.permute.xlu2 %1995 }
0x1a67   :  { %v1998_v59 = vmul.f32 %v1996_v38, %v1976_v49 }
0x1a69   :  { %v1999_v3 = vpack.c.bf16 %v1998_v59, %v1998_v59 }
0x1a6b   :  { %v2001_v6 = vrot.slane %v1999_v3, 1 }
0x1a6d   :  { %2500 = vmatmul.msk.bf16.vlgmr.msrb.gmra.mxu0 %vm196_vm0, %v2001_v6  ;;  %2501 = vmatmul.msk.bf16.vlgmr.msrb.gmra.mxu1 %vm196_vm0, %v2001_v6 }
0x1aea   :  { %v2014_v35 = vpop.f32.mrf.mxu0  ;;  %v2027_v2 = vpop.f32.mrf.mxu1 }
0x1aeb   :  { %v2034_v43 = vrot.slane %v2027_v2, 4  ;;  %v2033_v30 = vrot.slane %v2014_v35, 4 }
0x1aed   :  { %v2038_v50 = vadd.f32 %v2034_v43, %v3371_v19  ;;  %v2037_v29 = vadd.f32 %v2033_v30, %v3369_v40 }
0x1aef   :  { %2738 = vtanh.f32 %v2038_v50  ;;  %v2502_v56 = vmul.f32 -1.442695, %v2037_v29  ;;  %v2503_v57 = vmul.f32 -1.442695, %v2038_v50 }
0x1af1   :  { %2740 = vpow2.f32 %v2502_v56 }
0x1af2   :  { %v2016_v24 = vpop.f32.mrf.mxu0  ;;  %v2029_v47 = vpop.f32.mrf.mxu1 }
0x1af5   :  { %v2739_v53 = vpop.eup %2738 }
0x1af6   :  { %2083 = vrot.lane.b32.xlu0 %v2739_v53, %s2927_s4 }
0x1af7   :  { %v2741_v41 = vpop.eup %2740 }
0x1af8   :  { %v2045_v55 = vadd.f32 1.0, %v2741_v41 }
0x1afa   :  { %2742 = vrcp.f32 %v2045_v55  ;;  %v2058_v19 = vand.u32 2147483648, %v2045_v55  ;;  %vm2052_vm2 = vweird.f32 %v2045_v55  ;;  %v2056_v58 = vand.u32 2147483647, %v2045_v55 }
0x1afc   :  { %v2059_v45 = vor.u32 1.1754944e-38, %v2058_v19  ;;  %vm2057_vm6 = vcmp.eq.f32.partialorder %v2056_v58, 8.507059e+37 }
0x1b00   :  { %v2743_v42 = vpop.eup %2742 }
0x1b01   :  { %v2048_v37 = vmul.f32 %v2743_v42, %v2045_v55  ;;  %vm2053_vm1 = vweird.f32 %v2743_v42 }
0x1b02   :  { %vm2054_vm3 = vmor %vm2052_vm2, %vm2053_vm1  ;;  %vm2206_vm2 = vcmask 523270  }
0x1b03   :  { %v2049_v31 = vsub.f32 1.0, %v2048_v37 }
0x1b05   :  { %v2050_v44 = vmul.f32 %v2743_v42, %v2049_v31 }
0x1b07   :  { %v2051_v10 = vadd.f32 %v2743_v42, %v2050_v44 }
0x1b09   :  { %v2055_v46 = vsel %vm2054_vm3, %v2743_v42, %v2051_v10 }
0x1b0a   :  { %v2060_v40 = vsel %vm2057_vm6, %v2059_v45, %v2055_v46  ;;  %vm2234_vm6 = vcmask 7174  }
0x1b0b   :  { %v2081_v62 = vmul.f32 %v2079_v61, %v2060_v40 }
0x1b68   :  { %v2084_v52 = vpop.permute.xlu0 %2083 }
0x1b69   :  { %v2086_v60 = vmul.f32 %v2084_v52, %v2060_v40 }
0x1b6b   :  { %2088 = vrot.lane.b32.xlu1 %v2086_v60, %s2927_s4 }
0x1bdd   :  { %v2089_v54 = vpop.permute.xlu1 %2088 }
0x1bde   :  { %v3491_v0 = vadd.f32 %v2089_v54, %v2081_v62  ;;  %v2568_v54 = vld [vmem:[%s3520_s9] ss:$0 sm:$0xff] }
0x1be0   :  { %2744 = vtanh.f32 %v3491_v0  ;;  %v2178_v30 = vrot.slane %v3491_v0, 6  ;;  %v2198_v0 = vrot.slane %v3397_v15, 2 }
0x1be1   :  { %2746 = vpow2.f32 %v2503_v57 }
0x1be6   :  { %v2745_v51 = vpop.eup %2744 }
0x1be7   :  { %2094 = vrot.lane.b32.xlu2 %v2745_v51, %s2927_s4  ;;  %v2747_v1 = vpop.eup %2746 }
0x1be8   :  { %v2046_v7 = vadd.f32 1.0, %v2747_v1 }
0x1bea   :  { %2748 = vrcp.f32 %v2046_v7  ;;  %v2073_v12 = vand.u32 2147483648, %v2046_v7  ;;  %vm2067_vm8 = vweird.f32 %v2046_v7  ;;  %v2071_v20 = vand.u32 2147483647, %v2046_v7 }
0x1bec   :  { %v2074_v8 = vor.u32 1.1754944e-38, %v2073_v12  ;;  %vm2072_vm10 = vcmp.eq.f32.partialorder %v2071_v20, 8.507059e+37 }
0x1bf0   :  { %v2749_v27 = vpop.eup %2748 }
0x1bf1   :  { %v2063_v28 = vmul.f32 %v2749_v27, %v2046_v7  ;;  %vm2068_vm7 = vweird.f32 %v2749_v27 }
0x1bf2   :  { %vm2069_vm9 = vmor %vm2067_vm8, %vm2068_vm7 }
0x1bf3   :  { %v2064_v9 = vsub.f32 1.0, %v2063_v28 }
0x1bf5   :  { %v2065_v34 = vmul.f32 %v2749_v27, %v2064_v9 }
0x1bf7   :  { %v2066_v25 = vadd.f32 %v2749_v27, %v2065_v34 }
0x1bf9   :  { %v2070_v23 = vsel %vm2069_vm9, %v2749_v27, %v2066_v25  ;;  %v2569_v27 = vld [vmem:[#allocation2] ss:$0 sm:$0xff] }
0x1bfa   :  { %v2075_v11 = vsel %vm2072_vm10, %v2074_v8, %v2070_v23 }
0x1c41   :  { %v2095_v13 = vpop.permute.xlu2 %2094 }
0x1c42   :  { %v2097_v14 = vmul.f32 %v2095_v13, %v2075_v11 }
0x1c44   :  { %v2098_v33 = vpack.c.bf16 %v2097_v14, %v2097_v14 }
0x1c46   :  { %v2100_v16 = vrot.slane %v2098_v33, 2 }
0x1c48   :  { %2504 = vmatmul.msk.bf16.vlgmr.msrb.gmra.mxu2 %vm196_vm0, %v2100_v16  ;;  %2505 = vmatmul.msk.bf16.vlgmr.msrb.gmra.mxu3 %vm196_vm0, %v2100_v16 }
0x1ccb   :  { %v2113_v21 = vpop.f32.mrf.mxu2  ;;  %v2126_v5 = vpop.f32.mrf.mxu3 }
0x1ccc   :  { %v2133_v4 = vrot.slane %v2126_v5, 2  ;;  %v2132_v63 = vrot.slane %v2113_v21, 2 }
0x1cce   :  { %v2137_v26 = vadd.f32 %v2133_v4, %v3367_v18  ;;  %v2136_v39 = vadd.f32 %v2132_v63, %v3365_v17 }
0x1cd0   :  { %2750 = vtanh.f32 %v2137_v26  ;;  %v2506_v22 = vmul.f32 -1.442695, %v2136_v39  ;;  %v2507_v42 = vmul.f32 -1.442695, %v2137_v26 }
0x1cd2   :  { %2752 = vpow2.f32 %v2506_v22 }
0x1cd3   :  { %v2115_v32 = vpop.f32.mrf.mxu2  ;;  %v2128_v36 = vpop.f32.mrf.mxu3 }
0x1cd6   :  { %v2751_v48 = vpop.eup %2750 }
0x1cd7   :  { %2182 = vrot.lane.b32.xlu0 %v2751_v48, %s2927_s4 }
0x1cd8   :  { %v2753_v49 = vpop.eup %2752 }
0x1cd9   :  { %v2144_v38 = vadd.f32 1.0, %v2753_v49 }
0x1cdb   :  { %2754 = vrcp.f32 %v2144_v38  ;;  %v2157_v18 = vand.u32 2147483648, %v2144_v38  ;;  %vm2151_vm5 = vweird.f32 %v2144_v38  ;;  %v2155_v43 = vand.u32 2147483647, %v2144_v38 }
0x1cdd   :  { %v2158_v24 = vor.u32 1.1754944e-38, %v2157_v18  ;;  %vm2156_vm12 = vcmp.eq.f32.partialorder %v2155_v43, 8.507059e+37 }
0x1ce1   :  { %v2755_v59 = vpop.eup %2754 }
0x1ce2   :  { %v2147_v3 = vmul.f32 %v2755_v59, %v2144_v38  ;;  %vm2152_vm0 = vweird.f32 %v2755_v59 }
0x1ce3   :  { %vm2153_vm11 = vmor %vm2151_vm5, %vm2152_vm0 }
0x1ce4   :  { %v2148_v6 = vsub.f32 1.0, %v2147_v3 }
0x1ce6   :  { %v2149_v35 = vmul.f32 %v2755_v59, %v2148_v6 }
0x1ce8   :  { %v2150_v2 = vadd.f32 %v2755_v59, %v2149_v35 }
0x1cea   :  { %v2154_v50 = vsel %vm2153_vm11, %v2755_v59, %v2150_v2 }
0x1ceb   :  { %v2159_v17 = vsel %vm2156_vm12, %v2158_v24, %v2154_v50 }
0x1cec   :  { %v2180_v29 = vmul.f32 %v2178_v30, %v2159_v17 }
0x1d49   :  { %v2183_v47 = vpop.permute.xlu0 %2182 }
0x1d4a   :  { %v2185_v53 = vmul.f32 %v2183_v47, %v2159_v17 }
0x1d4c   :  { %2187 = vrot.lane.b32.xlu1 %v2185_v53, %s2927_s4 }
0x1dbe   :  { %v2188_v56 = vpop.permute.xlu1 %2187 }
0x1dbf   :  { %v2190_v41 = vadd.f32 %v2188_v56, %v2180_v29 }
0x1dc1   :  { %2756 = vtanh.f32 %v2190_v41 }
0x1dc2   :  { %2758 = vpow2.f32 %v2507_v42 }
0x1dc7   :  { %v2757_v55 = vpop.eup %2756 }
0x1dc8   :  { %2193 = vrot.lane.b32.xlu2 %v2757_v55, %s2927_s4  ;;  %v2759_v37 = vpop.eup %2758 }
0x1dc9   :  { %v2145_v31 = vadd.f32 1.0, %v2759_v37 }
0x1dcb   :  { %2760 = vrcp.f32 %v2145_v31  ;;  %v2172_v45 = vand.u32 2147483648, %v2145_v31  ;;  %vm2166_vm14 = vweird.f32 %v2145_v31  ;;  %v2170_v52 = vand.u32 2147483647, %v2145_v31 }
0x1dcd   :  { %v2173_v60 = vor.u32 1.1754944e-38, %v2172_v45  ;;  %vm2171_vm1 = vcmp.eq.f32.partialorder %v2170_v52, 8.507059e+37 }
0x1dd1   :  { %v2761_v44 = vpop.eup %2760 }
0x1dd2   :  { %v2162_v10 = vmul.f32 %v2761_v44, %v2145_v31  ;;  %vm2167_vm13 = vweird.f32 %v2761_v44 }
0x1dd3   :  { %vm2168_vm15 = vmor %vm2166_vm14, %vm2167_vm13 }
0x1dd4   :  { %v2163_v19 = vsub.f32 1.0, %v2162_v10 }
0x1dd6   :  { %v2164_v58 = vmul.f32 %v2761_v44, %v2163_v19 }
0x1dd8   :  { %v2165_v46 = vadd.f32 %v2761_v44, %v2164_v58 }
0x1dda   :  { %v2169_v40 = vsel %vm2168_vm15, %v2761_v44, %v2165_v46 }
0x1ddb   :  { %v2174_v61 = vsel %vm2171_vm1, %v2173_v60, %v2169_v40 }
0x1e22   :  { %v2194_v62 = vpop.permute.xlu2 %2193 }
0x1e23   :  { %v2196_v51 = vmul.f32 %v2194_v62, %v2174_v61 }
0x1e25   :  { %v2200_v57 = vsel %vm1153_vm4, %v2196_v51, %v2198_v0 }
0x1e26   :  { %v2205_v1 = vmul.f32 %v2568_v54, %v2200_v57 }
0x1e28   :  { %v2207_v7 = vsel %vm2206_vm2, %v2205_v1, 0.0 }
0x1e29   :  { %2208 = vadd.xlane.f32.xlu0 %v2207_v7 }
0x1e9c   :  { %v2209_v28 = vpop.xlane.xlu0 %2208 }
0x1e9d   :  { %v2214_v9 = vadd.f32 %v2569_v27, %v2209_v28 }
0x1e9f   :  { %v2508_v34 = vmul.f32 -1.442695, %v2214_v9 }
0x1ea1   :  { %2762 = vpow2.f32 %v2508_v34 }
0x1ea7   :  { %v2763_v25 = vpop.eup %2762 }
0x1ea8   :  { %v2218_v12 = vadd.f32 1.0, %v2763_v25 }
0x1eaa   :  { %2764 = vrcp.f32 %v2218_v12  ;;  %v2230_v11 = vand.u32 2147483648, %v2218_v12  ;;  %v2228_v13 = vand.u32 2147483647, %v2218_v12  ;;  %vm2224_vm4 = vweird.f32 %v2218_v12 }
0x1eac   :  { %v2231_v33 = vor.u32 1.1754944e-38, %v2230_v11  ;;  %vm2229_vm8 = vcmp.eq.f32.partialorder %v2228_v13, 8.507059e+37 }
0x1eb0   :  { %v2765_v20 = vpop.eup %2764 }
0x1eb1   :  { %v2220_v23 = vmul.f32 %v2765_v20, %v2218_v12  ;;  %vm2225_vm3 = vweird.f32 %v2765_v20 }
0x1eb2   :  { %vm2226_vm7 = vmor %vm2224_vm4, %vm2225_vm3 }
0x1eb3   :  { %v2221_v8 = vsub.f32 1.0, %v2220_v23 }
0x1eb5   :  { %v2222_v15 = vmul.f32 %v2765_v20, %v2221_v8 }
0x1eb7   :  { %v2223_v14 = vadd.f32 %v2765_v20, %v2222_v15 }
0x1eb9   :  { %v2227_v16 = vsel %vm2226_vm7, %v2765_v20, %v2223_v14 }
0x1eba   :  { %v2232_v21 = vsel %vm2229_vm8, %v2231_v33, %v2227_v16 }
0x1ebb   :  { %2235 = vst.msk [vmem:[%s3522_s11 - $0x6] sm:$0xc0] %vm2234_vm6, %v2232_v21 }
0x1ebc   :  { %2240 = vsyncpa [#allocation4], 1 }
0x1ebd   :  { %2241 = vsyncpa [#allocation6], 1 }
0x1ebe   :  { %2242 = vsyncpa [#allocation9], 1 }
0x1ebf   :  { %2243 = vsyncpa [#allocation12], 1 }

</bundles_post_ra>
